<compile_context>
chip_gen: v7x
topology: tpu7x:2x2x1
jax: 0.10.0
libtpu: 0.0.40
codegen_flags: <defaults>
</compile_context>

<pallas_src>
import functools
import inspect
import math

import jax
import jax.numpy as jnp
from jax import lax
from jax.experimental import pallas as pl
from jax.experimental.pallas import tpu as pltpu


_LN3 = math.log(3.0)
_INV_SQRT_2PI = 1.0 / math.sqrt(2.0 * math.pi)
_NEG_INF = -1e30


def _round_up(n, m):
    return ((n + m - 1) // m) * m


def _layer_norm(z, gamma, beta, eps=1e-5):
    mu = jnp.mean(z, axis=-1, keepdims=True)
    var = jnp.mean((z - mu) ** 2, axis=-1, keepdims=True)
    return (z - mu) * lax.rsqrt(var + eps) * gamma + beta


def encoder_layer_kernel(x_ref,
                         wall_ref, ball_ref,      # fused q|k|v|sigma projection (bf16 / f32 bias)
                         wo_ref, bo_ref,          # out projection as (H, E, D) bf16 / f32 bias
                         g1_ref, be1_ref,         # norm1
                         w1_ref, b1_ref,          # conv1 (1x1) pre-T bf16
                         w2_ref, b2_ref,          # conv2 (1x1) pre-T bf16
                         g2_ref, be2_ref,         # norm2
                         out_ref, series_ref, prior_ref, sigma_ref,
                         q_scr, k_scr, v_scr, invs_scr, nhd_scr, acc_scr,
                         *, L_valid, D, H, E):
    h = pl.program_id(1)
    Lp = nhd_scr.shape[0]
    bf16 = jnp.bfloat16
    f32 = jnp.float32

    # ---------------- per-batch prologue (h == 0) ------------------------------
    @pl.when(h == 0)
    def _prologue():
        x = x_ref[0]                                     # (Lp, D) f32
        xb = x.astype(bf16)
        # fused Q/K/V/sigma projection: one (Lp,D)@(D,3D+H) bf16 matmul, f32 accum.
        proj = jnp.dot(xb, wall_ref[...],
                       preferred_element_type=f32) + ball_ref[...]

        # static per-head split into (H, Lp, E) scratches (no dynamic lane slicing)
        for hh in range(H):
            q_scr[hh] = proj[:, hh * E:(hh + 1) * E].astype(bf16)        # scale folded
            k_scr[hh] = proj[:, D + hh * E:D + (hh + 1) * E].astype(bf16)
            v_scr[hh] = proj[:, 2 * D + hh * E:2 * D + (hh + 1) * E].astype(bf16)

        # sigma transform, once for all heads:  3**(sigmoid(5x)+1e-5) - 1
        sig_lin = proj[:, 3 * D:3 * D + H]               # (Lp, H)
        s_all = jnp.exp(_LN3 * (jax.nn.sigmoid(sig_lin * 5.0) + 1e-5)) - 1.0
        sigma_ref[0] = s_all                             # compact (Lp, H) sigma output
        inv_all = pl.reciprocal(s_all, approx=True)      # EUP slot, off the VALU
        for hh in range(H):
            invs_scr[hh] = inv_all[:, hh:hh + 1]

        # -0.5 * |i-j|^2, hoisted (recomputed per batch item: megacore-safe, cheap)
        row = lax.broadcasted_iota(jnp.int32, (Lp, Lp), 0).astype(f32)
        col = lax.broadcasted_iota(jnp.int32, (Lp, Lp), 1).astype(f32)
        dist = jnp.abs(row - col)
        nhd_scr[...] = dist * dist * (-0.5)

        acc_scr[...] = jnp.zeros_like(acc_scr)           # out-projection accumulator

    # ---------------- per-head body (every grid step) ---------------------------
    qh = q_scr[h]                                        # (Lp, E) bf16
    kh = k_scr[h]
    vh = v_scr[h]

    # scores = (scale*q) @ k^T  -- contract last dims, no in-kernel transpose
    sc = lax.dot_general(qh, kh, (((1,), (1,)), ((), ())),
                         preferred_element_type=f32)     # (Lp, Lp) f32
    if L_valid != Lp:                                    # mask padded key columns
        col_ok = lax.broadcasted_iota(jnp.int32, (Lp, Lp), 1) < L_valid
        sc = jnp.where(col_ok, sc, _NEG_INF)

    m = jnp.max(sc, axis=-1, keepdims=True)
    ex = jnp.exp(sc - m)
    denom = jnp.sum(ex, axis=-1, keepdims=True)
    ser = ex * (1.0 / denom)                             # exact reciprocal for KL loss
    series_ref[0, 0] = ser

    # prior: unnormalized Gaussian over |i-j|, divides hoisted to the prologue
    inv_col = invs_scr[h]                                # (Lp, 1)
    prior_ref[0, 0] = (_INV_SQRT_2PI * inv_col) * jnp.exp(
        nhd_scr[...] * (inv_col * inv_col))

    # attention output for this head, folded straight into the out-projection
    attn_h = jnp.dot(ser.astype(bf16), vh, preferred_element_type=f32)   # (Lp, E)
    acc_scr[...] += jnp.dot(attn_h.astype(bf16), wo_ref[h],
                            preferred_element_type=f32)                  # (Lp, D)

    # ---------------- epilogue (h == H-1): residual + norm1 + FFN + norm2 -------
    @pl.when(h == H - 1)
    def _epilogue():
        new_x = acc_scr[...] + bo_ref[...]
        x1 = x_ref[0] + new_x                            # x + dropout(new_x), eval mode
        xn = _layer_norm(x1, g1_ref[...], be1_ref[...])  # norm1

        y = jnp.dot(xn.astype(bf16), w1_ref[...],
                    preferred_element_type=f32) + b1_ref[...]
        y = jnp.maximum(y, 0.0)                          # relu
        y = jnp.dot(y.astype(bf16), w2_ref[...],
                    preferred_element_type=f32) + b2_ref[...]

        out_ref[0] = _layer_norm(xn + y, g2_ref[...], be2_ref[...])      # norm2


def encoder_layer(x, params, n_heads):
    B, L, D = x.shape
    H = n_heads
    E = D // H
    d_ff = params["w1"].shape[0]
    scale = 1.0 / math.sqrt(E)
    f32, bf16 = jnp.float32, jnp.bfloat16

    # ---- pad win_size to a lane-dense multiple of 128 ---------------------------
    Lp = _round_up(L, 128)
    x_p = x.astype(f32)
    if Lp != L:
        x_p = jnp.pad(x_p, ((0, 0), (0, Lp - L), (0, 0)))

    # ---- host-side weight prep: pre-transpose, fold scale, fuse, cast to bf16 ---
    wall = jnp.concatenate([scale * params["wq"].T, params["wk"].T,
                            params["wv"].T, params["wsig"].T], axis=1).astype(bf16)   # (D, 3D+H)
    ball = jnp.concatenate([scale * params["bq"], params["bk"],
                            params["bv"], params["bsig"]], axis=1).astype(f32)        # (1, 3D+H)
    wo_heads = params["wo"].T.reshape(H, E, D).astype(bf16)                            # (H, E, D)
    weights = [
        wall, ball,
        wo_heads, params["bo"].astype(f32),
        params["g1"].astype(f32), params["be1"].astype(f32),
        params["w1"].T.astype(bf16), params["b1"].astype(f32),
        params["w2"].T.astype(bf16), params["b2"].astype(f32),
        params["g2"].astype(f32), params["be2"].astype(f32),
    ]

    # grid-invariant weights: single-buffer them if this JAX supports pipeline_mode
    try:
        _has_pm = hasattr(pl, "Buffered") and \
            "pipeline_mode" in inspect.signature(pl.BlockSpec).parameters
    except (TypeError, ValueError):
        _has_pm = False

    def _weight_spec(a):
        nd = a.ndim
        idx = lambda b, h, _nd=nd: (0,) * _nd
        if _has_pm:
            return pl.BlockSpec(a.shape, idx, pipeline_mode=pl.Buffered(1))
        return pl.BlockSpec(a.shape, idx)

    in_specs = [pl.BlockSpec((1, Lp, D), lambda b, h: (b, 0, 0))] + \
               [_weight_spec(w) for w in weights]

    out_shape = (
        jax.ShapeDtypeStruct((B, Lp, D), f32),           # encoder output (padded)
        jax.ShapeDtypeStruct((B, H, Lp, Lp), f32),       # series (attn)
        jax.ShapeDtypeStruct((B, H, Lp, Lp), f32),       # prior
        jax.ShapeDtypeStruct((B, Lp, H), f32),           # sigma (compact, pre-broadcast)
    )
    out_specs = (
        pl.BlockSpec((1, Lp, D), lambda b, h: (b, 0, 0)),
        pl.BlockSpec((1, 1, Lp, Lp), lambda b, h: (b, h, 0, 0)),
        pl.BlockSpec((1, 1, Lp, Lp), lambda b, h: (b, h, 0, 0)),
        pl.BlockSpec((1, Lp, H), lambda b, h: (b, 0, 0)),
    )

    scratch_shapes = [
        pltpu.VMEM((H, Lp, E), bf16),     # q (per head)
        pltpu.VMEM((H, Lp, E), bf16),     # k
        pltpu.VMEM((H, Lp, E), bf16),     # v
        pltpu.VMEM((H, Lp, 1), f32),      # 1/sigma per head
        pltpu.VMEM((Lp, Lp), f32),        # -0.5*dist^2
        pltpu.VMEM((Lp, D), f32),         # out-projection accumulator
    ]

    # ---- VMEM budget: pipeline blocks + weights + scratch + kernel intermediates
    def _nb(shape, dtype):
        n = 1
        for s in shape:
            n *= int(s)
        return n * jnp.dtype(dtype).itemsize

    block_bytes = 2 * (2 * _nb((1, Lp, D), f32)            # x + out (double-buffered)
                       + 2 * _nb((1, 1, Lp, Lp), f32)      # series + prior
                       + _nb((1, Lp, H), f32))             # sigma
    weight_buf = 1 if _has_pm else 2
    weight_bytes = weight_buf * sum(int(w.size) * w.dtype.itemsize for w in weights)
    lane = lambda n: _round_up(max(n, 1), 128)              # lane-padding of minor dim
    scratch_bytes = (3 * _nb((H, Lp, lane(E)), bf16)
                     + _nb((H, Lp, lane(1)), f32)
                     + _nb((Lp, Lp), f32)
                     + _nb((Lp, D), f32))
    interm_bytes = (_nb((Lp, 3 * D + H), f32)               # proj
                    + 4 * _nb((Lp, Lp), f32)                # sc/ex/ser/dist temporaries
                    + _nb((Lp, d_ff), f32)                  # FFN hidden
                    + 4 * _nb((Lp, D), f32))                # residual/LN temporaries

    phys_vmem = 64 * 1024 * 1024                            # safe fallback for all gens
    try:
        info = pltpu.get_tpu_info()
        phys_vmem = int(getattr(info, "vmem_capacity_bytes", phys_vmem)) or phys_vmem
    except Exception:
        pass
    cap = (phys_vmem * 7) // 8                              # ~56 MiB v7x, ~112 MiB v5e/v6e
    need = block_bytes + weight_bytes + scratch_bytes + interm_bytes
    vmem_limit = int(min(cap, max(32 * 1024 * 1024, int(1.25 * need))))

    kernel = functools.partial(encoder_layer_kernel, L_valid=L, D=D, H=H, E=E)

    out_p, series_p, prior_p, sigma_p = pl.pallas_call(
        kernel,
        out_shape=out_shape,
        grid_spec=pltpu.PrefetchScalarGridSpec(
            num_scalar_prefetch=0,
            grid=(B, H),                                   # heads on a sequential grid axis
            in_specs=in_specs,
            out_specs=out_specs,
            scratch_shapes=scratch_shapes,
        ),
        compiler_params=pltpu.CompilerParams(
            dimension_semantics=("parallel", "arbitrary"),
            vmem_limit_bytes=vmem_limit),
    )(x_p, *weights)

    # ---- crop padding and rebuild the (B,H,L,L) sigma broadcast host-side -------
    out = out_p[:, :L, :]
    series = series_p[:, :, :L, :L]
    prior = prior_p[:, :, :L, :L]
    sigma = jnp.broadcast_to(
        jnp.transpose(sigma_p[:, :L, :], (0, 2, 1))[..., None], (B, H, L, L))
    return out, series, prior, sigma


if __name__ == "__main__":
    B, L, D, H = 2, 8, 32, 4        # batch, win_size, d_model, n_heads
    d_ff = 4 * D                     # d_ff defaults to 4 * d_model

    key = jax.random.PRNGKey(0)
    ks = jax.random.split(key, 16)

    def w(k, shape, s=0.1):
        return (s * jax.random.normal(k, shape)).astype(jnp.float32)

    params = dict(
        # AttentionLayer projections (PyTorch nn.Linear layout: (out, in))
        wq=w(ks[0], (D, D)),  bq=w(ks[1], (1, D)),
        wk=w(ks[2], (D, D)),  bk=w(ks[3], (1, D)),
        wv=w(ks[4], (D, D)),  bv=w(ks[5], (1, D)),
        wsig=w(ks[6], (H, D)), bsig=w(ks[7], (1, H)),
        wo=w(ks[8], (D, D)),  bo=w(ks[9], (1, D)),
        # norm1 / norm2 (LayerNorm affine)
        g1=jnp.ones((1, D), jnp.float32), be1=jnp.zeros((1, D), jnp.float32),
        g2=jnp.ones((1, D), jnp.float32), be2=jnp.zeros((1, D), jnp.float32),
        # conv1 / conv2 (kernel_size=1 -> (out_ch, in_ch) matrices)
        w1=w(ks[10], (d_ff, D)), b1=w(ks[11], (1, d_ff)),
        w2=w(ks[12], (D, d_ff)), b2=w(ks[13], (1, D)),
    )

    x = jax.random.normal(ks[14], (B, L, D), jnp.float32)

    out, series, prior, sigma = encoder_layer(x, params, H)
    jax.block_until_ready((out, series, prior, sigma))
    assert out.shape == (B, L, D)
    assert series.shape == (B, H, L, L)
    assert prior.shape == (B, H, L, L)
    assert sigma.shape == (B, H, L, L)
    print("KERNEL_OK")
</pallas_src>

<mosaic_0001>
module attributes {stable_mosaic.version = 11 : i64} {
  func.func @encoder_layer_kernel(%arg0: i32, %arg1: i32, %arg2: memref<1x128x32xf32, #tpu.memory_space<vmem>>, %arg3: memref<32x100xbf16, #tpu.memory_space<vmem>>, %arg4: memref<1x100xf32, #tpu.memory_space<vmem>>, %arg5: memref<4x8x32xbf16, #tpu.memory_space<vmem>>, %arg6: memref<1x32xf32, #tpu.memory_space<vmem>>, %arg7: memref<1x32xf32, #tpu.memory_space<vmem>>, %arg8: memref<1x32xf32, #tpu.memory_space<vmem>>, %arg9: memref<32x128xbf16, #tpu.memory_space<vmem>>, %arg10: memref<1x128xf32, #tpu.memory_space<vmem>>, %arg11: memref<128x32xbf16, #tpu.memory_space<vmem>>, %arg12: memref<1x32xf32, #tpu.memory_space<vmem>>, %arg13: memref<1x32xf32, #tpu.memory_space<vmem>>, %arg14: memref<1x32xf32, #tpu.memory_space<vmem>>, %arg15: memref<1x128x32xf32, #tpu.memory_space<vmem>>, %arg16: memref<1x1x128x128xf32, #tpu.memory_space<vmem>>, %arg17: memref<1x1x128x128xf32, #tpu.memory_space<vmem>>, %arg18: memref<1x128x4xf32, #tpu.memory_space<vmem>>, %arg19: memref<4x128x8xbf16, #tpu.memory_space<vmem>>, %arg20: memref<4x128x8xbf16, #tpu.memory_space<vmem>>, %arg21: memref<4x128x8xbf16, #tpu.memory_space<vmem>>, %arg22: memref<4x128x1xf32, #tpu.memory_space<vmem>>, %arg23: memref<128x128xf32, #tpu.memory_space<vmem>>, %arg24: memref<128x32xf32, #tpu.memory_space<vmem>>) attributes {dimension_semantics = [#tpu.dimension_semantics<parallel>, #tpu.dimension_semantics<arbitrary>], iteration_bounds = array<i64: 2, 4>, scalar_prefetch = 0 : i64, scratch_operands = 6 : i64, tpu.core_type = #tpu.core_type<tc>, window_params = [{transform_indices = @transform_0, window_bounds = array<i64: 1, 128, 32>}, {pipeline_mode = #tpu.pipeline_mode<synchronous>, transform_indices = @transform_1, window_bounds = array<i64: 32, 100>}, {pipeline_mode = #tpu.pipeline_mode<synchronous>, transform_indices = @transform_2, window_bounds = array<i64: 1, 100>}, {pipeline_mode = #tpu.pipeline_mode<synchronous>, transform_indices = @transform_3, window_bounds = array<i64: 4, 8, 32>}, {pipeline_mode = #tpu.pipeline_mode<synchronous>, transform_indices = @transform_4, window_bounds = array<i64: 1, 32>}, {pipeline_mode = #tpu.pipeline_mode<synchronous>, transform_indices = @transform_5, window_bounds = array<i64: 1, 32>}, {pipeline_mode = #tpu.pipeline_mode<synchronous>, transform_indices = @transform_6, window_bounds = array<i64: 1, 32>}, {pipeline_mode = #tpu.pipeline_mode<synchronous>, transform_indices = @transform_7, window_bounds = array<i64: 32, 128>}, {pipeline_mode = #tpu.pipeline_mode<synchronous>, transform_indices = @transform_8, window_bounds = array<i64: 1, 128>}, {pipeline_mode = #tpu.pipeline_mode<synchronous>, transform_indices = @transform_9, window_bounds = array<i64: 128, 32>}, {pipeline_mode = #tpu.pipeline_mode<synchronous>, transform_indices = @transform_10, window_bounds = array<i64: 1, 32>}, {pipeline_mode = #tpu.pipeline_mode<synchronous>, transform_indices = @transform_11, window_bounds = array<i64: 1, 32>}, {pipeline_mode = #tpu.pipeline_mode<synchronous>, transform_indices = @transform_12, window_bounds = array<i64: 1, 32>}, {transform_indices = @transform_13, window_bounds = array<i64: 1, 128, 32>}, {transform_indices = @transform_14, window_bounds = array<i64: 1, 1, 128, 128>}, {transform_indices = @transform_15, window_bounds = array<i64: 1, 1, 128, 128>}, {transform_indices = @transform_16, window_bounds = array<i64: 1, 128, 4>}]} {
    %c0_i32 = arith.constant 0 : i32
    %0 = arith.cmpi eq, %arg1, %c0_i32 : i32
    %1 = arith.extui %0 : i1 to i32
    %c0_i32_0 = arith.constant 0 : i32
    %2 = arith.cmpi ne, %1, %c0_i32_0 : i32
    scf.if %2 {
      %c0_32 = arith.constant 0 : index
      %c0_33 = arith.constant 0 : index
      %c0_34 = arith.constant 0 : index
      %60 = vector.load %arg2[%c0_32, %c0_33, %c0_34] : memref<1x128x32xf32, #tpu.memory_space<vmem>>, vector<1x128x32xf32>
      %61 = vector.shape_cast %60 : vector<1x128x32xf32> to vector<128x32xf32>
      %62 = arith.truncf %61 : vector<128x32xf32> to vector<128x32xbf16>
      %c0_35 = arith.constant 0 : index
      %c0_36 = arith.constant 0 : index
      %63 = vector.load %arg3[%c0_35, %c0_36] : memref<32x100xbf16, #tpu.memory_space<vmem>>, vector<32x100xbf16>
      %cst_37 = arith.constant dense<0.000000e+00> : vector<128x100xf32>
      %64 = tpu.matmul %62, %63, %cst_37 {dimension_numbers = #tpu.dot_dimension_numbers<[1], [0], [0], [1], [0, 0, 1, 1], [], []>} : vector<128x32xbf16>, vector<32x100xbf16>, vector<128x100xf32> -> vector<128x100xf32>
      %c0_38 = arith.constant 0 : index
      %c0_39 = arith.constant 0 : index
      %65 = vector.load %arg4[%c0_38, %c0_39] : memref<1x100xf32, #tpu.memory_space<vmem>>, vector<1x100xf32>
      %66 = vector.broadcast %65 : vector<1x100xf32> to vector<128x100xf32>
      %67 = arith.addf %64, %66 : vector<128x100xf32>
      %68 = vector.extract_strided_slice %67 {offsets = [0, 0], sizes = [128, 8], strides = [1, 1]} : vector<128x100xf32> to vector<128x8xf32>
      %69 = arith.truncf %68 : vector<128x8xf32> to vector<128x8xbf16>
      %c0_40 = arith.constant 0 : index
      %c0_41 = arith.constant 0 : index
      %c0_42 = arith.constant 0 : index
      %70 = vector.load %arg19[%c0_40, %c0_41, %c0_42] : memref<4x128x8xbf16, #tpu.memory_space<vmem>>, vector<1x128x8xbf16>
      %71 = vector.shape_cast %70 : vector<1x128x8xbf16> to vector<128x8xbf16>
      %72 = vector.shape_cast %69 : vector<128x8xbf16> to vector<1x128x8xbf16>
      tpu.vector_store %arg19[%c0_40, %c0_41, %c0_42], %72 {strides = array<i32>} : memref<4x128x8xbf16, #tpu.memory_space<vmem>>, vector<1x128x8xbf16>,
      %73 = vector.extract_strided_slice %67 {offsets = [0, 32], sizes = [128, 8], strides = [1, 1]} : vector<128x100xf32> to vector<128x8xf32>
      %74 = arith.truncf %73 : vector<128x8xf32> to vector<128x8xbf16>
      %c0_43 = arith.constant 0 : index
      %c0_44 = arith.constant 0 : index
      %c0_45 = arith.constant 0 : index
      %75 = vector.load %arg20[%c0_43, %c0_44, %c0_45] : memref<4x128x8xbf16, #tpu.memory_space<vmem>>, vector<1x128x8xbf16>
      %76 = vector.shape_cast %75 : vector<1x128x8xbf16> to vector<128x8xbf16>
      %77 = vector.shape_cast %74 : vector<128x8xbf16> to vector<1x128x8xbf16>
      tpu.vector_store %arg20[%c0_43, %c0_44, %c0_45], %77 {strides = array<i32>} : memref<4x128x8xbf16, #tpu.memory_space<vmem>>, vector<1x128x8xbf16>,
      %78 = vector.extract_strided_slice %67 {offsets = [0, 64], sizes = [128, 8], strides = [1, 1]} : vector<128x100xf32> to vector<128x8xf32>
      %79 = arith.truncf %78 : vector<128x8xf32> to vector<128x8xbf16>
      %c0_46 = arith.constant 0 : index
      %c0_47 = arith.constant 0 : index
      %c0_48 = arith.constant 0 : index
      %80 = vector.load %arg21[%c0_46, %c0_47, %c0_48] : memref<4x128x8xbf16, #tpu.memory_space<vmem>>, vector<1x128x8xbf16>
      %81 = vector.shape_cast %80 : vector<1x128x8xbf16> to vector<128x8xbf16>
      %82 = vector.shape_cast %79 : vector<128x8xbf16> to vector<1x128x8xbf16>
      tpu.vector_store %arg21[%c0_46, %c0_47, %c0_48], %82 {strides = array<i32>} : memref<4x128x8xbf16, #tpu.memory_space<vmem>>, vector<1x128x8xbf16>,
      %83 = vector.extract_strided_slice %67 {offsets = [0, 8], sizes = [128, 8], strides = [1, 1]} : vector<128x100xf32> to vector<128x8xf32>
      %84 = arith.truncf %83 : vector<128x8xf32> to vector<128x8xbf16>
      %c1 = arith.constant 1 : index
      %c0_49 = arith.constant 0 : index
      %c0_50 = arith.constant 0 : index
      %85 = vector.load %arg19[%c1, %c0_49, %c0_50] : memref<4x128x8xbf16, #tpu.memory_space<vmem>>, vector<1x128x8xbf16>
      %86 = vector.shape_cast %85 : vector<1x128x8xbf16> to vector<128x8xbf16>
      %87 = vector.shape_cast %84 : vector<128x8xbf16> to vector<1x128x8xbf16>
      tpu.vector_store %arg19[%c1, %c0_49, %c0_50], %87 {strides = array<i32>} : memref<4x128x8xbf16, #tpu.memory_space<vmem>>, vector<1x128x8xbf16>,
      %88 = vector.extract_strided_slice %67 {offsets = [0, 40], sizes = [128, 8], strides = [1, 1]} : vector<128x100xf32> to vector<128x8xf32>
      %89 = arith.truncf %88 : vector<128x8xf32> to vector<128x8xbf16>
      %c1_51 = arith.constant 1 : index
      %c0_52 = arith.constant 0 : index
      %c0_53 = arith.constant 0 : index
      %90 = vector.load %arg20[%c1_51, %c0_52, %c0_53] : memref<4x128x8xbf16, #tpu.memory_space<vmem>>, vector<1x128x8xbf16>
      %91 = vector.shape_cast %90 : vector<1x128x8xbf16> to vector<128x8xbf16>
      %92 = vector.shape_cast %89 : vector<128x8xbf16> to vector<1x128x8xbf16>
      tpu.vector_store %arg20[%c1_51, %c0_52, %c0_53], %92 {strides = array<i32>} : memref<4x128x8xbf16, #tpu.memory_space<vmem>>, vector<1x128x8xbf16>,
      %93 = vector.extract_strided_slice %67 {offsets = [0, 72], sizes = [128, 8], strides = [1, 1]} : vector<128x100xf32> to vector<128x8xf32>
      %94 = arith.truncf %93 : vector<128x8xf32> to vector<128x8xbf16>
      %c1_54 = arith.constant 1 : index
      %c0_55 = arith.constant 0 : index
      %c0_56 = arith.constant 0 : index
      %95 = vector.load %arg21[%c1_54, %c0_55, %c0_56] : memref<4x128x8xbf16, #tpu.memory_space<vmem>>, vector<1x128x8xbf16>
      %96 = vector.shape_cast %95 : vector<1x128x8xbf16> to vector<128x8xbf16>
      %97 = vector.shape_cast %94 : vector<128x8xbf16> to vector<1x128x8xbf16>
      tpu.vector_store %arg21[%c1_54, %c0_55, %c0_56], %97 {strides = array<i32>} : memref<4x128x8xbf16, #tpu.memory_space<vmem>>, vector<1x128x8xbf16>,
      %98 = vector.extract_strided_slice %67 {offsets = [0, 16], sizes = [128, 8], strides = [1, 1]} : vector<128x100xf32> to vector<128x8xf32>
      %99 = arith.truncf %98 : vector<128x8xf32> to vector<128x8xbf16>
      %c2 = arith.constant 2 : index
      %c0_57 = arith.constant 0 : index
      %c0_58 = arith.constant 0 : index
      %100 = vector.load %arg19[%c2, %c0_57, %c0_58] : memref<4x128x8xbf16, #tpu.memory_space<vmem>>, vector<1x128x8xbf16>
      %101 = vector.shape_cast %100 : vector<1x128x8xbf16> to vector<128x8xbf16>
      %102 = vector.shape_cast %99 : vector<128x8xbf16> to vector<1x128x8xbf16>
      tpu.vector_store %arg19[%c2, %c0_57, %c0_58], %102 {strides = array<i32>} : memref<4x128x8xbf16, #tpu.memory_space<vmem>>, vector<1x128x8xbf16>,
      %103 = vector.extract_strided_slice %67 {offsets = [0, 48], sizes = [128, 8], strides = [1, 1]} : vector<128x100xf32> to vector<128x8xf32>
      %104 = arith.truncf %103 : vector<128x8xf32> to vector<128x8xbf16>
      %c2_59 = arith.constant 2 : index
      %c0_60 = arith.constant 0 : index
      %c0_61 = arith.constant 0 : index
      %105 = vector.load %arg20[%c2_59, %c0_60, %c0_61] : memref<4x128x8xbf16, #tpu.memory_space<vmem>>, vector<1x128x8xbf16>
      %106 = vector.shape_cast %105 : vector<1x128x8xbf16> to vector<128x8xbf16>
      %107 = vector.shape_cast %104 : vector<128x8xbf16> to vector<1x128x8xbf16>
      tpu.vector_store %arg20[%c2_59, %c0_60, %c0_61], %107 {strides = array<i32>} : memref<4x128x8xbf16, #tpu.memory_space<vmem>>, vector<1x128x8xbf16>,
      %108 = vector.extract_strided_slice %67 {offsets = [0, 80], sizes = [128, 8], strides = [1, 1]} : vector<128x100xf32> to vector<128x8xf32>
      %109 = arith.truncf %108 : vector<128x8xf32> to vector<128x8xbf16>
      %c2_62 = arith.constant 2 : index
      %c0_63 = arith.constant 0 : index
      %c0_64 = arith.constant 0 : index
      %110 = vector.load %arg21[%c2_62, %c0_63, %c0_64] : memref<4x128x8xbf16, #tpu.memory_space<vmem>>, vector<1x128x8xbf16>
      %111 = vector.shape_cast %110 : vector<1x128x8xbf16> to vector<128x8xbf16>
      %112 = vector.shape_cast %109 : vector<128x8xbf16> to vector<1x128x8xbf16>
      tpu.vector_store %arg21[%c2_62, %c0_63, %c0_64], %112 {strides = array<i32>} : memref<4x128x8xbf16, #tpu.memory_space<vmem>>, vector<1x128x8xbf16>,
      %113 = vector.extract_strided_slice %67 {offsets = [0, 24], sizes = [128, 8], strides = [1, 1]} : vector<128x100xf32> to vector<128x8xf32>
      %114 = arith.truncf %113 : vector<128x8xf32> to vector<128x8xbf16>
      %c3 = arith.constant 3 : index
      %c0_65 = arith.constant 0 : index
      %c0_66 = arith.constant 0 : index
      %115 = vector.load %arg19[%c3, %c0_65, %c0_66] : memref<4x128x8xbf16, #tpu.memory_space<vmem>>, vector<1x128x8xbf16>
      %116 = vector.shape_cast %115 : vector<1x128x8xbf16> to vector<128x8xbf16>
      %117 = vector.shape_cast %114 : vector<128x8xbf16> to vector<1x128x8xbf16>
      tpu.vector_store %arg19[%c3, %c0_65, %c0_66], %117 {strides = array<i32>} : memref<4x128x8xbf16, #tpu.memory_space<vmem>>, vector<1x128x8xbf16>,
      %118 = vector.extract_strided_slice %67 {offsets = [0, 56], sizes = [128, 8], strides = [1, 1]} : vector<128x100xf32> to vector<128x8xf32>
      %119 = arith.truncf %118 : vector<128x8xf32> to vector<128x8xbf16>
      %c3_67 = arith.constant 3 : index
      %c0_68 = arith.constant 0 : index
      %c0_69 = arith.constant 0 : index
      %120 = vector.load %arg20[%c3_67, %c0_68, %c0_69] : memref<4x128x8xbf16, #tpu.memory_space<vmem>>, vector<1x128x8xbf16>
      %121 = vector.shape_cast %120 : vector<1x128x8xbf16> to vector<128x8xbf16>
      %122 = vector.shape_cast %119 : vector<128x8xbf16> to vector<1x128x8xbf16>
      tpu.vector_store %arg20[%c3_67, %c0_68, %c0_69], %122 {strides = array<i32>} : memref<4x128x8xbf16, #tpu.memory_space<vmem>>, vector<1x128x8xbf16>,
      %123 = vector.extract_strided_slice %67 {offsets = [0, 88], sizes = [128, 8], strides = [1, 1]} : vector<128x100xf32> to vector<128x8xf32>
      %124 = arith.truncf %123 : vector<128x8xf32> to vector<128x8xbf16>
      %c3_70 = arith.constant 3 : index
      %c0_71 = arith.constant 0 : index
      %c0_72 = arith.constant 0 : index
      %125 = vector.load %arg21[%c3_70, %c0_71, %c0_72] : memref<4x128x8xbf16, #tpu.memory_space<vmem>>, vector<1x128x8xbf16>
      %126 = vector.shape_cast %125 : vector<1x128x8xbf16> to vector<128x8xbf16>
      %127 = vector.shape_cast %124 : vector<128x8xbf16> to vector<1x128x8xbf16>
      tpu.vector_store %arg21[%c3_70, %c0_71, %c0_72], %127 {strides = array<i32>} : memref<4x128x8xbf16, #tpu.memory_space<vmem>>, vector<1x128x8xbf16>,
      %128 = vector.extract_strided_slice %67 {offsets = [0, 96], sizes = [128, 4], strides = [1, 1]} : vector<128x100xf32> to vector<128x4xf32>
      %cst_73 = arith.constant 5.000000e+00 : f32
      %129 = vector.broadcast %cst_73 : f32 to vector<128x4xf32>
      %130 = arith.mulf %128, %129 : vector<128x4xf32>
      %131 = arith.negf %130 : vector<128x4xf32>
      %132 = math.exp %131 : vector<128x4xf32>
      %cst_74 = arith.constant 1.000000e+00 : f32
      %133 = vector.broadcast %cst_74 : f32 to vector<128x4xf32>
      %134 = arith.addf %133, %132 : vector<128x4xf32>
      %135 = arith.divf %133, %134 : vector<128x4xf32>
      %cst_75 = arith.constant 9.99999974E-6 : f32
      %136 = vector.broadcast %cst_75 : f32 to vector<128x4xf32>
      %137 = arith.addf %135, %136 : vector<128x4xf32>
      %cst_76 = arith.constant 1.09861231 : f32
      %138 = vector.broadcast %cst_76 : f32 to vector<128x4xf32>
      %139 = arith.mulf %138, %137 : vector<128x4xf32>
      %140 = math.exp %139 : vector<128x4xf32>
      %cst_77 = arith.constant 1.000000e+00 : f32
      %141 = vector.broadcast %cst_77 : f32 to vector<128x4xf32>
      %142 = arith.subf %140, %141 : vector<128x4xf32>
      %c0_78 = arith.constant 0 : index
      %c0_79 = arith.constant 0 : index
      %c0_80 = arith.constant 0 : index
      %143 = vector.load %arg18[%c0_78, %c0_79, %c0_80] : memref<1x128x4xf32, #tpu.memory_space<vmem>>, vector<1x128x4xf32>
      %144 = vector.shape_cast %143 : vector<1x128x4xf32> to vector<128x4xf32>
      %145 = vector.shape_cast %142 : vector<128x4xf32> to vector<1x128x4xf32>
      tpu.vector_store %arg18[%c0_78, %c0_79, %c0_80], %145 {strides = array<i32>} : memref<1x128x4xf32, #tpu.memory_space<vmem>>, vector<1x128x4xf32>,
      %146 = tpu.reciprocal %142 {approx = true} : vector<128x4xf32> -> vector<128x4xf32>
      %147 = vector.extract_strided_slice %146 {offsets = [0, 0], sizes = [128, 1], strides = [1, 1]} : vector<128x4xf32> to vector<128x1xf32>
      %c0_81 = arith.constant 0 : index
      %c0_82 = arith.constant 0 : index
      %c0_83 = arith.constant 0 : index
      %148 = vector.load %arg22[%c0_81, %c0_82, %c0_83] : memref<4x128x1xf32, #tpu.memory_space<vmem>>, vector<1x128x1xf32>
      %149 = vector.shape_cast %148 : vector<1x128x1xf32> to vector<128x1xf32>
      %150 = vector.shape_cast %147 : vector<128x1xf32> to vector<1x128x1xf32>
      tpu.vector_store %arg22[%c0_81, %c0_82, %c0_83], %150 {strides = array<i32>} : memref<4x128x1xf32, #tpu.memory_space<vmem>>, vector<1x128x1xf32>,
      %151 = vector.extract_strided_slice %146 {offsets = [0, 1], sizes = [128, 1], strides = [1, 1]} : vector<128x4xf32> to vector<128x1xf32>
      %c1_84 = arith.constant 1 : index
      %c0_85 = arith.constant 0 : index
      %c0_86 = arith.constant 0 : index
      %152 = vector.load %arg22[%c1_84, %c0_85, %c0_86] : memref<4x128x1xf32, #tpu.memory_space<vmem>>, vector<1x128x1xf32>
      %153 = vector.shape_cast %152 : vector<1x128x1xf32> to vector<128x1xf32>
      %154 = vector.shape_cast %151 : vector<128x1xf32> to vector<1x128x1xf32>
      tpu.vector_store %arg22[%c1_84, %c0_85, %c0_86], %154 {strides = array<i32>} : memref<4x128x1xf32, #tpu.memory_space<vmem>>, vector<1x128x1xf32>,
      %155 = vector.extract_strided_slice %146 {offsets = [0, 2], sizes = [128, 1], strides = [1, 1]} : vector<128x4xf32> to vector<128x1xf32>
      %c2_87 = arith.constant 2 : index
      %c0_88 = arith.constant 0 : index
      %c0_89 = arith.constant 0 : index
      %156 = vector.load %arg22[%c2_87, %c0_88, %c0_89] : memref<4x128x1xf32, #tpu.memory_space<vmem>>, vector<1x128x1xf32>
      %157 = vector.shape_cast %156 : vector<1x128x1xf32> to vector<128x1xf32>
      %158 = vector.shape_cast %155 : vector<128x1xf32> to vector<1x128x1xf32>
      tpu.vector_store %arg22[%c2_87, %c0_88, %c0_89], %158 {strides = array<i32>} : memref<4x128x1xf32, #tpu.memory_space<vmem>>, vector<1x128x1xf32>,
      %159 = vector.extract_strided_slice %146 {offsets = [0, 3], sizes = [128, 1], strides = [1, 1]} : vector<128x4xf32> to vector<128x1xf32>
      %c3_90 = arith.constant 3 : index
      %c0_91 = arith.constant 0 : index
      %c0_92 = arith.constant 0 : index
      %160 = vector.load %arg22[%c3_90, %c0_91, %c0_92] : memref<4x128x1xf32, #tpu.memory_space<vmem>>, vector<1x128x1xf32>
      %161 = vector.shape_cast %160 : vector<1x128x1xf32> to vector<128x1xf32>
      %162 = vector.shape_cast %159 : vector<128x1xf32> to vector<1x128x1xf32>
      tpu.vector_store %arg22[%c3_90, %c0_91, %c0_92], %162 {strides = array<i32>} : memref<4x128x1xf32, #tpu.memory_space<vmem>>, vector<1x128x1xf32>,
      %163 = tpu.iota {dimensions = array<i32: 0>} : vector<128x128xi32>
      %164 = arith.sitofp %163 : vector<128x128xi32> to vector<128x128xf32>
      %165 = tpu.iota {dimensions = array<i32: 1>} : vector<128x128xi32>
      %166 = arith.sitofp %165 : vector<128x128xi32> to vector<128x128xf32>
      %167 = arith.subf %164, %166 : vector<128x128xf32>
      %168 = math.absf %167 : vector<128x128xf32>
      %169 = arith.mulf %168, %168 : vector<128x128xf32>
      %cst_93 = arith.constant -5.000000e-01 : f32
      %170 = vector.broadcast %cst_93 : f32 to vector<128x128xf32>
      %171 = arith.mulf %169, %170 : vector<128x128xf32>
      %c0_94 = arith.constant 0 : index
      %c0_95 = arith.constant 0 : index
      %172 = vector.load %arg23[%c0_94, %c0_95] : memref<128x128xf32, #tpu.memory_space<vmem>>, vector<128x128xf32>
      tpu.vector_store %arg23[%c0_94, %c0_95], %171 {strides = array<i32>} : memref<128x128xf32, #tpu.memory_space<vmem>>, vector<128x128xf32>,
      %cst_96 = arith.constant 0.000000e+00 : f32
      %173 = vector.broadcast %cst_96 : f32 to vector<128x32xf32>
      %c0_97 = arith.constant 0 : index
      %c0_98 = arith.constant 0 : index
      %174 = vector.load %arg24[%c0_97, %c0_98] : memref<128x32xf32, #tpu.memory_space<vmem>>, vector<128x32xf32>
      tpu.vector_store %arg24[%c0_97, %c0_98], %173 {strides = array<i32>} : memref<128x32xf32, #tpu.memory_space<vmem>>, vector<128x32xf32>,
    } else {
    }
    %3 = arith.index_cast %arg1 : i32 to index
    %c0 = arith.constant 0 : index
    %c0_1 = arith.constant 0 : index
    %4 = vector.load %arg19[%3, %c0, %c0_1] : memref<4x128x8xbf16, #tpu.memory_space<vmem>>, vector<1x128x8xbf16>
    %5 = vector.shape_cast %4 : vector<1x128x8xbf16> to vector<128x8xbf16>
    %6 = arith.index_cast %arg1 : i32 to index
    %c0_2 = arith.constant 0 : index
    %c0_3 = arith.constant 0 : index
    %7 = vector.load %arg20[%6, %c0_2, %c0_3] : memref<4x128x8xbf16, #tpu.memory_space<vmem>>, vector<1x128x8xbf16>
    %8 = vector.shape_cast %7 : vector<1x128x8xbf16> to vector<128x8xbf16>
    %9 = arith.index_cast %arg1 : i32 to index
    %c0_4 = arith.constant 0 : index
    %c0_5 = arith.constant 0 : index
    %10 = vector.load %arg21[%9, %c0_4, %c0_5] : memref<4x128x8xbf16, #tpu.memory_space<vmem>>, vector<1x128x8xbf16>
    %11 = vector.shape_cast %10 : vector<1x128x8xbf16> to vector<128x8xbf16>
    %cst = arith.constant dense<0.000000e+00> : vector<128x128xf32>
    %12 = tpu.matmul %5, %8, %cst {dimension_numbers = #tpu.dot_dimension_numbers<[1], [1], [0], [0], [0, 0, 1, 0], [], []>} : vector<128x8xbf16>, vector<128x8xbf16>, vector<128x128xf32> -> vector<128x128xf32>
    %13 = tpu.iota {dimensions = array<i32: 1>} : vector<128x128xi32>
    %c8_i32 = arith.constant 8 : i32
    %14 = vector.broadcast %c8_i32 : i32 to vector<128x128xi32>
    %15 = arith.cmpi slt, %13, %14 : vector<128x128xi32>
    %cst_6 = arith.constant -1.000000e+30 : f32
    %16 = vector.broadcast %cst_6 : f32 to vector<128x128xf32>
    %17 = arith.select %15, %12, %16 : vector<128x128xi1>, vector<128x128xf32>
    %cst_7 = arith.constant dense<0xFF800000> : vector<128xf32>
    %18 = vector.multi_reduction <maximumf>, %17, %cst_7 [1] : vector<128x128xf32> to vector<128xf32>
    %19 = vector.shape_cast %18 : vector<128xf32> to vector<128x1xf32>
    %20 = vector.broadcast %19 : vector<128x1xf32> to vector<128x128xf32>
    %21 = arith.subf %17, %20 : vector<128x128xf32>
    %22 = math.exp %21 : vector<128x128xf32>
    %cst_8 = arith.constant dense<0.000000e+00> : vector<128xf32>
    %23 = vector.multi_reduction <add>, %22, %cst_8 [1] : vector<128x128xf32> to vector<128xf32>
    %24 = vector.shape_cast %23 : vector<128xf32> to vector<128x1xf32>
    %cst_9 = arith.constant 1.000000e+00 : f32
    %25 = vector.broadcast %cst_9 : f32 to vector<128x1xf32>
    %26 = arith.divf %25, %24 : vector<128x1xf32>
    %27 = vector.broadcast %26 : vector<128x1xf32> to vector<128x128xf32>
    %28 = arith.mulf %22, %27 : vector<128x128xf32>
    %c0_10 = arith.constant 0 : index
    %c0_11 = arith.constant 0 : index
    %c0_12 = arith.constant 0 : index
    %c0_13 = arith.constant 0 : index
    %29 = vector.load %arg16[%c0_10, %c0_11, %c0_12, %c0_13] : memref<1x1x128x128xf32, #tpu.memory_space<vmem>>, vector<1x1x128x128xf32>
    %30 = vector.shape_cast %29 : vector<1x1x128x128xf32> to vector<128x128xf32>
    %31 = vector.shape_cast %28 : vector<128x128xf32> to vector<1x1x128x128xf32>
    tpu.vector_store %arg16[%c0_10, %c0_11, %c0_12, %c0_13], %31 {strides = array<i32>} : memref<1x1x128x128xf32, #tpu.memory_space<vmem>>, vector<1x1x128x128xf32>,
    %32 = arith.index_cast %arg1 : i32 to index
    %c0_14 = arith.constant 0 : index
    %c0_15 = arith.constant 0 : index
    %33 = vector.load %arg22[%32, %c0_14, %c0_15] : memref<4x128x1xf32, #tpu.memory_space<vmem>>, vector<1x128x1xf32>
    %34 = vector.shape_cast %33 : vector<1x128x1xf32> to vector<128x1xf32>
    %cst_16 = arith.constant 0.398942292 : f32
    %35 = vector.broadcast %cst_16 : f32 to vector<128x1xf32>
    %36 = arith.mulf %35, %34 : vector<128x1xf32>
    %c0_17 = arith.constant 0 : index
    %c0_18 = arith.constant 0 : index
    %37 = vector.load %arg23[%c0_17, %c0_18] : memref<128x128xf32, #tpu.memory_space<vmem>>, vector<128x128xf32>
    %38 = arith.mulf %34, %34 : vector<128x1xf32>
    %39 = vector.broadcast %38 : vector<128x1xf32> to vector<128x128xf32>
    %40 = arith.mulf %37, %39 : vector<128x128xf32>
    %41 = math.exp %40 : vector<128x128xf32>
    %42 = vector.broadcast %36 : vector<128x1xf32> to vector<128x128xf32>
    %43 = arith.mulf %42, %41 : vector<128x128xf32>
    %c0_19 = arith.constant 0 : index
    %c0_20 = arith.constant 0 : index
    %c0_21 = arith.constant 0 : index
    %c0_22 = arith.constant 0 : index
    %44 = vector.load %arg17[%c0_19, %c0_20, %c0_21, %c0_22] : memref<1x1x128x128xf32, #tpu.memory_space<vmem>>, vector<1x1x128x128xf32>
    %45 = vector.shape_cast %44 : vector<1x1x128x128xf32> to vector<128x128xf32>
    %46 = vector.shape_cast %43 : vector<128x128xf32> to vector<1x1x128x128xf32>
    tpu.vector_store %arg17[%c0_19, %c0_20, %c0_21, %c0_22], %46 {strides = array<i32>} : memref<1x1x128x128xf32, #tpu.memory_space<vmem>>, vector<1x1x128x128xf32>,
    %47 = arith.truncf %28 : vector<128x128xf32> to vector<128x128xbf16>
    %cst_23 = arith.constant dense<0.000000e+00> : vector<128x8xf32>
    %48 = tpu.matmul %47, %11, %cst_23 {dimension_numbers = #tpu.dot_dimension_numbers<[1], [0], [0], [1], [0, 0, 1, 1], [], []>} : vector<128x128xbf16>, vector<128x8xbf16>, vector<128x8xf32> -> vector<128x8xf32>
    %c0_24 = arith.constant 0 : index
    %c0_25 = arith.constant 0 : index
    %49 = vector.load %arg24[%c0_24, %c0_25] : memref<128x32xf32, #tpu.memory_space<vmem>>, vector<128x32xf32>
    %50 = arith.truncf %48 : vector<128x8xf32> to vector<128x8xbf16>
    %51 = arith.index_cast %arg1 : i32 to index
    %c0_26 = arith.constant 0 : index
    %c0_27 = arith.constant 0 : index
    %52 = vector.load %arg5[%51, %c0_26, %c0_27] : memref<4x8x32xbf16, #tpu.memory_space<vmem>>, vector<1x8x32xbf16>
    %53 = vector.shape_cast %52 : vector<1x8x32xbf16> to vector<8x32xbf16>
    %cst_28 = arith.constant dense<0.000000e+00> : vector<128x32xf32>
    %54 = tpu.matmul %50, %53, %cst_28 {dimension_numbers = #tpu.dot_dimension_numbers<[1], [0], [0], [1], [0, 0, 1, 1], [], []>} : vector<128x8xbf16>, vector<8x32xbf16>, vector<128x32xf32> -> vector<128x32xf32>
    %55 = arith.addf %49, %54 : vector<128x32xf32>
    %c0_29 = arith.constant 0 : index
    %c0_30 = arith.constant 0 : index
    %56 = vector.load %arg24[%c0_29, %c0_30] : memref<128x32xf32, #tpu.memory_space<vmem>>, vector<128x32xf32>
    tpu.vector_store %arg24[%c0_29, %c0_30], %55 {strides = array<i32>} : memref<128x32xf32, #tpu.memory_space<vmem>>, vector<128x32xf32>,
    %c3_i32 = arith.constant 3 : i32
    %57 = arith.cmpi eq, %arg1, %c3_i32 : i32
    %58 = arith.extui %57 : i1 to i32
    %c0_i32_31 = arith.constant 0 : i32
    %59 = arith.cmpi ne, %58, %c0_i32_31 : i32
    scf.if %59 {
      %c0_32 = arith.constant 0 : index
      %c0_33 = arith.constant 0 : index
      %60 = vector.load %arg24[%c0_32, %c0_33] : memref<128x32xf32, #tpu.memory_space<vmem>>, vector<128x32xf32>
      %c0_34 = arith.constant 0 : index
      %c0_35 = arith.constant 0 : index
      %61 = vector.load %arg6[%c0_34, %c0_35] : memref<1x32xf32, #tpu.memory_space<vmem>>, vector<1x32xf32>
      %62 = vector.broadcast %61 : vector<1x32xf32> to vector<128x32xf32>
      %63 = arith.addf %60, %62 : vector<128x32xf32>
      %c0_36 = arith.constant 0 : index
      %c0_37 = arith.constant 0 : index
      %c0_38 = arith.constant 0 : index
      %64 = vector.load %arg2[%c0_36, %c0_37, %c0_38] : memref<1x128x32xf32, #tpu.memory_space<vmem>>, vector<1x128x32xf32>
      %65 = vector.shape_cast %64 : vector<1x128x32xf32> to vector<128x32xf32>
      %66 = arith.addf %65, %63 : vector<128x32xf32>
      %c0_39 = arith.constant 0 : index
      %c0_40 = arith.constant 0 : index
      %67 = vector.load %arg7[%c0_39, %c0_40] : memref<1x32xf32, #tpu.memory_space<vmem>>, vector<1x32xf32>
      %c0_41 = arith.constant 0 : index
      %c0_42 = arith.constant 0 : index
      %68 = vector.load %arg8[%c0_41, %c0_42] : memref<1x32xf32, #tpu.memory_space<vmem>>, vector<1x32xf32>
      %cst_43 = arith.constant dense<0.000000e+00> : vector<128xf32>
      %69 = vector.multi_reduction <add>, %66, %cst_43 [1] : vector<128x32xf32> to vector<128xf32>
      %70 = vector.shape_cast %69 : vector<128xf32> to vector<128x1xf32>
      %cst_44 = arith.constant 3.200000e+01 : f32
      %71 = vector.broadcast %cst_44 : f32 to vector<128x1xf32>
      %72 = arith.divf %70, %71 : vector<128x1xf32>
      %73 = vector.broadcast %72 : vector<128x1xf32> to vector<128x32xf32>
      %74 = arith.subf %66, %73 : vector<128x32xf32>
      %75 = arith.mulf %74, %74 : vector<128x32xf32>
      %cst_45 = arith.constant dense<0.000000e+00> : vector<128xf32>
      %76 = vector.multi_reduction <add>, %75, %cst_45 [1] : vector<128x32xf32> to vector<128xf32>
      %77 = vector.shape_cast %76 : vector<128xf32> to vector<128x1xf32>
      %cst_46 = arith.constant 3.200000e+01 : f32
      %78 = vector.broadcast %cst_46 : f32 to vector<128x1xf32>
      %79 = arith.divf %77, %78 : vector<128x1xf32>
      %80 = vector.broadcast %72 : vector<128x1xf32> to vector<128x32xf32>
      %81 = arith.subf %66, %80 : vector<128x32xf32>
      %cst_47 = arith.constant 9.99999974E-6 : f32
      %82 = vector.broadcast %cst_47 : f32 to vector<128x1xf32>
      %83 = arith.addf %79, %82 : vector<128x1xf32>
      %84 = math.rsqrt %83 : vector<128x1xf32>
      %85 = vector.broadcast %84 : vector<128x1xf32> to vector<128x32xf32>
      %86 = arith.mulf %81, %85 : vector<128x32xf32>
      %87 = vector.broadcast %67 : vector<1x32xf32> to vector<128x32xf32>
      %88 = arith.mulf %86, %87 : vector<128x32xf32>
      %89 = vector.broadcast %68 : vector<1x32xf32> to vector<128x32xf32>
      %90 = arith.addf %88, %89 : vector<128x32xf32>
      %91 = arith.truncf %90 : vector<128x32xf32> to vector<128x32xbf16>
      %c0_48 = arith.constant 0 : index
      %c0_49 = arith.constant 0 : index
      %92 = vector.load %arg9[%c0_48, %c0_49] : memref<32x128xbf16, #tpu.memory_space<vmem>>, vector<32x128xbf16>
      %cst_50 = arith.constant dense<0.000000e+00> : vector<128x128xf32>
      %93 = tpu.matmul %91, %92, %cst_50 {dimension_numbers = #tpu.dot_dimension_numbers<[1], [0], [0], [1], [0, 0, 1, 1], [], []>} : vector<128x32xbf16>, vector<32x128xbf16>, vector<128x128xf32> -> vector<128x128xf32>
      %c0_51 = arith.constant 0 : index
      %c0_52 = arith.constant 0 : index
      %94 = vector.load %arg10[%c0_51, %c0_52] : memref<1x128xf32, #tpu.memory_space<vmem>>, vector<1x128xf32>
      %95 = vector.broadcast %94 : vector<1x128xf32> to vector<128x128xf32>
      %96 = arith.addf %93, %95 : vector<128x128xf32>
      %cst_53 = arith.constant 0.000000e+00 : f32
      %97 = vector.broadcast %cst_53 : f32 to vector<128x128xf32>
      %98 = arith.maximumf %96, %97 : vector<128x128xf32>
      %99 = arith.truncf %98 : vector<128x128xf32> to vector<128x128xbf16>
      %c0_54 = arith.constant 0 : index
      %c0_55 = arith.constant 0 : index
      %100 = vector.load %arg11[%c0_54, %c0_55] : memref<128x32xbf16, #tpu.memory_space<vmem>>, vector<128x32xbf16>
      %cst_56 = arith.constant dense<0.000000e+00> : vector<128x32xf32>
      %101 = tpu.matmul %99, %100, %cst_56 {dimension_numbers = #tpu.dot_dimension_numbers<[1], [0], [0], [1], [0, 0, 1, 1], [], []>} : vector<128x128xbf16>, vector<128x32xbf16>, vector<128x32xf32> -> vector<128x32xf32>
      %c0_57 = arith.constant 0 : index
      %c0_58 = arith.constant 0 : index
      %102 = vector.load %arg12[%c0_57, %c0_58] : memref<1x32xf32, #tpu.memory_space<vmem>>, vector<1x32xf32>
      %103 = vector.broadcast %102 : vector<1x32xf32> to vector<128x32xf32>
      %104 = arith.addf %101, %103 : vector<128x32xf32>
      %105 = arith.addf %90, %104 : vector<128x32xf32>
      %c0_59 = arith.constant 0 : index
      %c0_60 = arith.constant 0 : index
      %106 = vector.load %arg13[%c0_59, %c0_60] : memref<1x32xf32, #tpu.memory_space<vmem>>, vector<1x32xf32>
      %c0_61 = arith.constant 0 : index
      %c0_62 = arith.constant 0 : index
      %107 = vector.load %arg14[%c0_61, %c0_62] : memref<1x32xf32, #tpu.memory_space<vmem>>, vector<1x32xf32>
      %cst_63 = arith.constant dense<0.000000e+00> : vector<128xf32>
      %108 = vector.multi_reduction <add>, %105, %cst_63 [1] : vector<128x32xf32> to vector<128xf32>
      %109 = vector.shape_cast %108 : vector<128xf32> to vector<128x1xf32>
      %cst_64 = arith.constant 3.200000e+01 : f32
      %110 = vector.broadcast %cst_64 : f32 to vector<128x1xf32>
      %111 = arith.divf %109, %110 : vector<128x1xf32>
      %112 = vector.broadcast %111 : vector<128x1xf32> to vector<128x32xf32>
      %113 = arith.subf %105, %112 : vector<128x32xf32>
      %114 = arith.mulf %113, %113 : vector<128x32xf32>
      %cst_65 = arith.constant dense<0.000000e+00> : vector<128xf32>
      %115 = vector.multi_reduction <add>, %114, %cst_65 [1] : vector<128x32xf32> to vector<128xf32>
      %116 = vector.shape_cast %115 : vector<128xf32> to vector<128x1xf32>
      %cst_66 = arith.constant 3.200000e+01 : f32
      %117 = vector.broadcast %cst_66 : f32 to vector<128x1xf32>
      %118 = arith.divf %116, %117 : vector<128x1xf32>
      %119 = vector.broadcast %111 : vector<128x1xf32> to vector<128x32xf32>
      %120 = arith.subf %105, %119 : vector<128x32xf32>
      %cst_67 = arith.constant 9.99999974E-6 : f32
      %121 = vector.broadcast %cst_67 : f32 to vector<128x1xf32>
      %122 = arith.addf %118, %121 : vector<128x1xf32>
      %123 = math.rsqrt %122 : vector<128x1xf32>
      %124 = vector.broadcast %123 : vector<128x1xf32> to vector<128x32xf32>
      %125 = arith.mulf %120, %124 : vector<128x32xf32>
      %126 = vector.broadcast %106 : vector<1x32xf32> to vector<128x32xf32>
      %127 = arith.mulf %125, %126 : vector<128x32xf32>
      %128 = vector.broadcast %107 : vector<1x32xf32> to vector<128x32xf32>
      %129 = arith.addf %127, %128 : vector<128x32xf32>
      %c0_68 = arith.constant 0 : index
      %c0_69 = arith.constant 0 : index
      %c0_70 = arith.constant 0 : index
      %130 = vector.load %arg15[%c0_68, %c0_69, %c0_70] : memref<1x128x32xf32, #tpu.memory_space<vmem>>, vector<1x128x32xf32>
      %131 = vector.shape_cast %130 : vector<1x128x32xf32> to vector<128x32xf32>
      %132 = vector.shape_cast %129 : vector<128x32xf32> to vector<1x128x32xf32>
      tpu.vector_store %arg15[%c0_68, %c0_69, %c0_70], %132 {strides = array<i32>} : memref<1x128x32xf32, #tpu.memory_space<vmem>>, vector<1x128x32xf32>,
    } else {
    }
    return
  }
  func.func @transform_0(%arg0: i32, %arg1: i32) -> (i32, i32, i32) {
    %c0_i32 = arith.constant 0 : i32
    %c0_i32_0 = arith.constant 0 : i32
    %c0_i32_1 = arith.constant 0 : i32
    return %arg0, %c0_i32, %c0_i32_0 : i32, i32, i32
  }
  func.func @transform_1(%arg0: i32, %arg1: i32) -> (i32, i32) {
    %c0_i32 = arith.constant 0 : i32
    %c0_i32_0 = arith.constant 0 : i32
    %c0_i32_1 = arith.constant 0 : i32
    return %c0_i32, %c0_i32_0 : i32, i32
  }
  func.func @transform_2(%arg0: i32, %arg1: i32) -> (i32, i32) {
    %c0_i32 = arith.constant 0 : i32
    %c0_i32_0 = arith.constant 0 : i32
    %c0_i32_1 = arith.constant 0 : i32
    return %c0_i32, %c0_i32_0 : i32, i32
  }
  func.func @transform_3(%arg0: i32, %arg1: i32) -> (i32, i32, i32) {
    %c0_i32 = arith.constant 0 : i32
    %c0_i32_0 = arith.constant 0 : i32
    %c0_i32_1 = arith.constant 0 : i32
    %c0_i32_2 = arith.constant 0 : i32
    return %c0_i32, %c0_i32_0, %c0_i32_1 : i32, i32, i32
  }
  func.func @transform_4(%arg0: i32, %arg1: i32) -> (i32, i32) {
    %c0_i32 = arith.constant 0 : i32
    %c0_i32_0 = arith.constant 0 : i32
    %c0_i32_1 = arith.constant 0 : i32
    return %c0_i32, %c0_i32_0 : i32, i32
  }
  func.func @transform_5(%arg0: i32, %arg1: i32) -> (i32, i32) {
    %c0_i32 = arith.constant 0 : i32
    %c0_i32_0 = arith.constant 0 : i32
    %c0_i32_1 = arith.constant 0 : i32
    return %c0_i32, %c0_i32_0 : i32, i32
  }
  func.func @transform_6(%arg0: i32, %arg1: i32) -> (i32, i32) {
    %c0_i32 = arith.constant 0 : i32
    %c0_i32_0 = arith.constant 0 : i32
    %c0_i32_1 = arith.constant 0 : i32
    return %c0_i32, %c0_i32_0 : i32, i32
  }
  func.func @transform_7(%arg0: i32, %arg1: i32) -> (i32, i32) {
    %c0_i32 = arith.constant 0 : i32
    %c0_i32_0 = arith.constant 0 : i32
    %c0_i32_1 = arith.constant 0 : i32
    return %c0_i32, %c0_i32_0 : i32, i32
  }
  func.func @transform_8(%arg0: i32, %arg1: i32) -> (i32, i32) {
    %c0_i32 = arith.constant 0 : i32
    %c0_i32_0 = arith.constant 0 : i32
    %c0_i32_1 = arith.constant 0 : i32
    return %c0_i32, %c0_i32_0 : i32, i32
  }
  func.func @transform_9(%arg0: i32, %arg1: i32) -> (i32, i32) {
    %c0_i32 = arith.constant 0 : i32
    %c0_i32_0 = arith.constant 0 : i32
    %c0_i32_1 = arith.constant 0 : i32
    return %c0_i32, %c0_i32_0 : i32, i32
  }
  func.func @transform_10(%arg0: i32, %arg1: i32) -> (i32, i32) {
    %c0_i32 = arith.constant 0 : i32
    %c0_i32_0 = arith.constant 0 : i32
    %c0_i32_1 = arith.constant 0 : i32
    return %c0_i32, %c0_i32_0 : i32, i32
  }
  func.func @transform_11(%arg0: i32, %arg1: i32) -> (i32, i32) {
    %c0_i32 = arith.constant 0 : i32
    %c0_i32_0 = arith.constant 0 : i32
    %c0_i32_1 = arith.constant 0 : i32
    return %c0_i32, %c0_i32_0 : i32, i32
  }
  func.func @transform_12(%arg0: i32, %arg1: i32) -> (i32, i32) {
    %c0_i32 = arith.constant 0 : i32
    %c0_i32_0 = arith.constant 0 : i32
    %c0_i32_1 = arith.constant 0 : i32
    return %c0_i32, %c0_i32_0 : i32, i32
  }
  func.func @transform_13(%arg0: i32, %arg1: i32) -> (i32, i32, i32) {
    %c0_i32 = arith.constant 0 : i32
    %c0_i32_0 = arith.constant 0 : i32
    %c0_i32_1 = arith.constant 0 : i32
    return %arg0, %c0_i32, %c0_i32_0 : i32, i32, i32
  }
  func.func @transform_14(%arg0: i32, %arg1: i32) -> (i32, i32, i32, i32) {
    %c0_i32 = arith.constant 0 : i32
    %c0_i32_0 = arith.constant 0 : i32
    %c0_i32_1 = arith.constant 0 : i32
    return %arg0, %arg1, %c0_i32, %c0_i32_0 : i32, i32, i32, i32
  }
  func.func @transform_15(%arg0: i32, %arg1: i32) -> (i32, i32, i32, i32) {
    %c0_i32 = arith.constant 0 : i32
    %c0_i32_0 = arith.constant 0 : i32
    %c0_i32_1 = arith.constant 0 : i32
    return %arg0, %arg1, %c0_i32, %c0_i32_0 : i32, i32, i32, i32
  }
  func.func @transform_16(%arg0: i32, %arg1: i32) -> (i32, i32, i32) {
    %c0_i32 = arith.constant 0 : i32
    %c0_i32_0 = arith.constant 0 : i32
    %c0_i32_1 = arith.constant 0 : i32
    return %arg0, %c0_i32, %c0_i32_0 : i32, i32, i32
  }
}

</mosaic_0001>

<bundles_post_ra>
// kernel: tpu_custom_call.1
= control target key start
LH: loop header
LB: loop body
LE: loop exit
PB: predicated region body
PF: predicated region fallthrough
CT: control target
= control target key end

     0   :  { %s6922_s0 = inlined_call_operand.vmem [shape: f32[2,128,32], index: 0, kind: input, shape index: {}]   ;;  %s6923_s1 = inlined_call_operand.vmem [shape: bf16[32,100], index: 1, kind: input, shape index: {}]   ;;  %s6924_s2 = inlined_call_operand.vmem [shape: f32[1,100], index: 2, kind: input, shape index: {}]   ;;  %s6925_s3 = inlined_call_operand.vmem [shape: bf16[4,8,32], index: 3, kind: input, shape index: {}]   ;;  %s6926_s4 = inlined_call_operand.vmem [shape: f32[1,32], index: 4, kind: input, shape index: {}]   ;;  %s6927_s5 = inlined_call_operand.vmem [shape: f32[1,32], index: 5, kind: input, shape index: {}]   ;;  %s6928_s6 = inlined_call_operand.vmem [shape: f32[1,32], index: 6, kind: input, shape index: {}]   ;;  %s6929_s7 = inlined_call_operand.vmem [shape: bf16[32,128], index: 7, kind: input, shape index: {}]   ;;  %s6930_s8 = inlined_call_operand.vmem [shape: f32[1,128], index: 8, kind: input, shape index: {}]   ;;  %s6931_s9 = inlined_call_operand.vmem [shape: bf16[128,32], index: 9, kind: input, shape index: {}]   ;;  %s6932_s10 = inlined_call_operand.vmem [shape: f32[1,32], index: 10, kind: input, shape index: {}]   ;;  %s6933_s11 = inlined_call_operand.vmem [shape: f32[1,32], index: 11, kind: input, shape index: {}]   ;;  %s6934_s12 = inlined_call_operand.vmem [shape: f32[1,32], index: 12, kind: input, shape index: {}]   ;;  %s6935_s13 = inlined_call_operand.vmem [shape: f32[2,128,32], index: 13, kind: output, shape index: {0}]   ;;  %s6936_s14 = inlined_call_operand.hbm [shape: f32[2,4,128,128], index: 14, kind: output, shape index: {1}]   ;;  %s6937_s15 = inlined_call_operand.hbm [shape: f32[2,4,128,128], index: 15, kind: output, shape index: {2}]   ;;  %s6938_s16 = inlined_call_operand.vmem [shape: f32[2,128,4], index: 16, kind: output, shape index: {3}]  }
   0x1   :  { %6958 = sst [smem:[#allocation26_spill]] %s6922_s0 }
   0x2   :  { %6959 = sst [smem:[#allocation27_spill]] %s6923_s1 }
   0x3   :  { %6960 = sst [smem:[#allocation28_spill]] %s6936_s14 }
   0x4   :  { %6961 = sst [smem:[#allocation29_spill]] %s6937_s15 }
   0x5   :  { %22 = vsyncpa [#allocation9], 0 }
   0x6   :  { %24 = vsyncpa [#allocation9 + $0x1], 0 }
   0x7   :  { %25 = vsyncpa [#allocation11], 0 }
   0x8   :  { %27 = vsyncpa [#allocation11 + $0x1], 0  ;;  %s4994_s21 = smov 0   ;;  %s4996_s22 = smov 0  }
   0x9   :  { %s4998_s23 = smov 0   ;;  %s5000_s24 = smov 0  }
   0xa   :  { %s5002_s25 = smov 0   ;;  %s5004_s26 = smov 0  }
   0xb   :  { %s5006_s27 = smov 0   ;;  %s5008_s28 = smov 0  }
   0xc LB: > { %6962 = sst [smem:[#allocation14_spill]] %s4858_s21  ;;  %s3982_s29 = sadd.s32 4294967295, %s4886_s28   ;;  %s4886_s28 = sphi %s5008_s28, %s33_s28   ;;  %s4882_s27 = sphi %s5006_s27, %s6993_s27   ;;  %s4878_s26 = sphi %s5004_s26, %s6992_s26   ;;  %s4874_s25 = sphi %s5002_s25, %s6991_s25   ;;  %s4870_s24 = sphi %s5000_s24, %s6990_s24   ;;  %s4866_s23 = sphi %s4998_s23, %s6989_s23   ;;  %s4862_s22 = sphi %s4996_s22, %s6988_s22   ;;  %s4858_s21 = sphi %s4994_s21, %s6987_s21  }
   0xd   : > { %6963 = sst [smem:[#allocation15_spill]] %s4862_s22  ;;  %s3983_s30 = sadd.s32 4294967294, %s4886_s28  }
   0xe   : > { %6964 = sst [smem:[#allocation16_spill]] %s4866_s23  ;;  %s42_s0 = sadd.s32 1, %s4878_s26 }
   0xf   : > { %6965 = sst [smem:[#allocation17_spill]] %s4878_s26  ;;  %p43_p0 = scmp.ge.s32.totalorder %s42_s0, 4 }
  0x10   : > { %6966 = sst [smem:[#allocation18_spill]] %s4882_s27  ;;  %s45_s17 = sadd.s32 1, %s4882_s27 }
  0x11   : > { %6967 = sst [smem:[#allocation19_spill]] %s4886_s28  ;;  %p368_p1 = scmp.ne.s32.totalorder %s4866_s23, %s4862_s22 }
  0x12   : > { %p369_p2 = scmp.eq.s32.totalorder %s3982_s29, 7  ;;  %s6995_s0 = smov (%p43_p0, %s42_s0), 0 }
  0x13   : > { %6968 = sst [smem:[#allocation20_spill]] %s6995_s0  ;;  %s6997_s17 = smov (!%p43_p0, %s45_s17), %s4882_s27 }
  0x14   : > { %s354_s18 = ssub.s32 %s4878_s26, %s6995_s0  ;;  %p5045_p3 = por %p369_p2, %p368_p1 }
  0x15   : > { %p47_p4 = scmp.ge.s32.totalorder %s6997_s17, 2  ;;  %p374_p5 = scmp.ne.s32.totalorder %s4862_s22, %s4858_s21 }
  0x16   : > { %s6969_s19 = scalar_select %p5045_p3, 1, 0 }
  0x17   : > { %p375_p6 = scmp.eq.s32.totalorder %s3983_s30, 7  ;;  %p3986_p7 = scmp.ge.s32.totalorder %s4886_s28, 1 }
  0x18   : > { %6970 = sst [smem:[#allocation21_spill]] %s6969_s19  ;;  %s6999_s17 = smov (%p47_p4, %s6997_s17), 0 }
  0x19   : > { %6971 = sst [smem:[#allocation22_spill]] %s6999_s17  ;;  %p5054_p8 = por %p375_p6, %p374_p5 }
  0x1a   : > { %p491_p9 = scmp.lt.s32.totalorder %s4886_s28, 9  ;;  %s353_s29 = ssub.s32 %s4882_s27, %s6999_s17 }
  0x1b   : > { %s6972_s20 = scalar_select %p5054_p8, 1, 0 }
  0x1c   : > { %s358_s15 = sadd.s32 1, %s4866_s23  ;;  %s355_s14 = sor.u32 %s354_s18, %s353_s29 }
  0x1d   : > { %6973 = sst [smem:[#allocation23_spill]] %s6972_s20  ;;  %p492_p10 = pnand %p3986_p7, %p491_p9 }
  0x1e   : > { %p356_p11 = scmp.eq.s32.totalorder %s355_s14, 0 }
  0x1f   : > { %495 = sbr.rel (%p492_p10) target bundleno = 2934 (0xb76), region = 72 }
  0x20   : > { %s5063_s0 = scalar_select %p356_p11, %s4866_s23, %s358_s15  }
  0x22   : > { %6974 = sst [smem:[#allocation24_spill]] %s5063_s0 }
  0x26   : > { %s5066_s30 = sand.u32 1, %s4862_s22   ;;  %p556_p12 = scmp.lt.s32.totalorder %s4874_s25, 1 }
  0x27   : > { %6975 = sst [smem:[#allocation25_spill]] %s5066_s30  ;;  %s3987_s26 = sshll.u32 %s5066_s30, 7 }
  0x28   : > { %s557_s21 = scalar_select %p556_p12, %s4874_s25, 1 }
  0x29   : > { %s6976_s17 = sld [smem:[#allocation26_spill]]  ;;  %s5086_s22 = scalar_lea.vmem [#allocation8], %s3987_s26 }
  0x2a   : > { %s4097_s19 = sshll.u32 %s557_s21, 7  ;;  %s5088_s30 = scalar_lea.vmem [#allocation10], %s3987_s26 }
  0x2b   : > { %s5079_s15 = scalar_lea.vmem %s6935_s13, %s4097_s19  ;;  %s5084_s23 = scalar_lea.vmem %s6938_s16, %s4097_s19 }
  0x2c   : > { %p3995_p13 = scmp.ne.s32.totalorder %s4870_s24, 0 }
  0x2d   : > { %s6977_s1 = sld [smem:[#allocation27_spill]] (!%p3995_p13)  ;;  %vm623_vm0 = vcmask (!%p3995_p13), 261120   ;;  %v4888_v4 = vmov (!%p3995_p13), 0.0   ;;  %v3996_v28 = vld [vmem:[%s6924_s2] ss:$0 sm:$0xff] (!%p3995_p13)  ;;  %vm753_vm1 = vcmask (!%p3995_p13), 64512  }
  0x2e   : > { %575 = sbr.rel (%p3995_p13) target bundleno = 726 (0x2d6), region = 76  ;;  %1812 = vst.msk [vmem:[#allocation7] sm:$0xff] (!%p3995_p13), %vm623_vm0, %v4888_v4  ;;  %1813 = vst.msk [vmem:[#allocation7 + $0x8] sm:$0xff] (!%p3995_p13), %vm623_vm0, %v4888_v4  ;;  %s4890_s18 = smov (!%p3995_p13), 64   ;;  %vm1387_vm2 = vcmask (!%p3995_p13), 31744   ;;  %vm1484_vm3 = vcmask (!%p3995_p13), 7168  }
  0x2f   : > { %s5074_s27 = scalar_lea.vmem %s6976_s17, %s4097_s19  ;;  %1814 = vst.msk [vmem:[#allocation7 + $0x10] sm:$0xff] (!%p3995_p13), %vm623_vm0, %v4888_v4  ;;  %1815 = vst.msk [vmem:[#allocation7 + $0x18] sm:$0xff] (!%p3995_p13), %vm623_vm0, %v4888_v4  ;;  %s4889_s19 = smov (!%p3995_p13), 96  }
  0x30   : > { %v576_v2 = vld [vmem:[%s5074_s27] sm:$0xff] (!%p3995_p13)  ;;  %v577_v3 = vld [vmem:[%s5074_s27 + $0x8] sm:$0xff] (!%p3995_p13)  ;;  %1816 = vst.msk [vmem:[#allocation7 + $0x20] sm:$0xff] (!%p3995_p13), %vm623_vm0, %v4888_v4  ;;  %1817 = vst.msk [vmem:[#allocation7 + $0x28] sm:$0xff] (!%p3995_p13), %vm623_vm0, %v4888_v4  ;;  %s4891_s14 = smov (!%p3995_p13), 120   ;;  %s4892_s29 = smov (!%p3995_p13), 88  }
  0x31   : > { %1818 = vst.msk [vmem:[#allocation7 + $0x30] sm:$0xff] (!%p3995_p13), %vm623_vm0, %v4888_v4  ;;  %1819 = vst.msk [vmem:[#allocation7 + $0x38] sm:$0xff] (!%p3995_p13), %vm623_vm0, %v4888_v4  ;;  %v584_v5 = vld [vmem:[%s5074_s27 + $0x40] sm:$0xff] (!%p3995_p13)  ;;  %v592_v6 = vpack.c.bf16 (!%p3995_p13), %v577_v3, %v576_v2  ;;  %v585_v7 = vld [vmem:[%s5074_s27 + $0x48] sm:$0xff] (!%p3995_p13)  ;;  %s4893_s21 = smov (!%p3995_p13), 56   ;;  %s4894_s28 = smov (!%p3995_p13), 112  }
  0x32   : > { %1820 = vst.msk [vmem:[#allocation7 + $0x40] sm:$0xff] (!%p3995_p13), %vm623_vm0, %v4888_v4  ;;  %1821 = vst.msk [vmem:[#allocation7 + $0x48] sm:$0xff] (!%p3995_p13), %vm623_vm0, %v4888_v4  ;;  %v578_v8 = vld [vmem:[%s5074_s27 + $0x10] sm:$0xff] (!%p3995_p13)  ;;  %v579_v9 = vld [vmem:[%s5074_s27 + $0x18] sm:$0xff] (!%p3995_p13)  ;;  %v596_v10 = vpack.c.bf16 (!%p3995_p13), %v585_v7, %v584_v5  ;;  %s4895_s17 = smov (!%p3995_p13), 80   ;;  %s6955_s20 = smov (!%p3995_p13), 48  }
  0x33   : > { %v4458_v0 = vld [vmem:[%s6977_s1] sm:$0xff] (!%p3995_p13)   ;;  %v4459_v1 = vld [vmem:[%s6977_s1 + $0x8] sm:$0xff] (!%p3995_p13)   ;;  %1822 = vst.msk [vmem:[#allocation7 + $0x50] sm:$0xff] (!%p3995_p13), %vm623_vm0, %v4888_v4  ;;  %1823 = vst.msk [vmem:[#allocation7 + $0x58] sm:$0xff] (!%p3995_p13), %vm623_vm0, %v4888_v4  ;;  %4184 = vmatprep.mubr.msk.bf16.mxu0 (!%p3995_p13), %vm623_vm0, %v592_v6  ;;  %v593_v15 = vpack.c.bf16 (!%p3995_p13), %v579_v9, %v578_v8  ;;  %s4897_s26 = smov (!%p3995_p13), 104   ;;  %s4898_s0 = smov (!%p3995_p13), 72  }
  0x34   : > { %4180 = vmatprep.subr.bf16.mxu0 (!%p3995_p13), %v4458_v0  ;;  %4334 = vmatprep.subr.bf16.mxu1 (!%p3995_p13), %v4458_v0  ;;  %1824 = vst.msk [vmem:[#allocation7 + $0x60] sm:$0xff] (!%p3995_p13), %vm623_vm0, %v4888_v4  ;;  %1825 = vst.msk [vmem:[#allocation7 + $0x68] sm:$0xff] (!%p3995_p13), %vm623_vm0, %v4888_v4  ;;  %v586_v11 = vld [vmem:[%s5074_s27 + $0x50] sm:$0xff] (!%p3995_p13)  ;;  %v587_v12 = vld [vmem:[%s5074_s27 + $0x58] sm:$0xff] (!%p3995_p13) }
  0x35   : > { %1826 = vst.msk [vmem:[#allocation7 + $0x70] sm:$0xff] %vm623_vm0, %v4888_v4  ;;  %1827 = vst.msk [vmem:[#allocation7 + $0x78] sm:$0xff] %vm623_vm0, %v4888_v4  ;;  %4181 = vmatpush3.bf16.msra.mxu0 %v4458_v0  ;;  %4336 = vmatpush3.bf16.msra.mxu1 %v4458_v0  ;;  %v580_v13 = vld [vmem:[%s5074_s27 + $0x20] sm:$0xff]  ;;  %v581_v14 = vld [vmem:[%s5074_s27 + $0x28] sm:$0xff]  ;;  %v597_v16 = vpack.c.bf16 %v587_v12, %v586_v11 }
  0x36   : > { %4182 = vmatprep.subr.bf16.mxu0 %v4459_v1  ;;  %4335 = vmatprep.subr.bf16.mxu1 %v4459_v1  ;;  %v588_v17 = vld [vmem:[%s5074_s27 + $0x60] sm:$0xff]  ;;  %v589_v18 = vld [vmem:[%s5074_s27 + $0x68] sm:$0xff]  ;;  %v594_v19 = vpack.c.bf16 %v581_v14, %v580_v13  ;;  %v582_v21 = vld [vmem:[%s5074_s27 + $0x30] sm:$0xff] }
  0x37   : > { %4192 = vmatprep.mubr.msk.bf16.mxu1 %vm623_vm0, %v596_v10  ;;  %v598_v20 = vpack.c.bf16 %v589_v18, %v588_v17  ;;  %v583_v22 = vld [vmem:[%s5074_s27 + $0x38] sm:$0xff]  ;;  %v590_v23 = vld [vmem:[%s5074_s27 + $0x70] sm:$0xff] }
  0x38   : > { %v591_v24 = vld [vmem:[%s5074_s27 + $0x78] sm:$0xff]  ;;  %v595_v25 = vpack.c.bf16 %v583_v22, %v582_v21 }
  0x39   : > { %4183 = vmatpush3.bf16.msra.mxu0 %v4459_v1  ;;  %4337 = vmatpush3.bf16.msra.mxu1 %v4459_v1  ;;  %v599_v26 = vpack.c.bf16 %v591_v24, %v590_v23 }
  0x3c   : > { %4185 = vmatmul.mubr.msk.bf16.vlgmr.msra.gmra.mrb[0].mxu0 %vm623_vm0, %v593_v15  ;;  %4193 = vmatmul.mubr.msk.bf16.vlgmr.msra.gmra.mrb[0].mxu1 %vm623_vm0, %v597_v16 }
  0x3d   : > { %4188 = vmatprep.mubr.msk.bf16.mxu0 %vm623_vm0, %v594_v19  ;;  %4196 = vmatprep.mubr.msk.bf16.mxu1 %vm623_vm0, %v598_v20 }
  0x44   : > { %4189 = vmatmul.mubr.msk.bf16.gmra.mrb[4].mxu0 %vm623_vm0, %v595_v25  ;;  %4197 = vmatmul.mubr.msk.bf16.gmra.mrb[4].mxu1 %vm623_vm0, %v599_v26 }
 0x10f   : > { %v4186_v27 = vpop.f32.mrb[0].mxu0  ;;  %v4194_v29 = vpop.f32.mrb[0].mxu1 }
 0x110   : > { %v682_v30 = vpop.f32.mrb[1].mxu0  ;;  %v714_v31 = vpop.f32.mrb[1].mxu1  ;;  %v5140_v34 = vadd.f32 %v4186_v27, %v3996_v28  ;;  %v5146_v39 = vadd.f32 %v4194_v29, %v3996_v28 }
 0x111   : > { %v4187_v32 = vpop.f32.mrb[2].mxu0  ;;  %v4195_v33 = vpop.f32.mrb[2].mxu1  ;;  %v5152_v42 = vadd.f32 %v3996_v28, %v682_v30  ;;  %v5158_v44 = vadd.f32 %v3996_v28, %v714_v31 }
 0x112   : > { %v5142_v35 = vadd.f32 %v4187_v32, %v3996_v28  ;;  %v5144_v36 = vadd.f32 %v4195_v33, %v3996_v28  ;;  %v685_v37 = vpop.f32.mrb[3].mxu0  ;;  %v717_v38 = vpop.f32.mrb[3].mxu1  ;;  %v4009_v4 = vmul.f32 -5.0, %v5140_v34  ;;  %v4017_v6 = vmul.f32 -5.0, %v5146_v39 }
 0x113   : > { %v5148_v40 = vadd.f32 %v3996_v28, %v685_v37  ;;  %v5150_v41 = vadd.f32 %v3996_v28, %v717_v38  ;;  %v4007_v14 = vmul.f32 -5.0, %v5152_v42  ;;  %v4015_v18 = vmul.f32 -5.0, %v5158_v44 }
 0x114   : > { %v5156_v43 = vpack.c.bf16 %v5142_v35, %v5140_v34  ;;  %v5162_v45 = vpack.c.bf16 %v5144_v36, %v5146_v39  ;;  %v4010_v5 = vmul.f32 -5.0, %v5142_v35  ;;  %v1167_v8 = vmul.f32 1.442695, %v4009_v4 }
 0x115   : > { %v5168_v46 = vpack.c.bf16 %v5148_v40, %v5152_v42  ;;  %v5176_v47 = vpack.c.bf16 %v5150_v41, %v5158_v44  ;;  %v4018_v11 = vmul.f32 -5.0, %v5144_v36  ;;  %v1183_v12 = vmul.f32 1.442695, %v4017_v6 }
 0x116   : > { %755 = vst.msk [vmem:[#allocation2 + $0x8] sm:$0xff] %vm753_vm1, %v5156_v43  ;;  %772 = vrot.lane.b32.xlu0 %v5156_v43, %s4889_s19  ;;  %759 = vst.msk [vmem:[#allocation2 + $0x28] sm:$0xff] %vm753_vm1, %v5162_v45  ;;  %780 = vrot.lane.b32.xlu1 %v5162_v45, %s4889_s19  ;;  %v1169_v10 = vmul.f32 1.442695, %v4010_v5  ;;  %4460 = vpow2.f32 %v1167_v8  ;;  %v4008_v17 = vmul.f32 -5.0, %v5148_v40  ;;  %v4016_v23 = vmul.f32 -5.0, %v5150_v41 }
 0x117   : > { %v4190_v48 = vpop.f32.mrb[4].mxu0  ;;  %v4198_v49 = vpop.f32.mrb[4].mxu1  ;;  %754 = vst.msk [vmem:[#allocation2] sm:$0xff] %vm753_vm1, %v5168_v46  ;;  %758 = vst.msk [vmem:[#allocation2 + $0x20] sm:$0xff] %vm753_vm1, %v5176_v47  ;;  %v1185_v16 = vmul.f32 1.442695, %v4018_v11 }
 0x118   : > { %v5182_v50 = vadd.f32 %v4190_v48, %v3996_v28  ;;  %v698_v51 = vpop.f32.mrb[5].mxu0  ;;  %v730_v52 = vpop.f32.mrb[5].mxu1  ;;  %v5204_v62 = vadd.f32 %v4198_v49, %v3996_v28  ;;  %4462 = vpow2.f32 %v1169_v10  ;;  %v1163_v20 = vmul.f32 1.442695, %v4007_v14 }
 0x119   : > { %v5186_v53 = vadd.f32 %v3996_v28, %v698_v51  ;;  %v4191_v54 = vpop.f32.mrb[6].mxu0  ;;  %v4199_v55 = vpop.f32.mrb[6].mxu1  ;;  %v5210_v63 = vadd.f32 %v3996_v28, %v730_v52  ;;  %4464 = vpow2.f32 %v1183_v12  ;;  %v1165_v22 = vmul.f32 1.442695, %v4008_v17 }
 0x11a   : > { %770 = vrot.lane.b32.xlu0 %v5168_v46, %s4889_s19  ;;  %v5190_v56 = vadd.f32 %v4191_v54, %v3996_v28  ;;  %v701_v57 = vpop.f32.mrb[7].mxu0  ;;  %v733_v58 = vpop.f32.mrb[7].mxu1  ;;  %804 = vrot.lane.b32.xlu1 %v5156_v43, %s4890_s18  ;;  %v5216_v0 = vadd.f32 %v4199_v55, %v3996_v28  ;;  %4466 = vpow2.f32 %v1185_v16  ;;  %v1179_v24 = vmul.f32 1.442695, %v4015_v18 }
 0x11b   : > { %v5194_v59 = vadd.f32 %v3996_v28, %v701_v57  ;;  %v5218_v1 = vadd.f32 %v3996_v28, %v733_v58  ;;  %v4013_v25 = vmul.f32 -5.0, %v5182_v50  ;;  %v4011_v26 = vmul.f32 -5.0, %v5186_v53 }
 0x11c   : > { %v5198_v60 = vpack.c.bf16 %v5190_v56, %v5182_v50  ;;  %v5222_v2 = vpack.c.bf16 %v5216_v0, %v5204_v62  ;;  %4468 = vpow2.f32 %v1163_v20  ;;  %v4014_v28 = vmul.f32 -5.0, %v5190_v56 }
 0x11d   : > { %v5202_v61 = vpack.c.bf16 %v5194_v59, %v5186_v53  ;;  %v5228_v3 = vpack.c.bf16 %v5218_v1, %v5210_v63  ;;  %4470 = vpow2.f32 %v1165_v22  ;;  %v1181_v30 = vmul.f32 1.442695, %v4016_v23 }
 0x11e   : > { %778 = vrot.lane.b32.xlu0 %v5176_v47, %s4889_s19  ;;  %757 = vst.msk [vmem:[#allocation2 + $0x18] sm:$0xff] %vm753_vm1, %v5198_v60  ;;  %812 = vrot.lane.b32.xlu1 %v5162_v45, %s4890_s18  ;;  %761 = vst.msk [vmem:[#allocation2 + $0x38] sm:$0xff] %vm753_vm1, %v5222_v2  ;;  %4472 = vpow2.f32 %v1179_v24  ;;  %v1175_v32 = vmul.f32 1.442695, %v4013_v25  ;;  %v1171_v34 = vmul.f32 1.442695, %v4011_v26 }
 0x11f   : > { %756 = vst.msk [vmem:[#allocation2 + $0x10] sm:$0xff] %vm753_vm1, %v5202_v61  ;;  %760 = vst.msk [vmem:[#allocation2 + $0x30] sm:$0xff] %vm753_vm1, %v5228_v3  ;;  %v1177_v37 = vmul.f32 1.442695, %v4014_v28  ;;  %v4021_v38 = vmul.f32 -5.0, %v5204_v62  ;;  %4474 = vpow2.f32 %v1181_v30  ;;  %v4022_v41 = vmul.f32 -5.0, %v5216_v0 }
 0x120   : > { %v4461_v31 = vpop.eup %4460  ;;  %4476 = vpow2.f32 %v1175_v32  ;;  %v4019_v56 = vmul.f32 -5.0, %v5210_v63 }
 0x121   : > { %v1197_v40 = vadd.f32 1.0, %v4461_v31  ;;  %4478 = vpow2.f32 %v1171_v34  ;;  %v1193_v49 = vmul.f32 1.442695, %v4022_v41 }
 0x122   : > { %802 = vrot.lane.b32.xlu0 %v5168_v46, %s4890_s18  ;;  %836 = vrot.lane.b32.xlu1 %v5156_v43, %s4891_s14  ;;  %v4463_v33 = vpop.eup %4462  ;;  %4480 = vpow2.f32 %v1177_v37  ;;  %v1187_v6 = vmul.f32 1.442695, %v4019_v56 }
 0x123   : > { %v4465_v36 = vpop.eup %4464  ;;  %v1198_v42 = vadd.f32 1.0, %v4463_v33  ;;  %4482 = vrcp.f32 %v1197_v40 }
 0x124   : > { %v1205_v44 = vadd.f32 1.0, %v4465_v36 }
 0x125   : > { %4484 = vrcp.f32 %v1198_v42 }
 0x126   : > { %810 = vrot.lane.b32.xlu0 %v5176_v47, %s4890_s18  ;;  %844 = vrot.lane.b32.xlu1 %v5162_v45, %s4891_s14  ;;  %4486 = vrcp.f32 %v1205_v44 }
 0x12a   : > { %834 = vrot.lane.b32.xlu0 %v5168_v46, %s4891_s14  ;;  %869 = vrot.lane.b32.xlu1 %v5156_v43, %s4892_s29 }
 0x12e   : > { %842 = vrot.lane.b32.xlu0 %v5176_v47, %s4891_s14  ;;  %877 = vrot.lane.b32.xlu1 %v5162_v45, %s4892_s29 }
 0x132   : > { %867 = vrot.lane.b32.xlu0 %v5168_v46, %s4892_s29  ;;  %902 = vrot.lane.b32.xlu1 %v5156_v43, %s4893_s21 }
 0x136   : > { %875 = vrot.lane.b32.xlu0 %v5176_v47, %s4892_s29  ;;  %910 = vrot.lane.b32.xlu1 %v5162_v45, %s4893_s21 }
 0x13a   : > { %900 = vrot.lane.b32.xlu0 %v5168_v46, %s4893_s21  ;;  %935 = vrot.lane.b32.xlu1 %v5156_v43, %s4894_s28 }
 0x13e   : > { %908 = vrot.lane.b32.xlu0 %v5176_v47, %s4893_s21  ;;  %943 = vrot.lane.b32.xlu1 %v5162_v45, %s4894_s28 }
 0x142   : > { %933 = vrot.lane.b32.xlu0 %v5168_v46, %s4894_s28  ;;  %968 = vrot.lane.b32.xlu1 %v5156_v43, %s4895_s17 }
 0x146   : > { %941 = vrot.lane.b32.xlu0 %v5176_v47, %s4894_s28  ;;  %976 = vrot.lane.b32.xlu1 %v5162_v45, %s4895_s17 }
 0x14a   : > { %966 = vrot.lane.b32.xlu0 %v5168_v46, %s4895_s17  ;;  %1001 = vrot.lane.b32.xlu1 %v5156_v43, %s6955_s20 }
 0x14e   : > { %974 = vrot.lane.b32.xlu0 %v5176_v47, %s4895_s17  ;;  %1009 = vrot.lane.b32.xlu1 %v5162_v45, %s6955_s20 }
 0x152   : > { %999 = vrot.lane.b32.xlu0 %v5168_v46, %s6955_s20  ;;  %1034 = vrot.lane.b32.xlu1 %v5156_v43, %s4897_s26 }
 0x156   : > { %1007 = vrot.lane.b32.xlu0 %v5176_v47, %s6955_s20  ;;  %1042 = vrot.lane.b32.xlu1 %v5162_v45, %s4897_s26  ;;  %s4899_s20 = smov 40  }
 0x15a   : > { %1032 = vrot.lane.b32.xlu0 %v5168_v46, %s4897_s26  ;;  %1067 = vrot.lane.b32.xlu1 %v5156_v43, %s4898_s0 }
 0x15e   : > { %1040 = vrot.lane.b32.xlu0 %v5176_v47, %s4897_s26  ;;  %1075 = vrot.lane.b32.xlu1 %v5162_v45, %s4898_s0 }
 0x162   : > { %1065 = vrot.lane.b32.xlu0 %v5168_v46, %s4898_s0  ;;  %1100 = vrot.lane.b32.xlu1 %v5156_v43, %s4899_s20  ;;  %v4467_v43 = vpop.eup %4466 }
 0x163   : > { %v4469_v50 = vpop.eup %4468  ;;  %v1206_v51 = vadd.f32 1.0, %v4467_v43 }
 0x164   : > { %v4471_v52 = vpop.eup %4470  ;;  %v1195_v58 = vadd.f32 1.0, %v4469_v50 }
 0x165   : > { %v4473_v55 = vpop.eup %4472  ;;  %v1196_v62 = vadd.f32 1.0, %v4471_v52 }
 0x166   : > { %1073 = vrot.lane.b32.xlu0 %v5176_v47, %s4898_s0  ;;  %1108 = vrot.lane.b32.xlu1 %v5162_v45, %s4899_s20  ;;  %v4012_v45 = vmul.f32 -5.0, %v5194_v59  ;;  %v4020_v59 = vmul.f32 -5.0, %v5218_v1  ;;  %v4475_v0 = vpop.eup %4474  ;;  %v1203_v4 = vadd.f32 1.0, %v4473_v55 }
 0x167   : > { %v4477_v5 = vpop.eup %4476  ;;  %v1204_v10 = vadd.f32 1.0, %v4475_v0 }
 0x168   : > { %v1173_v53 = vmul.f32 1.442695, %v4012_v45  ;;  %v4479_v1 = vpop.eup %4478  ;;  %v1189_v8 = vmul.f32 1.442695, %v4020_v59  ;;  %v1201_v16 = vadd.f32 1.0, %v4477_v5 }
 0x169   : > { %v1199_v31 = vadd.f32 1.0, %v4479_v1 }
 0x16a   : > { %1098 = vrot.lane.b32.xlu0 %v5168_v46, %s4899_s20  ;;  %776 = vrot.lane.b32.xlu1 %v5198_v60, %s4889_s19 }
 0x16e   : > { %1106 = vrot.lane.b32.xlu0 %v5176_v47, %s4899_s20  ;;  %784 = vrot.lane.b32.xlu1 %v5222_v2, %s4889_s19  ;;  %v1191_v47 = vmul.f32 1.442695, %v4021_v38 }
 0x170   : > { %4488 = vpow2.f32 %v1191_v47 }
 0x171   : > { %4490 = vpow2.f32 %v1193_v49 }
 0x172   : > { %782 = vrot.lane.b32.xlu0 %v5228_v3, %s4889_s19  ;;  %808 = vrot.lane.b32.xlu1 %v5198_v60, %s4890_s18  ;;  %4492 = vrcp.f32 %v1206_v51 }
 0x173   : > { %4494 = vpow2.f32 %v1173_v53 }
 0x174   : > { %4496 = vrcp.f32 %v1195_v58 }
 0x175   : > { %4498 = vrcp.f32 %v1196_v62 }
 0x176   : > { %806 = vrot.lane.b32.xlu0 %v5202_v61, %s4890_s18  ;;  %816 = vrot.lane.b32.xlu1 %v5222_v2, %s4890_s18  ;;  %4500 = vrcp.f32 %v1203_v4 }
 0x177   : > { %4502 = vpow2.f32 %v1187_v6 }
 0x178   : > { %4504 = vpow2.f32 %v1189_v8 }
 0x179   : > { %4506 = vrcp.f32 %v1204_v10 }
 0x17a   : > { %814 = vrot.lane.b32.xlu0 %v5228_v3, %s4890_s18  ;;  %840 = vrot.lane.b32.xlu1 %v5198_v60, %s4891_s14  ;;  %s6978_s18 = smov 48   ;;  %4508 = vrcp.f32 %v1201_v16 }
 0x17e   : > { %838 = vrot.lane.b32.xlu0 %v5202_v61, %s4891_s14  ;;  %848 = vrot.lane.b32.xlu1 %v5222_v2, %s4891_s14 }
 0x182   : > { %846 = vrot.lane.b32.xlu0 %v5228_v3, %s4891_s14  ;;  %873 = vrot.lane.b32.xlu1 %v5198_v60, %s4892_s29  ;;  %s4901_s14 = smov 31  }
 0x186   : > { %871 = vrot.lane.b32.xlu0 %v5202_v61, %s4892_s29  ;;  %881 = vrot.lane.b32.xlu1 %v5222_v2, %s4892_s29 }
 0x188   : > { %v773_v7 = vpop.permute.xlu0 %772  ;;  %v781_v9 = vpop.permute.xlu1 %780 }
 0x189   : > { %795 = vst.msk [vmem:[#allocation3 + $0x8] sm:$0xff] %vm753_vm1, %v773_v7  ;;  %799 = vst.msk [vmem:[#allocation3 + $0x28] sm:$0xff] %vm753_vm1, %v781_v9  ;;  %v4481_v9 = vpop.eup %4480 }
 0x18a   : > { %879 = vrot.lane.b32.xlu0 %v5228_v3, %s4892_s29  ;;  %906 = vrot.lane.b32.xlu1 %v5198_v60, %s4893_s21  ;;  %v4483_v11 = vpop.eup %4482  ;;  %v1202_v18 = vadd.f32 1.0, %v4481_v9  ;;  %s4902_s29 = smov 30  }
 0x18c   : > { %v771_v13 = vpop.permute.xlu0 %770  ;;  %v805_v15 = vpop.permute.xlu1 %804  ;;  %4510 = vrcp.f32 %v1202_v18 }
 0x18d   : > { %794 = vst.msk [vmem:[#allocation3] sm:$0xff] %vm753_vm1, %v771_v13  ;;  %827 = vst.msk [vmem:[#allocation4 + $0x8] sm:$0xff] %vm753_vm1, %v805_v15  ;;  %v4485_v13 = vpop.eup %4484 }
 0x18e   : > { %904 = vrot.lane.b32.xlu0 %v5202_v61, %s4893_s21  ;;  %914 = vrot.lane.b32.xlu1 %v5222_v2, %s4893_s21  ;;  %v4487_v15 = vpop.eup %4486  ;;  %v1246_v22 = vadd.f32 1e-05, %v4485_v13 }
 0x18f   : > { %v4489_v17 = vpop.eup %4488  ;;  %v1253_v25 = vadd.f32 1e-05, %v4487_v15 }
 0x190   : > { %v779_v19 = vpop.permute.xlu0 %778  ;;  %v813_v21 = vpop.permute.xlu1 %812  ;;  %v1262_v33 = vmul.f32 1.0986123, %v1246_v22 }
 0x191   : > { %798 = vst.msk [vmem:[#allocation3 + $0x20] sm:$0xff] %vm753_vm1, %v779_v19  ;;  %831 = vst.msk [vmem:[#allocation4 + $0x28] sm:$0xff] %vm753_vm1, %v813_v21  ;;  %v1245_v19 = vadd.f32 1e-05, %v4483_v11  ;;  %v4491_v20 = vpop.eup %4490  ;;  %v1269_v38 = vmul.f32 1.0986123, %v1253_v25 }
 0x192   : > { %912 = vrot.lane.b32.xlu0 %v5228_v3, %s4893_s21  ;;  %939 = vrot.lane.b32.xlu1 %v5198_v60, %s4894_s28  ;;  %v4493_v23 = vpop.eup %4492  ;;  %v1210_v28 = vadd.f32 1.0, %v4491_v20  ;;  %v1281_v45 = vmul.f32 1.442695, %v1262_v33  ;;  %s4903_s21 = smov 29  }
 0x193   : > { %v4495_v26 = vpop.eup %4494  ;;  %v1254_v34 = vadd.f32 1e-05, %v4493_v23  ;;  %v1295_v50 = vmul.f32 1.442695, %v1269_v38 }
 0x194   : > { %v803_v27 = vpop.permute.xlu0 %802  ;;  %v837_v29 = vpop.permute.xlu1 %836  ;;  %v1200_v36 = vadd.f32 1.0, %v4495_v26 }
 0x195   : > { %826 = vst.msk [vmem:[#allocation4] sm:$0xff] %vm753_vm1, %v803_v27  ;;  %860 = vst.msk [vmem:[#allocation2 + $0x48] sm:$0xff] %vm753_vm1, %v837_v29  ;;  %v1209_v27 = vadd.f32 1.0, %v4489_v17  ;;  %v1261_v29 = vmul.f32 1.0986123, %v1245_v19  ;;  %v4497_v30 = vpop.eup %4496 }
 0x196   : > { %937 = vrot.lane.b32.xlu0 %v5202_v61, %s4894_s28  ;;  %947 = vrot.lane.b32.xlu1 %v5222_v2, %s4894_s28  ;;  %v1243_v42 = vadd.f32 1e-05, %v4497_v30 }
 0x197   : > { %4512 = vrcp.f32 %v1209_v27  ;;  %v1279_v41 = vmul.f32 1.442695, %v1261_v29 }
 0x198   : > { %v811_v35 = vpop.permute.xlu0 %810  ;;  %v845_v39 = vpop.permute.xlu1 %844  ;;  %4514 = vrcp.f32 %v1210_v28  ;;  %v1259_v53 = vmul.f32 1.0986123, %v1243_v42 }
 0x199   : > { %830 = vst.msk [vmem:[#allocation4 + $0x20] sm:$0xff] %vm753_vm1, %v811_v35  ;;  %864 = vst.msk [vmem:[#allocation2 + $0x68] sm:$0xff] %vm753_vm1, %v845_v39  ;;  %v4499_v35 = vpop.eup %4498  ;;  %4516 = vrcp.f32 %v1199_v31 }
 0x19a   : > { %945 = vrot.lane.b32.xlu0 %v5228_v3, %s4894_s28  ;;  %972 = vrot.lane.b32.xlu1 %v5198_v60, %s4895_s17  ;;  %v4501_v39 = vpop.eup %4500  ;;  %v1244_v47 = vadd.f32 1e-05, %v4499_v35  ;;  %4518 = vrcp.f32 %v1200_v36  ;;  %v1275_v4 = vmul.f32 1.442695, %v1259_v53 }
 0x19b   : > { %v4503_v40 = vpop.eup %4502  ;;  %4520 = vpow2.f32 %v1279_v41 }
 0x19c   : > { %v835_v46 = vpop.permute.xlu0 %834  ;;  %v870_v48 = vpop.permute.xlu1 %869  ;;  %v1207_v51 = vadd.f32 1.0, %v4503_v40  ;;  %4522 = vpow2.f32 %v1281_v45  ;;  %v1260_v58 = vmul.f32 1.0986123, %v1244_v47 }
 0x19d   : > { %859 = vst.msk [vmem:[#allocation2 + $0x40] sm:$0xff] %vm753_vm1, %v835_v46  ;;  %893 = vst.msk [vmem:[#allocation3 + $0x48] sm:$0xff] %vm753_vm1, %v870_v48  ;;  %v4505_v43 = vpop.eup %4504  ;;  %v1270_v46 = vmul.f32 1.0986123, %v1254_v34  ;;  %4524 = vpow2.f32 %v1295_v50 }
 0x19e   : > { %970 = vrot.lane.b32.xlu0 %v5202_v61, %s4895_s17  ;;  %980 = vrot.lane.b32.xlu1 %v5222_v2, %s4895_s17  ;;  %v4507_v48 = vpop.eup %4506  ;;  %v1208_v52 = vadd.f32 1.0, %v4505_v43  ;;  %4526 = vrcp.f32 %v1207_v51  ;;  %v1277_v1 = vmul.f32 1.442695, %v1260_v58 }
 0x19f   : > { %v4509_v55 = vpop.eup %4508  ;;  %v1252_v59 = vadd.f32 1e-05, %v4507_v48 }
 0x1a0   : > { %v843_v54 = vpop.permute.xlu0 %842  ;;  %v878_v57 = vpop.permute.xlu1 %877  ;;  %4528 = vrcp.f32 %v1208_v52  ;;  %v1249_v5 = vadd.f32 1e-05, %v4509_v55 }
 0x1a1   : > { %863 = vst.msk [vmem:[#allocation2 + $0x60] sm:$0xff] %vm753_vm1, %v843_v54  ;;  %897 = vst.msk [vmem:[#allocation3 + $0x68] sm:$0xff] %vm753_vm1, %v878_v57  ;;  %v1251_v54 = vadd.f32 1e-05, %v4501_v39  ;;  %v1297_v57 = vmul.f32 1.442695, %v1270_v46  ;;  %v4511_v62 = vpop.eup %4510 }
 0x1a2   : > { %978 = vrot.lane.b32.xlu0 %v5228_v3, %s4895_s17  ;;  %1005 = vrot.lane.b32.xlu1 %v5198_v60, %s6978_s18  ;;  %v4513_v6 = vpop.eup %4512  ;;  %v1268_v8 = vmul.f32 1.0986123, %v1252_v59  ;;  %v1250_v9 = vadd.f32 1e-05, %v4511_v62  ;;  %v1265_v15 = vmul.f32 1.0986123, %v1249_v5 }
 0x1a3   : > { %4530 = vpow2.f32 %v1297_v57  ;;  %v4515_v10 = vpop.eup %4514  ;;  %v1257_v13 = vadd.f32 1e-05, %v4513_v6 }
 0x1a4   : > { %v868_v63 = vpop.permute.xlu0 %867  ;;  %v903_v7 = vpop.permute.xlu1 %902  ;;  %4532 = vpow2.f32 %v1275_v4  ;;  %v1258_v16 = vadd.f32 1e-05, %v4515_v10  ;;  %v1293_v18 = vmul.f32 1.442695, %v1268_v8  ;;  %v1266_v19 = vmul.f32 1.0986123, %v1250_v9 }
 0x1a5   : > { %892 = vst.msk [vmem:[#allocation3 + $0x40] sm:$0xff] %vm753_vm1, %v868_v63  ;;  %926 = vst.msk [vmem:[#allocation4 + $0x48] sm:$0xff] %vm753_vm1, %v903_v7  ;;  %v1267_v63 = vmul.f32 1.0986123, %v1251_v54  ;;  %4534 = vpow2.f32 %v1277_v1  ;;  %v1273_v25 = vmul.f32 1.0986123, %v1257_v13 }
 0x1a6   : > { %1003 = vrot.lane.b32.xlu0 %v5202_v61, %s6978_s18  ;;  %1013 = vrot.lane.b32.xlu1 %v5222_v2, %s6978_s18  ;;  %v1287_v26 = vmul.f32 1.442695, %v1265_v15  ;;  %v1274_v28 = vmul.f32 1.0986123, %v1258_v16  ;;  %v1289_v31 = vmul.f32 1.442695, %v1266_v19 }
 0x1a7   : > { %v1303_v36 = vmul.f32 1.442695, %v1273_v25 }
 0x1a8   : > { %v876_v12 = vpop.permute.xlu0 %875  ;;  %v911_v14 = vpop.permute.xlu1 %910  ;;  %v1305_v38 = vmul.f32 1.442695, %v1274_v28 }
 0x1a9   : > { %896 = vst.msk [vmem:[#allocation3 + $0x60] sm:$0xff] %vm753_vm1, %v876_v12  ;;  %930 = vst.msk [vmem:[#allocation4 + $0x68] sm:$0xff] %vm753_vm1, %v911_v14  ;;  %v4517_v12 = vpop.eup %4516  ;;  %v1291_v14 = vmul.f32 1.442695, %v1267_v63 }
 0x1aa   : > { %1011 = vrot.lane.b32.xlu0 %v5228_v3, %s6978_s18  ;;  %1038 = vrot.lane.b32.xlu1 %v5198_v60, %s4897_s26  ;;  %v1247_v23 = vadd.f32 1e-05, %v4517_v12 }
 0x1ab   : > { %4536 = vpow2.f32 %v1291_v14 }
 0x1ac   : > { %v901_v21 = vpop.permute.xlu0 %900  ;;  %v936_v24 = vpop.permute.xlu1 %935  ;;  %4538 = vpow2.f32 %v1293_v18  ;;  %v1263_v35 = vmul.f32 1.0986123, %v1247_v23 }
 0x1ad   : > { %925 = vst.msk [vmem:[#allocation4 + $0x40] sm:$0xff] %vm753_vm1, %v901_v21  ;;  %959 = vst.msk [vmem:[#allocation2 + $0x88] sm:$0xff] %vm753_vm1, %v936_v24  ;;  %4540 = vpow2.f32 %v1287_v26 }
 0x1ae   : > { %1036 = vrot.lane.b32.xlu0 %v5202_v61, %s4897_s26  ;;  %1046 = vrot.lane.b32.xlu1 %v5222_v2, %s4897_s26  ;;  %4542 = vpow2.f32 %v1289_v31  ;;  %v1283_v46 = vmul.f32 1.442695, %v1263_v35 }
 0x1af   : > { %4544 = vpow2.f32 %v1303_v36 }
 0x1b0   : > { %v909_v32 = vpop.permute.xlu0 %908  ;;  %v944_v37 = vpop.permute.xlu1 %943  ;;  %4546 = vpow2.f32 %v1305_v38 }
 0x1b1   : > { %929 = vst.msk [vmem:[#allocation4 + $0x60] sm:$0xff] %vm753_vm1, %v909_v32  ;;  %963 = vst.msk [vmem:[#allocation2 + $0xa8] sm:$0xff] %vm753_vm1, %v944_v37  ;;  %4548 = vpow2.f32 %v1283_v46 }
 0x1b2   : > { %1044 = vrot.lane.b32.xlu0 %v5228_v3, %s4897_s26  ;;  %1071 = vrot.lane.b32.xlu1 %v5198_v60, %s4898_s0 }
 0x1b4   : > { %v934_v44 = vpop.permute.xlu0 %933  ;;  %v969_v49 = vpop.permute.xlu1 %968 }
 0x1b5   : > { %958 = vst.msk [vmem:[#allocation2 + $0x80] sm:$0xff] %vm753_vm1, %v934_v44  ;;  %992 = vst.msk [vmem:[#allocation3 + $0x88] sm:$0xff] %vm753_vm1, %v969_v49 }
 0x1b6   : > { %1069 = vrot.lane.b32.xlu0 %v5202_v61, %s4898_s0  ;;  %1079 = vrot.lane.b32.xlu1 %v5222_v2, %s4898_s0 }
 0x1b8   : > { %v942_v56 = vpop.permute.xlu0 %941  ;;  %v977_v0 = vpop.permute.xlu1 %976 }
 0x1b9   : > { %962 = vst.msk [vmem:[#allocation2 + $0xa0] sm:$0xff] %vm753_vm1, %v942_v56  ;;  %996 = vst.msk [vmem:[#allocation3 + $0xa8] sm:$0xff] %vm753_vm1, %v977_v0 }
 0x1ba   : > { %1077 = vrot.lane.b32.xlu0 %v5228_v3, %s4898_s0  ;;  %1104 = vrot.lane.b32.xlu1 %v5198_v60, %s4899_s20  ;;  %v4519_v60 = vpop.eup %4518 }
 0x1bb   : > { %v4521_v20 = vpop.eup %4520  ;;  %v1248_v24 = vadd.f32 1e-05, %v4519_v60 }
 0x1bc   : > { %v967_v7 = vpop.permute.xlu0 %966  ;;  %v1002_v11 = vpop.permute.xlu1 %1001  ;;  %v5442_v30 = vadd.f32 -1.0, %v4521_v20 }
 0x1bd   : > { %991 = vst.msk [vmem:[#allocation3 + $0x80] sm:$0xff] %vm753_vm1, %v967_v7  ;;  %1025 = vst.msk [vmem:[#allocation4 + $0x88] sm:$0xff] %vm753_vm1, %v1002_v11  ;;  %v4523_v22 = vpop.eup %4522 }
 0x1be   : > { %1102 = vrot.lane.b32.xlu0 %v5202_v61, %s4899_s20  ;;  %1112 = vrot.lane.b32.xlu1 %v5222_v2, %s4899_s20  ;;  %v4525_v2 = vpop.eup %4524  ;;  %v5445_v34 = vadd.f32 -1.0, %v4523_v22 }
 0x1bf   : > { %v4527_v27 = vpop.eup %4526  ;;  %v5452_v41 = vadd.f32 -1.0, %v4525_v2 }
 0x1c0   : > { %v975_v17 = vpop.permute.xlu0 %974  ;;  %v1010_v21 = vpop.permute.xlu1 %1009  ;;  %v1255_v37 = vadd.f32 1e-05, %v4527_v27 }
 0x1c1   : > { %995 = vst.msk [vmem:[#allocation3 + $0xa0] sm:$0xff] %vm753_vm1, %v975_v17  ;;  %1029 = vst.msk [vmem:[#allocation4 + $0xa8] sm:$0xff] %vm753_vm1, %v1010_v21  ;;  %v4529_v32 = vpop.eup %4528 }
 0x1c2   : > { %1110 = vrot.lane.b32.xlu0 %v5228_v3, %s4899_s20  ;;  %774 = vrot.lane.b32.xlu1 %v5202_v61, %s4889_s19  ;;  %v4531_v3 = vpop.eup %4530  ;;  %s4900_s19 = smov 32   ;;  %v1264_v61 = vmul.f32 1.0986123, %v1248_v24  ;;  %v1256_v39 = vadd.f32 1e-05, %v4529_v32 }
 0x1c3   : > { %v4533_v42 = vpop.eup %4532  ;;  %v5455_v44 = vadd.f32 -1.0, %v4531_v3  ;;  %v1271_v47 = vmul.f32 1.0986123, %v1255_v37 }
 0x1c4   : > { %v1000_v29 = vpop.permute.xlu0 %999  ;;  %v1035_v33 = vpop.permute.xlu1 %1034  ;;  %v1285_v48 = vmul.f32 1.442695, %v1264_v61  ;;  %v1272_v49 = vmul.f32 1.0986123, %v1256_v39  ;;  %v5462_v51 = vadd.f32 -1.0, %v4533_v42 }
 0x1c5   : > { %1024 = vst.msk [vmem:[#allocation4 + $0x80] sm:$0xff] %vm753_vm1, %v1000_v29  ;;  %1058 = vst.msk [vmem:[#allocation2 + $0xc8] sm:$0xff] %vm753_vm1, %v1035_v33  ;;  %v4535_v45 = vpop.eup %4534  ;;  %v1299_v56 = vmul.f32 1.442695, %v1271_v47 }
 0x1c6   : > { %1343 = vrot.lane.b32.xlu0 %v5442_v30, %s4900_s19  ;;  %1345 = vrot.lane.b32.xlu1 %v5445_v34, %s4900_s19  ;;  %v4537_v52 = vpop.eup %4536  ;;  %v5465_v54 = vadd.f32 -1.0, %v4535_v45  ;;  %v1301_v57 = vmul.f32 1.442695, %v1272_v49  ;;  %4550 = vpow2.f32 %v1285_v48 }
 0x1c7   : > { %v4539_v55 = vpop.eup %4538  ;;  %v5472_v59 = vadd.f32 -1.0, %v4537_v52  ;;  %4552 = vpow2.f32 %v1299_v56 }
 0x1c8   : > { %v1008_v40 = vpop.permute.xlu0 %1007  ;;  %v1043_v43 = vpop.permute.xlu1 %1042  ;;  %v5475_v4 = vadd.f32 -1.0, %v4539_v55  ;;  %4554 = vpow2.f32 %v1301_v57 }
 0x1c9   : > { %1028 = vst.msk [vmem:[#allocation4 + $0xa0] sm:$0xff] %vm753_vm1, %v1008_v40  ;;  %1062 = vst.msk [vmem:[#allocation2 + $0xe8] sm:$0xff] %vm753_vm1, %v1043_v43  ;;  %v4541_v62 = vpop.eup %4540  ;;  %4556 = vrcp.f32 %v5442_v30 }
 0x1ca   : > { %1359 = vrot.lane.b32.xlu0 %v5452_v41, %s4900_s19  ;;  %1361 = vrot.lane.b32.xlu1 %v5455_v44, %s4900_s19  ;;  %v4543_v63 = vpop.eup %4542  ;;  %v5482_v6 = vadd.f32 -1.0, %v4541_v62  ;;  %4558 = vrcp.f32 %v5445_v34 }
 0x1cb   : > { %v4545_v7 = vpop.eup %4544  ;;  %v5485_v8 = vadd.f32 -1.0, %v4543_v63  ;;  %4560 = vrcp.f32 %v5452_v41 }
 0x1cc   : > { %v1033_v50 = vpop.permute.xlu0 %1032  ;;  %v1068_v53 = vpop.permute.xlu1 %1067  ;;  %v5492_v11 = vadd.f32 -1.0, %v4545_v7  ;;  %4562 = vrcp.f32 %v5455_v44 }
 0x1cd   : > { %1057 = vst.msk [vmem:[#allocation2 + $0xc0] sm:$0xff] %vm753_vm1, %v1033_v50  ;;  %1091 = vst.msk [vmem:[#allocation3 + $0xc8] sm:$0xff] %vm753_vm1, %v1068_v53  ;;  %v4547_v9 = vpop.eup %4546  ;;  %4564 = vrcp.f32 %v5462_v51 }
 0x1ce   : > { %1339 = vrot.lane.b32.xlu0 %v5462_v51, %s4900_s19  ;;  %1341 = vrot.lane.b32.xlu1 %v5465_v54, %s4900_s19  ;;  %v4549_v12 = vpop.eup %4548  ;;  %v5495_v13 = vadd.f32 -1.0, %v4547_v9  ;;  %4566 = vrcp.f32 %v5465_v54 }
 0x1cf   : > { %v5504_v16 = vadd.f32 -1.0, %v4549_v12  ;;  %4568 = vrcp.f32 %v5472_v59 }
 0x1d0   : > { %v1041_v58 = vpop.permute.xlu0 %1040  ;;  %v1076_v0 = vpop.permute.xlu1 %1075  ;;  %4570 = vrcp.f32 %v5475_v4 }
 0x1d1   : > { %1061 = vst.msk [vmem:[#allocation2 + $0xe0] sm:$0xff] %vm753_vm1, %v1041_v58  ;;  %1095 = vst.msk [vmem:[#allocation3 + $0xe8] sm:$0xff] %vm753_vm1, %v1076_v0  ;;  %v4551_v14 = vpop.eup %4550  ;;  %4572 = vrcp.f32 %v5482_v6 }
 0x1d2   : > { %1355 = vrot.lane.b32.xlu0 %v5472_v59, %s4900_s19  ;;  %1357 = vrot.lane.b32.xlu1 %v5475_v4, %s4900_s19  ;;  %v4553_v17 = vpop.eup %4552  ;;  %v5507_v19 = vadd.f32 -1.0, %v4551_v14  ;;  %4574 = vrcp.f32 %v5485_v8 }
 0x1d3   : > { %v4555_v20 = vpop.eup %4554  ;;  %v5516_v22 = vadd.f32 -1.0, %v4553_v17  ;;  %4576 = vrcp.f32 %v5492_v11 }
 0x1d4   : > { %v1066_v5 = vpop.permute.xlu0 %1065  ;;  %v1101_v1 = vpop.permute.xlu1 %1100  ;;  %v5519_v24 = vadd.f32 -1.0, %v4555_v20  ;;  %4578 = vrcp.f32 %v5495_v13 }
 0x1d5   : > { %1090 = vst.msk [vmem:[#allocation3 + $0xc0] sm:$0xff] %vm753_vm1, %v1066_v5  ;;  %1124 = vst.msk [vmem:[#allocation4 + $0xc8] sm:$0xff] %vm753_vm1, %v1101_v1  ;;  %v5526_v25 = vpop.eup %4556  ;;  %4580 = vrcp.f32 %v5504_v16 }
 0x1d6   : > { %1351 = vrot.lane.b32.xlu0 %v5482_v6, %s4900_s19  ;;  %1353 = vrot.lane.b32.xlu1 %v5485_v8, %s4900_s19  ;;  %v5529_v27 = vpop.eup %4558  ;;  %4582 = vrcp.f32 %v5507_v19 }
 0x1d7   : > { %v5536_v29 = vpop.eup %4560  ;;  %4584 = vrcp.f32 %v5516_v22 }
 0x1d8   : > { %v1074_v10 = vpop.permute.xlu0 %1073  ;;  %v1109_v60 = vpop.permute.xlu1 %1108  ;;  %4586 = vrcp.f32 %v5519_v24 }
 0x1d9   : > { %1094 = vst.msk [vmem:[#allocation3 + $0xe0] sm:$0xff] %vm753_vm1, %v1074_v10  ;;  %1128 = vst.msk [vmem:[#allocation4 + $0xe8] sm:$0xff] %vm753_vm1, %v1109_v60  ;;  %v5539_v31 = vpop.eup %4562 }
 0x1da   : > { %1367 = vrot.lane.b32.xlu0 %v5492_v11, %s4900_s19  ;;  %1369 = vrot.lane.b32.xlu1 %v5495_v13, %s4900_s19  ;;  %v5574_v39 = vpop.eup %4564 }
 0x1db   : > { %v5577_v41 = vpop.eup %4566 }
 0x1dc   : > { %v1099_v15 = vpop.permute.xlu0 %1098  ;;  %v777_v18 = vpop.permute.xlu1 %776 }
 0x1dd   : > { %1123 = vst.msk [vmem:[#allocation4 + $0xc0] sm:$0xff] %vm753_vm1, %v1099_v15  ;;  %797 = vst.msk [vmem:[#allocation3 + $0x18] sm:$0xff] %vm753_vm1, %v777_v18  ;;  %v5584_v43 = vpop.eup %4568 }
 0x1de   : > { %1347 = vrot.lane.b32.xlu0 %v5504_v16, %s4900_s19  ;;  %1349 = vrot.lane.b32.xlu1 %v5507_v19, %s4900_s19  ;;  %v5587_v45 = vpop.eup %4570 }
 0x1df   : > { %v5622_v55 = vpop.eup %4572 }
 0x1e0   : > { %v1107_v21 = vpop.permute.xlu0 %1106  ;;  %v785_v23 = vpop.permute.xlu1 %784 }
 0x1e1   : > { %1127 = vst.msk [vmem:[#allocation4 + $0xe0] sm:$0xff] %vm753_vm1, %v1107_v21  ;;  %801 = vst.msk [vmem:[#allocation3 + $0x38] sm:$0xff] %vm753_vm1, %v785_v23  ;;  %v5625_v57 = vpop.eup %4574 }
 0x1e2   : > { %1363 = vrot.lane.b32.xlu0 %v5516_v22, %s4900_s19  ;;  %1365 = vrot.lane.b32.xlu1 %v5519_v24, %s4900_s19  ;;  %v5632_v59 = vpop.eup %4576 }
 0x1e3   : > { %v5635_v0 = vpop.eup %4578 }
 0x1e4   : > { %v783_v2 = vpop.permute.xlu0 %782  ;;  %v809_v26 = vpop.permute.xlu1 %808 }
 0x1e5   : > { %800 = vst.msk [vmem:[#allocation3 + $0x30] sm:$0xff] %vm753_vm1, %v783_v2  ;;  %829 = vst.msk [vmem:[#allocation4 + $0x18] sm:$0xff] %vm753_vm1, %v809_v26  ;;  %v5664_v9 = vpop.eup %4580 }
 0x1e6   : > { %1440 = vrot.lane.b32.xlu0 %v5526_v25, %s4900_s19  ;;  %1442 = vrot.lane.b32.xlu1 %v5529_v27, %s4900_s19  ;;  %v4583_v11 = vpop.eup %4582 }
 0x1e7   : > { %v5671_v60 = vpop.eup %4584 }
 0x1e8   : > { %v807_v28 = vpop.permute.xlu0 %806  ;;  %v817_v30 = vpop.permute.xlu1 %816 }
 0x1e9   : > { %828 = vst.msk [vmem:[#allocation4 + $0x10] sm:$0xff] %vm753_vm1, %v807_v28  ;;  %833 = vst.msk [vmem:[#allocation4 + $0x38] sm:$0xff] %vm753_vm1, %v817_v30  ;;  %v5674_v14 = vpop.eup %4586 }
 0x1ea   : > { %1456 = vrot.lane.b32.xlu0 %v5536_v29, %s4900_s19  ;;  %1458 = vrot.lane.b32.xlu1 %v5539_v31, %s4900_s19 }
 0x1ec   : > { %v815_v32 = vpop.permute.xlu0 %814  ;;  %v841_v33 = vpop.permute.xlu1 %840 }
 0x1ed   : > { %832 = vst.msk [vmem:[#allocation4 + $0x30] sm:$0xff] %vm753_vm1, %v815_v32  ;;  %862 = vst.msk [vmem:[#allocation2 + $0x58] sm:$0xff] %vm753_vm1, %v841_v33  ;;  %v1696_v32 = vlaneseq }
 0x1ee   : > { %1505 = vrot.lane.b32.xlu0 %v5526_v25, %s4901_s14  ;;  %1507 = vrot.lane.b32.xlu1 %v5529_v27, %s4901_s14 }
 0x1f0   : > { %v839_v34 = vpop.permute.xlu0 %838  ;;  %v849_v3 = vpop.permute.xlu1 %848 }
 0x1f1   : > { %861 = vst.msk [vmem:[#allocation2 + $0x50] sm:$0xff] %vm753_vm1, %v839_v34  ;;  %866 = vst.msk [vmem:[#allocation2 + $0x78] sm:$0xff] %vm753_vm1, %v849_v3  ;;  %v1697_v34 = vshrl.u32 %v1696_v32, 7 }
 0x1f2   : > { %1521 = vrot.lane.b32.xlu0 %v5536_v29, %s4901_s14  ;;  %1523 = vrot.lane.b32.xlu1 %v5539_v31, %s4901_s14 }
 0x1f4   : > { %v847_v35 = vpop.permute.xlu0 %846  ;;  %v874_v61 = vpop.permute.xlu1 %873 }
 0x1f5   : > { %865 = vst.msk [vmem:[#allocation2 + $0x70] sm:$0xff] %vm753_vm1, %v847_v35  ;;  %895 = vst.msk [vmem:[#allocation3 + $0x58] sm:$0xff] %vm753_vm1, %v874_v61  ;;  %v1698_v61 = vadd.s32 8, %v1697_v34 }
 0x1f6   : > { %1570 = vrot.lane.b32.xlu0 %v5526_v25, %s4902_s29  ;;  %1572 = vrot.lane.b32.xlu1 %v5529_v27, %s4902_s29 }
 0x1f8   : > { %v872_v36 = vpop.permute.xlu0 %871  ;;  %v882_v37 = vpop.permute.xlu1 %881 }
 0x1f9   : > { %894 = vst.msk [vmem:[#allocation3 + $0x50] sm:$0xff] %vm753_vm1, %v872_v36  ;;  %899 = vst.msk [vmem:[#allocation3 + $0x78] sm:$0xff] %vm753_vm1, %v882_v37  ;;  %v1700_v36 = vadd.s32 24, %v1697_v34 }
 0x1fa   : > { %1586 = vrot.lane.b32.xlu0 %v5536_v29, %s4902_s29  ;;  %1588 = vrot.lane.b32.xlu1 %v5539_v31, %s4902_s29 }
 0x1fc   : > { %v880_v38 = vpop.permute.xlu0 %879  ;;  %v907_v40 = vpop.permute.xlu1 %906 }
 0x1fd   : > { %898 = vst.msk [vmem:[#allocation3 + $0x70] sm:$0xff] %vm753_vm1, %v880_v38  ;;  %928 = vst.msk [vmem:[#allocation4 + $0x58] sm:$0xff] %vm753_vm1, %v907_v40  ;;  %v1702_v38 = vadd.s32 40, %v1697_v34  ;;  %v1704_v40 = vadd.s32 56, %v1697_v34 }
 0x1fe   : > { %1436 = vrot.lane.b32.xlu0 %v5574_v39, %s4900_s19  ;;  %1438 = vrot.lane.b32.xlu1 %v5577_v41, %s4900_s19 }
 0x200   : > { %v905_v42 = vpop.permute.xlu0 %904  ;;  %v915_v44 = vpop.permute.xlu1 %914 }
 0x201   : > { %927 = vst.msk [vmem:[#allocation4 + $0x50] sm:$0xff] %vm753_vm1, %v905_v42  ;;  %932 = vst.msk [vmem:[#allocation4 + $0x78] sm:$0xff] %vm753_vm1, %v915_v44  ;;  %v1706_v42 = vadd.s32 72, %v1697_v34  ;;  %v1707_v44 = vadd.s32 80, %v1697_v34 }
 0x202   : > { %1452 = vrot.lane.b32.xlu0 %v5584_v43, %s4900_s19  ;;  %1454 = vrot.lane.b32.xlu1 %v5587_v45, %s4900_s19 }
 0x204   : > { %v913_v46 = vpop.permute.xlu0 %912  ;;  %v940_v47 = vpop.permute.xlu1 %939 }
 0x205   : > { %931 = vst.msk [vmem:[#allocation4 + $0x70] sm:$0xff] %vm753_vm1, %v913_v46  ;;  %961 = vst.msk [vmem:[#allocation2 + $0x98] sm:$0xff] %vm753_vm1, %v940_v47  ;;  %v1708_v46 = vadd.s32 88, %v1697_v34  ;;  %v1709_v47 = vadd.s32 96, %v1697_v34 }
 0x206   : > { %1501 = vrot.lane.b32.xlu0 %v5574_v39, %s4901_s14  ;;  %1503 = vrot.lane.b32.xlu1 %v5577_v41, %s4901_s14 }
 0x208   : > { %v938_v48 = vpop.permute.xlu0 %937  ;;  %v948_v49 = vpop.permute.xlu1 %947 }
 0x209   : > { %960 = vst.msk [vmem:[#allocation2 + $0x90] sm:$0xff] %vm753_vm1, %v938_v48  ;;  %965 = vst.msk [vmem:[#allocation2 + $0xb8] sm:$0xff] %vm753_vm1, %v948_v49  ;;  %v1710_v48 = vadd.s32 104, %v1697_v34  ;;  %v1711_v49 = vadd.s32 112, %v1697_v34 }
 0x20a   : > { %1517 = vrot.lane.b32.xlu0 %v5584_v43, %s4901_s14  ;;  %1519 = vrot.lane.b32.xlu1 %v5587_v45, %s4901_s14 }
 0x20c   : > { %v946_v50 = vpop.permute.xlu0 %945  ;;  %v973_v51 = vpop.permute.xlu1 %972 }
 0x20d   : > { %964 = vst.msk [vmem:[#allocation2 + $0xb0] sm:$0xff] %vm753_vm1, %v946_v50  ;;  %994 = vst.msk [vmem:[#allocation3 + $0x98] sm:$0xff] %vm753_vm1, %v973_v51  ;;  %v1712_v50 = vadd.s32 120, %v1697_v34 }
 0x20e   : > { %1566 = vrot.lane.b32.xlu0 %v5574_v39, %s4902_s29  ;;  %1568 = vrot.lane.b32.xlu1 %v5577_v41, %s4902_s29 }
 0x210   : > { %v971_v52 = vpop.permute.xlu0 %970  ;;  %v981_v53 = vpop.permute.xlu1 %980 }
 0x211   : > { %993 = vst.msk [vmem:[#allocation3 + $0x90] sm:$0xff] %vm753_vm1, %v971_v52  ;;  %998 = vst.msk [vmem:[#allocation3 + $0xb8] sm:$0xff] %vm753_vm1, %v981_v53  ;;  %v1713_v52 = vcvt.s32.f32 %v1697_v34  ;;  %v1714_v53 = vcvt.s32.f32 %v1698_v61 }
 0x212   : > { %1582 = vrot.lane.b32.xlu0 %v5584_v43, %s4902_s29  ;;  %1584 = vrot.lane.b32.xlu1 %v5587_v45, %s4902_s29 }
 0x214   : > { %v979_v54 = vpop.permute.xlu0 %978  ;;  %v1006_v56 = vpop.permute.xlu1 %1005 }
 0x215   : > { %997 = vst.msk [vmem:[#allocation3 + $0xb0] sm:$0xff] %vm753_vm1, %v979_v54  ;;  %1027 = vst.msk [vmem:[#allocation4 + $0x98] sm:$0xff] %vm753_vm1, %v1006_v56  ;;  %v1730_v56 = vand.u32 127, %v1696_v32 }
 0x216   : > { %1448 = vrot.lane.b32.xlu0 %v5622_v55, %s4900_s19  ;;  %1450 = vrot.lane.b32.xlu1 %v5625_v57, %s4900_s19 }
 0x218   : > { %v1004_v58 = vpop.permute.xlu0 %1003  ;;  %v1014_v62 = vpop.permute.xlu1 %1013 }
 0x219   : > { %1026 = vst.msk [vmem:[#allocation4 + $0x90] sm:$0xff] %vm753_vm1, %v1004_v58  ;;  %1031 = vst.msk [vmem:[#allocation4 + $0xb8] sm:$0xff] %vm753_vm1, %v1014_v62 }
 0x21a   : > { %1464 = vrot.lane.b32.xlu0 %v5632_v59, %s4900_s19  ;;  %1466 = vrot.lane.b32.xlu1 %v5635_v0, %s4900_s19 }
 0x21c   : > { %v1012_v4 = vpop.permute.xlu0 %1011  ;;  %v1039_v63 = vpop.permute.xlu1 %1038 }
 0x21d   : > { %1030 = vst.msk [vmem:[#allocation4 + $0xb0] sm:$0xff] %vm753_vm1, %v1012_v4  ;;  %1060 = vst.msk [vmem:[#allocation2 + $0xd8] sm:$0xff] %vm753_vm1, %v1039_v63  ;;  %v1718_v4 = vcvt.s32.f32 %v1702_v38 }
 0x21e   : > { %1513 = vrot.lane.b32.xlu0 %v5622_v55, %s4901_s14  ;;  %1515 = vrot.lane.b32.xlu1 %v5625_v57, %s4901_s14 }
 0x220   : > { %v1037_v5 = vpop.permute.xlu0 %1036  ;;  %v1047_v6 = vpop.permute.xlu1 %1046 }
 0x221   : > { %1059 = vst.msk [vmem:[#allocation2 + $0xd0] sm:$0xff] %vm753_vm1, %v1037_v5  ;;  %1064 = vst.msk [vmem:[#allocation2 + $0xf8] sm:$0xff] %vm753_vm1, %v1047_v6  ;;  %v1722_v6 = vcvt.s32.f32 %v1706_v42 }
 0x222   : > { %1529 = vrot.lane.b32.xlu0 %v5632_v59, %s4901_s14  ;;  %1531 = vrot.lane.b32.xlu1 %v5635_v0, %s4901_s14 }
 0x224   : > { %v1045_v7 = vpop.permute.xlu0 %1044  ;;  %v1072_v1 = vpop.permute.xlu1 %1071 }
 0x225   : > { %1063 = vst.msk [vmem:[#allocation2 + $0xf0] sm:$0xff] %vm753_vm1, %v1045_v7  ;;  %1093 = vst.msk [vmem:[#allocation3 + $0xd8] sm:$0xff] %vm753_vm1, %v1072_v1  ;;  %v1731_v7 = vcvt.s32.f32 %v1730_v56  ;;  %v1723_v1 = vcvt.s32.f32 %v1707_v44 }
 0x226   : > { %1578 = vrot.lane.b32.xlu0 %v5622_v55, %s4902_s29  ;;  %1580 = vrot.lane.b32.xlu1 %v5625_v57, %s4902_s29 }
 0x228   : > { %v1070_v8 = vpop.permute.xlu0 %1069  ;;  %v1080_v10 = vpop.permute.xlu1 %1079 }
 0x229   : > { %1092 = vst.msk [vmem:[#allocation3 + $0xd0] sm:$0xff] %vm753_vm1, %v1070_v8  ;;  %1097 = vst.msk [vmem:[#allocation3 + $0xf8] sm:$0xff] %vm753_vm1, %v1080_v10  ;;  %v1724_v8 = vcvt.s32.f32 %v1708_v46  ;;  %v1726_v10 = vcvt.s32.f32 %v1710_v48 }
 0x22a   : > { %1444 = vrot.lane.b32.xlu0 %v5664_v9, %s4900_s19  ;;  %1446 = vrot.lane.b32.xlu1 %v4583_v11, %s4900_s19 }
 0x22c   : > { %v1078_v12 = vpop.permute.xlu0 %1077  ;;  %v1105_v13 = vpop.permute.xlu1 %1104 }
 0x22d   : > { %1096 = vst.msk [vmem:[#allocation3 + $0xf0] sm:$0xff] %vm753_vm1, %v1078_v12  ;;  %1126 = vst.msk [vmem:[#allocation4 + $0xd8] sm:$0xff] %vm753_vm1, %v1105_v13  ;;  %v1727_v12 = vcvt.s32.f32 %v1711_v49  ;;  %v1732_v13 = vsub.f32 %v1713_v52, %v1731_v7 }
 0x22e   : > { %1460 = vrot.lane.b32.xlu0 %v5671_v60, %s4900_s19  ;;  %1462 = vrot.lane.b32.xlu1 %v5674_v14, %s4900_s19 }
 0x22f   : > { %v1746_v32 = vsub.f32 %v1727_v12, %v1731_v7 }
 0x230   : > { %v1103_v15 = vpop.permute.xlu0 %1102  ;;  %v1113_v16 = vpop.permute.xlu1 %1112 }
 0x231   : > { %1125 = vst.msk [vmem:[#allocation4 + $0xd0] sm:$0xff] %vm753_vm1, %v1103_v15  ;;  %1130 = vst.msk [vmem:[#allocation4 + $0xf8] sm:$0xff] %vm753_vm1, %v1113_v16  ;;  %v1733_v15 = vsub.f32 %v1714_v53, %v1731_v7  ;;  %v1762_v48 = vand.u32 2147483647, %v1746_v32 }
 0x232   : > { %1509 = vrot.lane.b32.xlu0 %v5664_v9, %s4901_s14  ;;  %1511 = vrot.lane.b32.xlu1 %v4583_v11, %s4901_s14 }
 0x234   : > { %v1111_v17 = vpop.permute.xlu0 %1110  ;;  %v775_v18 = vpop.permute.xlu1 %774 }
 0x235   : > { %1129 = vst.msk [vmem:[#allocation4 + $0xf0] sm:$0xff] %vm753_vm1, %v1111_v17  ;;  %796 = vst.msk [vmem:[#allocation3 + $0x10] sm:$0xff] %vm753_vm1, %v775_v18 }
 0x236   : > { %1525 = vrot.lane.b32.xlu0 %v5671_v60, %s4901_s14  ;;  %1527 = vrot.lane.b32.xlu1 %v5674_v14, %s4901_s14 }
 0x238   : > { %v1344_v19 = vpop.permute.xlu0 %1343  ;;  %v1346_v20 = vpop.permute.xlu1 %1345 }
 0x239   : > { %1390 = vst.msk [vmem:[%s5084_s23 + $0x10] sm:$0xff] %vm1387_vm2, %v1344_v19  ;;  %1391 = vst.msk [vmem:[%s5084_s23 + $0x18] sm:$0xff] %vm1387_vm2, %v1346_v20  ;;  %v1737_v20 = vsub.f32 %v1718_v4, %v1731_v7 }
 0x23a   : > { %1574 = vrot.lane.b32.xlu0 %v5664_v9, %s4902_s29  ;;  %1576 = vrot.lane.b32.xlu1 %v4583_v11, %s4902_s29 }
 0x23c   : > { %v1360_v21 = vpop.permute.xlu0 %1359  ;;  %v1362_v22 = vpop.permute.xlu1 %1361 }
 0x23d   : > { %1398 = vst.msk [vmem:[%s5084_s23 + $0x50] sm:$0xff] %vm1387_vm2, %v1360_v21  ;;  %1399 = vst.msk [vmem:[%s5084_s23 + $0x58] sm:$0xff] %vm1387_vm2, %v1362_v22 }
 0x23e   : > { %1590 = vrot.lane.b32.xlu0 %v5671_v60, %s4902_s29  ;;  %1592 = vrot.lane.b32.xlu1 %v5674_v14, %s4902_s29 }
 0x240   : > { %v1340_v23 = vpop.permute.xlu0 %1339  ;;  %v1342_v24 = vpop.permute.xlu1 %1341 }
 0x241   : > { %1388 = vst.msk [vmem:[%s5084_s23] sm:$0xff] %vm1387_vm2, %v1340_v23  ;;  %1389 = vst.msk [vmem:[%s5084_s23 + $0x8] sm:$0xff] %vm1387_vm2, %v1342_v24  ;;  %v1741_v23 = vsub.f32 %v1722_v6, %v1731_v7  ;;  %v1742_v24 = vsub.f32 %v1723_v1, %v1731_v7 }
 0x242   : > { %1594 = vrot.lane.b32.xlu0 %v5632_v59, %s4902_s29  ;;  %1596 = vrot.lane.b32.xlu1 %v5635_v0, %s4902_s29 }
 0x244   : > { %v1356_v2 = vpop.permute.xlu0 %1355  ;;  %v1358_v26 = vpop.permute.xlu1 %1357 }
 0x245   : > { %1396 = vst.msk [vmem:[%s5084_s23 + $0x40] sm:$0xff] %vm1387_vm2, %v1356_v2  ;;  %1397 = vst.msk [vmem:[%s5084_s23 + $0x48] sm:$0xff] %vm1387_vm2, %v1358_v26  ;;  %v1743_v2 = vsub.f32 %v1724_v8, %v1731_v7 }
 0x246   : > { %1631 = vrot.lane.b32.xlu0 %v5574_v39, %s4903_s21  ;;  %1633 = vrot.lane.b32.xlu1 %v5577_v41, %s4903_s21  ;;  %v1703_v39 = vadd.s32 48, %v1697_v34  ;;  %v1705_v41 = vadd.s32 64, %v1697_v34 }
 0x248   : > { %v1352_v28 = vpop.permute.xlu0 %1351  ;;  %v1354_v30 = vpop.permute.xlu1 %1353  ;;  %v1719_v63 = vcvt.s32.f32 %v1703_v39  ;;  %v1721_v5 = vcvt.s32.f32 %v1705_v41  ;;  %v1757_v39 = vand.u32 2147483647, %v1741_v23  ;;  %v1759_v41 = vand.u32 2147483647, %v1743_v2 }
 0x249   : > { %1394 = vst.msk [vmem:[%s5084_s23 + $0x30] sm:$0xff] %vm1387_vm2, %v1352_v28  ;;  %1395 = vst.msk [vmem:[%s5084_s23 + $0x38] sm:$0xff] %vm1387_vm2, %v1354_v30  ;;  %v1745_v28 = vsub.f32 %v1726_v10, %v1731_v7 }
 0x24a   : > { %1635 = vrot.lane.b32.xlu0 %v5526_v25, %s4903_s21  ;;  %1637 = vrot.lane.b32.xlu1 %v5529_v27, %s4903_s21  ;;  %v1699_v25 = vadd.s32 16, %v1697_v34  ;;  %v1701_v27 = vadd.s32 32, %v1697_v34  ;;  %v1740_v22 = vsub.f32 %v1721_v5, %v1731_v7  ;;  %v1749_v34 = vand.u32 2147483647, %v1733_v15 }
 0x24b   : > { %v1778_v5 = vmul.f32 %v1762_v48, %v1762_v48 }
 0x24c   : > { %v1368_v33 = vpop.permute.xlu0 %1367  ;;  %v1370_v3 = vpop.permute.xlu1 %1369  ;;  %v1715_v54 = vcvt.s32.f32 %v1699_v25  ;;  %v1717_v62 = vcvt.s32.f32 %v1701_v27  ;;  %v1756_v27 = vand.u32 2147483647, %v1740_v22  ;;  %v1765_v42 = vmul.f32 %v1749_v34, %v1749_v34 }
 0x24d   : > { %1402 = vst.msk [vmem:[%s5084_s23 + $0x70] sm:$0xff] %vm1387_vm2, %v1368_v33  ;;  %1403 = vst.msk [vmem:[%s5084_s23 + $0x78] sm:$0xff] %vm1387_vm2, %v1370_v3  ;;  %v1748_v33 = vand.u32 2147483647, %v1732_v13 }
 0x24e   : > { %1639 = vrot.lane.b32.xlu0 %v5664_v9, %s4903_s21  ;;  %1641 = vrot.lane.b32.xlu1 %v4583_v11, %s4903_s21  ;;  %v1725_v9 = vcvt.s32.f32 %v1709_v47  ;;  %v1734_v16 = vsub.f32 %v1715_v54, %v1731_v7  ;;  %v1736_v19 = vsub.f32 %v1717_v62, %v1731_v7  ;;  %v1761_v47 = vand.u32 2147483647, %v1745_v28 }
 0x24f   : > { %v1764_v38 = vmul.f32 %v1748_v33, %v1748_v33  ;;  %v1772_v56 = vmul.f32 %v1756_v27, %v1756_v27  ;;  %v1775_v62 = vmul.f32 %v1759_v41, %v1759_v41  ;;  %v1781_v1 = vmul.f32 -0.5, %v1765_v42 }
 0x250   : > { %v1348_v35 = vpop.permute.xlu0 %1347  ;;  %v1350_v37 = vpop.permute.xlu1 %1349  ;;  %v1744_v26 = vsub.f32 %v1725_v9, %v1731_v7  ;;  %v1750_v3 = vand.u32 2147483647, %v1734_v16  ;;  %v1752_v25 = vand.u32 2147483647, %v1736_v19 }
 0x251   : > { %1392 = vst.msk [vmem:[%s5084_s23 + $0x20] sm:$0xff] %vm1387_vm2, %v1348_v35  ;;  %1393 = vst.msk [vmem:[%s5084_s23 + $0x28] sm:$0xff] %vm1387_vm2, %v1350_v37  ;;  %v1788_v13 = vmul.f32 -0.5, %v1772_v56 }
 0x252   : > { %1643 = vrot.lane.b32.xlu0 %v5622_v55, %s4903_s21  ;;  %1645 = vrot.lane.b32.xlu1 %v5625_v57, %s4903_s21  ;;  %v1716_v55 = vcvt.s32.f32 %v1700_v36  ;;  %v1720_v57 = vcvt.s32.f32 %v1704_v40  ;;  %v1753_v36 = vand.u32 2147483647, %v1737_v20  ;;  %v1758_v40 = vand.u32 2147483647, %v1742_v24  ;;  %1797 = vst [vmem:[#allocation6 + $0x8] sm:$0xff] %v1781_v1 }
 0x253   : > { %v1760_v46 = vand.u32 2147483647, %v1744_v26  ;;  %v1766_v49 = vmul.f32 %v1750_v3, %v1750_v3  ;;  %v1768_v52 = vmul.f32 %v1752_v25, %v1752_v25  ;;  %v1794_v20 = vmul.f32 -0.5, %v1778_v5  ;;  %1804 = vst [vmem:[#allocation6 + $0x40] sm:$0xff] %v1788_v13 }
 0x254   : > { %v1364_v51 = vpop.permute.xlu0 %1363  ;;  %v1366_v58 = vpop.permute.xlu1 %1365  ;;  %v1735_v18 = vsub.f32 %v1716_v55, %v1731_v7  ;;  %v1739_v21 = vsub.f32 %v1720_v57, %v1731_v7  ;;  %v1769_v53 = vmul.f32 %v1753_v36, %v1753_v36  ;;  %v1774_v55 = vmul.f32 %v1758_v40, %v1758_v40 }
 0x255   : > { %1400 = vst.msk [vmem:[%s5084_s23 + $0x60] sm:$0xff] %vm1387_vm2, %v1364_v51  ;;  %1401 = vst.msk [vmem:[%s5084_s23 + $0x68] sm:$0xff] %vm1387_vm2, %v1366_v58  ;;  %v1773_v58 = vmul.f32 %v1757_v39, %v1757_v39  ;;  %v1776_v4 = vmul.f32 %v1760_v46, %v1760_v46  ;;  %v1784_v10 = vmul.f32 -0.5, %v1768_v52 }
 0x256   : > { %1647 = vrot.lane.b32.xlu0 %v5584_v43, %s4903_s21  ;;  %1649 = vrot.lane.b32.xlu1 %v5587_v45, %s4903_s21  ;;  %v1728_v43 = vcvt.s32.f32 %v1712_v50  ;;  %v1738_v45 = vsub.f32 %v1719_v63, %v1731_v7  ;;  %v1751_v61 = vand.u32 2147483647, %v1735_v18  ;;  %v1755_v37 = vand.u32 2147483647, %v1739_v21  ;;  %1810 = vst [vmem:[#allocation6 + $0x70] sm:$0xff] %v1794_v20 }
 0x257   : > { %v1777_v63 = vmul.f32 %v1761_v47, %v1761_v47  ;;  %v1789_v15 = vmul.f32 -0.5, %v1773_v58  ;;  %v1790_v16 = vmul.f32 -0.5, %v1774_v55  ;;  %1800 = vst [vmem:[#allocation6 + $0x20] sm:$0xff] %v1784_v10 }
 0x258   : > { %v1441_v11 = vpop.permute.xlu0 %1440  ;;  %v1443_v17 = vpop.permute.xlu1 %1442  ;;  %v1767_v51 = vmul.f32 %v1751_v61, %v1751_v61  ;;  %v1771_v54 = vmul.f32 %v1755_v37, %v1755_v37 }
 0x259   : > { %1487 = vst.msk [vmem:[#allocation5 + $0x10] sm:$0xff] %vm1484_vm3, %v1441_v11  ;;  %1488 = vst.msk [vmem:[#allocation5 + $0x18] sm:$0xff] %vm1484_vm3, %v1443_v17  ;;  %v1785_v11 = vmul.f32 -0.5, %v1769_v53  ;;  %v1791_v17 = vmul.f32 -0.5, %v1775_v62  ;;  %v1793_v18 = vmul.f32 -0.5, %v1777_v63 }
 0x25a   : > { %1651 = vrot.lane.b32.xlu0 %v5536_v29, %s4903_s21  ;;  %1653 = vrot.lane.b32.xlu1 %v5539_v31, %s4903_s21  ;;  %v1747_v29 = vsub.f32 %v1728_v43, %v1731_v7  ;;  %v1754_v31 = vand.u32 2147483647, %v1738_v45  ;;  %v1780_v7 = vmul.f32 -0.5, %v1764_v38  ;;  %v1783_v9 = vmul.f32 -0.5, %v1767_v51  ;;  %1805 = vst [vmem:[#allocation6 + $0x48] sm:$0xff] %v1789_v15  ;;  %1806 = vst [vmem:[#allocation6 + $0x50] sm:$0xff] %v1790_v16 }
 0x25b   : > { %v1792_v43 = vmul.f32 -0.5, %v1776_v4  ;;  %1801 = vst [vmem:[#allocation6 + $0x28] sm:$0xff] %v1785_v11  ;;  %1807 = vst [vmem:[#allocation6 + $0x58] sm:$0xff] %v1791_v17 }
 0x25c   : > { %v1457_v30 = vpop.permute.xlu0 %1456  ;;  %v1459_v35 = vpop.permute.xlu1 %1458  ;;  %1796 = vst [vmem:[#allocation6] sm:$0xff] %v1780_v7  ;;  %1799 = vst [vmem:[#allocation6 + $0x18] sm:$0xff] %v1783_v9 }
 0x25d   : > { %1495 = vst.msk [vmem:[#allocation5 + $0x50] sm:$0xff] %vm1484_vm3, %v1457_v30  ;;  %1496 = vst.msk [vmem:[#allocation5 + $0x58] sm:$0xff] %vm1484_vm3, %v1459_v35 }
 0x25e   : > { %1655 = vrot.lane.b32.xlu0 %v5671_v60, %s4903_s21  ;;  %1657 = vrot.lane.b32.xlu1 %v5674_v14, %s4903_s21  ;;  %v1763_v60 = vand.u32 2147483647, %v1747_v29  ;;  %v1770_v14 = vmul.f32 %v1754_v31, %v1754_v31  ;;  %1808 = vst [vmem:[#allocation6 + $0x60] sm:$0xff] %v1792_v43  ;;  %1809 = vst [vmem:[#allocation6 + $0x68] sm:$0xff] %v1793_v18 }
 0x260   : > { %v1506_v44 = vpop.permute.xlu0 %1505  ;;  %v1508_v50 = vpop.permute.xlu1 %1507  ;;  %v1779_v6 = vmul.f32 %v1763_v60, %v1763_v60  ;;  %v1786_v12 = vmul.f32 -0.5, %v1770_v14 }
 0x261   : > { %1552 = vst.msk [vmem:[#allocation5 + $0x90] sm:$0xff] %vm1484_vm3, %v1506_v44  ;;  %1553 = vst.msk [vmem:[#allocation5 + $0x98] sm:$0xff] %vm1484_vm3, %v1508_v50 }
 0x262   : > { %1659 = vrot.lane.b32.xlu0 %v5632_v59, %s4903_s21  ;;  %1661 = vrot.lane.b32.xlu1 %v5635_v0, %s4903_s21  ;;  %v1782_v59 = vmul.f32 -0.5, %v1766_v49  ;;  %v1787_v0 = vmul.f32 -0.5, %v1771_v54  ;;  %v1795_v45 = vmul.f32 -0.5, %v1779_v6  ;;  %1802 = vst [vmem:[#allocation6 + $0x30] sm:$0xff] %v1786_v12 }
 0x264   : > { %v1522_v57 = vpop.permute.xlu0 %1521  ;;  %v1524_v8 = vpop.permute.xlu1 %1523  ;;  %1798 = vst [vmem:[#allocation6 + $0x10] sm:$0xff] %v1782_v59  ;;  %1803 = vst [vmem:[#allocation6 + $0x38] sm:$0xff] %v1787_v0 }
 0x265   : > { %1560 = vst.msk [vmem:[#allocation5 + $0xd0] sm:$0xff] %vm1484_vm3, %v1522_v57  ;;  %1561 = vst.msk [vmem:[#allocation5 + $0xd8] sm:$0xff] %vm1484_vm3, %v1524_v8 }
 0x266   : > { %1811 = vst [vmem:[#allocation6 + $0x78] sm:$0xff] %v1795_v45 }
 0x268   : > { %v1571_v19 = vpop.permute.xlu0 %1570  ;;  %v1573_v21 = vpop.permute.xlu1 %1572 }
 0x269   : > { %1617 = vst.msk [vmem:[#allocation5 + $0x110] sm:$0xff] %vm1484_vm3, %v1571_v19  ;;  %1618 = vst.msk [vmem:[#allocation5 + $0x118] sm:$0xff] %vm1484_vm3, %v1573_v21 }
 0x26c   : > { %v1587_v22 = vpop.permute.xlu0 %1586  ;;  %v1589_v23 = vpop.permute.xlu1 %1588 }
 0x26d   : > { %1625 = vst.msk [vmem:[#allocation5 + $0x150] sm:$0xff] %vm1484_vm3, %v1587_v22  ;;  %1626 = vst.msk [vmem:[#allocation5 + $0x158] sm:$0xff] %vm1484_vm3, %v1589_v23 }
 0x270   : > { %v1437_v24 = vpop.permute.xlu0 %1436  ;;  %v1439_v2 = vpop.permute.xlu1 %1438 }
 0x271   : > { %1485 = vst.msk [vmem:[#allocation5] sm:$0xff] %vm1484_vm3, %v1437_v24  ;;  %1486 = vst.msk [vmem:[#allocation5 + $0x8] sm:$0xff] %vm1484_vm3, %v1439_v2 }
 0x274   : > { %v1453_v26 = vpop.permute.xlu0 %1452  ;;  %v1455_v28 = vpop.permute.xlu1 %1454 }
 0x275   : > { %1493 = vst.msk [vmem:[#allocation5 + $0x40] sm:$0xff] %vm1484_vm3, %v1453_v26  ;;  %1494 = vst.msk [vmem:[#allocation5 + $0x48] sm:$0xff] %vm1484_vm3, %v1455_v28 }
 0x278   : > { %v1502_v30 = vpop.permute.xlu0 %1501  ;;  %v1504_v32 = vpop.permute.xlu1 %1503 }
 0x279   : > { %1550 = vst.msk [vmem:[#allocation5 + $0x80] sm:$0xff] %vm1484_vm3, %v1502_v30  ;;  %1551 = vst.msk [vmem:[#allocation5 + $0x88] sm:$0xff] %vm1484_vm3, %v1504_v32 }
 0x27c   : > { %v1518_v33 = vpop.permute.xlu0 %1517  ;;  %v1520_v34 = vpop.permute.xlu1 %1519 }
 0x27d   : > { %1558 = vst.msk [vmem:[#allocation5 + $0xc0] sm:$0xff] %vm1484_vm3, %v1518_v33  ;;  %1559 = vst.msk [vmem:[#allocation5 + $0xc8] sm:$0xff] %vm1484_vm3, %v1520_v34 }
 0x280   : > { %v1567_v3 = vpop.permute.xlu0 %1566  ;;  %v1569_v35 = vpop.permute.xlu1 %1568 }
 0x281   : > { %1615 = vst.msk [vmem:[#allocation5 + $0x100] sm:$0xff] %vm1484_vm3, %v1567_v3  ;;  %1616 = vst.msk [vmem:[#allocation5 + $0x108] sm:$0xff] %vm1484_vm3, %v1569_v35 }
 0x284   : > { %v1583_v29 = vpop.permute.xlu0 %1582  ;;  %v1585_v61 = vpop.permute.xlu1 %1584 }
 0x285   : > { %1623 = vst.msk [vmem:[#allocation5 + $0x140] sm:$0xff] %vm1484_vm3, %v1583_v29  ;;  %1624 = vst.msk [vmem:[#allocation5 + $0x148] sm:$0xff] %vm1484_vm3, %v1585_v61 }
 0x288   : > { %v1449_v25 = vpop.permute.xlu0 %1448  ;;  %v1451_v36 = vpop.permute.xlu1 %1450 }
 0x289   : > { %1491 = vst.msk [vmem:[#allocation5 + $0x30] sm:$0xff] %vm1484_vm3, %v1449_v25  ;;  %1492 = vst.msk [vmem:[#allocation5 + $0x38] sm:$0xff] %vm1484_vm3, %v1451_v36 }
 0x28c   : > { %v1465_v31 = vpop.permute.xlu0 %1464  ;;  %v1467_v37 = vpop.permute.xlu1 %1466 }
 0x28d   : > { %1499 = vst.msk [vmem:[#allocation5 + $0x70] sm:$0xff] %vm1484_vm3, %v1465_v31  ;;  %1500 = vst.msk [vmem:[#allocation5 + $0x78] sm:$0xff] %vm1484_vm3, %v1467_v37 }
 0x290   : > { %v1514_v27 = vpop.permute.xlu0 %1513  ;;  %v1516_v38 = vpop.permute.xlu1 %1515 }
 0x291   : > { %1556 = vst.msk [vmem:[#allocation5 + $0xb0] sm:$0xff] %vm1484_vm3, %v1514_v27  ;;  %1557 = vst.msk [vmem:[#allocation5 + $0xb8] sm:$0xff] %vm1484_vm3, %v1516_v38 }
 0x294   : > { %v1530_v39 = vpop.permute.xlu0 %1529  ;;  %v1532_v40 = vpop.permute.xlu1 %1531 }
 0x295   : > { %1564 = vst.msk [vmem:[#allocation5 + $0xf0] sm:$0xff] %vm1484_vm3, %v1530_v39  ;;  %1565 = vst.msk [vmem:[#allocation5 + $0xf8] sm:$0xff] %vm1484_vm3, %v1532_v40 }
 0x298   : > { %v1579_v41 = vpop.permute.xlu0 %1578  ;;  %v1581_v42 = vpop.permute.xlu1 %1580 }
 0x299   : > { %1621 = vst.msk [vmem:[#allocation5 + $0x130] sm:$0xff] %vm1484_vm3, %v1579_v41  ;;  %1622 = vst.msk [vmem:[#allocation5 + $0x138] sm:$0xff] %vm1484_vm3, %v1581_v42 }
 0x29c   : > { %v1445_v44 = vpop.permute.xlu0 %1444  ;;  %v1447_v46 = vpop.permute.xlu1 %1446 }
 0x29d   : > { %1489 = vst.msk [vmem:[#allocation5 + $0x20] sm:$0xff] %vm1484_vm3, %v1445_v44  ;;  %1490 = vst.msk [vmem:[#allocation5 + $0x28] sm:$0xff] %vm1484_vm3, %v1447_v46 }
 0x2a0   : > { %v1461_v47 = vpop.permute.xlu0 %1460  ;;  %v1463_v48 = vpop.permute.xlu1 %1462 }
 0x2a1   : > { %1497 = vst.msk [vmem:[#allocation5 + $0x60] sm:$0xff] %vm1484_vm3, %v1461_v47  ;;  %1498 = vst.msk [vmem:[#allocation5 + $0x68] sm:$0xff] %vm1484_vm3, %v1463_v48 }
 0x2a4   : > { %v1510_v49 = vpop.permute.xlu0 %1509  ;;  %v1512_v50 = vpop.permute.xlu1 %1511 }
 0x2a5   : > { %1554 = vst.msk [vmem:[#allocation5 + $0xa0] sm:$0xff] %vm1484_vm3, %v1510_v49  ;;  %1555 = vst.msk [vmem:[#allocation5 + $0xa8] sm:$0xff] %vm1484_vm3, %v1512_v50 }
 0x2a8   : > { %v1526_v60 = vpop.permute.xlu0 %1525  ;;  %v1528_v51 = vpop.permute.xlu1 %1527 }
 0x2a9   : > { %1562 = vst.msk [vmem:[#allocation5 + $0xe0] sm:$0xff] %vm1484_vm3, %v1526_v60  ;;  %1563 = vst.msk [vmem:[#allocation5 + $0xe8] sm:$0xff] %vm1484_vm3, %v1528_v51 }
 0x2ac   : > { %v1575_v52 = vpop.permute.xlu0 %1574  ;;  %v1577_v53 = vpop.permute.xlu1 %1576 }
 0x2ad   : > { %1619 = vst.msk [vmem:[#allocation5 + $0x120] sm:$0xff] %vm1484_vm3, %v1575_v52  ;;  %1620 = vst.msk [vmem:[#allocation5 + $0x128] sm:$0xff] %vm1484_vm3, %v1577_v53 }
 0x2b0   : > { %v1591_v14 = vpop.permute.xlu0 %1590  ;;  %v1593_v54 = vpop.permute.xlu1 %1592 }
 0x2b1   : > { %1627 = vst.msk [vmem:[#allocation5 + $0x160] sm:$0xff] %vm1484_vm3, %v1591_v14  ;;  %1628 = vst.msk [vmem:[#allocation5 + $0x168] sm:$0xff] %vm1484_vm3, %v1593_v54 }
 0x2b4   : > { %v1595_v56 = vpop.permute.xlu0 %1594  ;;  %v1597_v58 = vpop.permute.xlu1 %1596 }
 0x2b5   : > { %1629 = vst.msk [vmem:[#allocation5 + $0x170] sm:$0xff] %vm1484_vm3, %v1595_v56  ;;  %1630 = vst.msk [vmem:[#allocation5 + $0x178] sm:$0xff] %vm1484_vm3, %v1597_v58 }
 0x2b8   : > { %v1632_v55 = vpop.permute.xlu0 %1631  ;;  %v1634_v62 = vpop.permute.xlu1 %1633 }
 0x2b9   : > { %1680 = vst.msk [vmem:[#allocation5 + $0x180] sm:$0xff] %vm1484_vm3, %v1632_v55  ;;  %1681 = vst.msk [vmem:[#allocation5 + $0x188] sm:$0xff] %vm1484_vm3, %v1634_v62 }
 0x2bc   : > { %v1636_v4 = vpop.permute.xlu0 %1635  ;;  %v1638_v63 = vpop.permute.xlu1 %1637 }
 0x2bd   : > { %1682 = vst.msk [vmem:[#allocation5 + $0x190] sm:$0xff] %vm1484_vm3, %v1636_v4  ;;  %1683 = vst.msk [vmem:[#allocation5 + $0x198] sm:$0xff] %vm1484_vm3, %v1638_v63 }
 0x2c0   : > { %v1640_v57 = vpop.permute.xlu0 %1639  ;;  %v1642_v5 = vpop.permute.xlu1 %1641 }
 0x2c1   : > { %1684 = vst.msk [vmem:[#allocation5 + $0x1a0] sm:$0xff] %vm1484_vm3, %v1640_v57  ;;  %1685 = vst.msk [vmem:[#allocation5 + $0x1a8] sm:$0xff] %vm1484_vm3, %v1642_v5 }
 0x2c4   : > { %v1644_v6 = vpop.permute.xlu0 %1643  ;;  %v1646_v7 = vpop.permute.xlu1 %1645 }
 0x2c5   : > { %1686 = vst.msk [vmem:[#allocation5 + $0x1b0] sm:$0xff] %vm1484_vm3, %v1644_v6  ;;  %1687 = vst.msk [vmem:[#allocation5 + $0x1b8] sm:$0xff] %vm1484_vm3, %v1646_v7 }
 0x2c8   : > { %v1648_v1 = vpop.permute.xlu0 %1647  ;;  %v1650_v8 = vpop.permute.xlu1 %1649 }
 0x2c9   : > { %1688 = vst.msk [vmem:[#allocation5 + $0x1c0] sm:$0xff] %vm1484_vm3, %v1648_v1  ;;  %1689 = vst.msk [vmem:[#allocation5 + $0x1c8] sm:$0xff] %vm1484_vm3, %v1650_v8 }
 0x2cc   : > { %v1652_v59 = vpop.permute.xlu0 %1651  ;;  %v1654_v9 = vpop.permute.xlu1 %1653 }
 0x2cd   : > { %1690 = vst.msk [vmem:[#allocation5 + $0x1d0] sm:$0xff] %vm1484_vm3, %v1652_v59  ;;  %1691 = vst.msk [vmem:[#allocation5 + $0x1d8] sm:$0xff] %vm1484_vm3, %v1654_v9 }
 0x2d0   : > { %v1656_v10 = vpop.permute.xlu0 %1655  ;;  %v1658_v11 = vpop.permute.xlu1 %1657 }
 0x2d1   : > { %1692 = vst.msk [vmem:[#allocation5 + $0x1e0] sm:$0xff] %vm1484_vm3, %v1656_v10  ;;  %1693 = vst.msk [vmem:[#allocation5 + $0x1e8] sm:$0xff] %vm1484_vm3, %v1658_v11 }
 0x2d4   : > { %v1660_v12 = vpop.permute.xlu0 %1659  ;;  %v1662_v0 = vpop.permute.xlu1 %1661 }
 0x2d5   : > { %1694 = vst.msk [vmem:[#allocation5 + $0x1f0] sm:$0xff] %vm1484_vm3, %v1660_v12  ;;  %1695 = vst.msk [vmem:[#allocation5 + $0x1f8] sm:$0xff] %vm1484_vm3, %v1662_v0 }
 0x2d6 PF: > { %s5831_s23 = sshll.u32 %s4870_s24, 6  ;;  %vm1859_vm4 = vcmask 64512   ;;  %v2005_v25 = vlaneseq  ;;  %s4052_s26 = sshll.u32 %s4870_s24, 2  ;;  %vm2662_vm6 = vcmask 1043456   ;;  %vm2779_vm7 = vcmask 261120  }
 0x2d7   : > { %s5834_s28 = scalar_lea.vmem [#allocation3], %s5831_s23  ;;  %s5841_s17 = scalar_lea.vmem [#allocation2], %s5831_s23 }
 0x2d8   : > { %v1841_v13 = vld [vmem:[%s5834_s28] sm:$0xff]  ;;  %v1842_v15 = vld [vmem:[%s5834_s28 + $0x8] sm:$0xff]  ;;  %v1843_v18 = vld [vmem:[%s5834_s28 + $0x10] sm:$0xff]  ;;  %v2006_v36 = vand.u32 127, %v2005_v25  ;;  %s5932_s20 = scalar_lea.vmem [#allocation4], %s5831_s23  ;;  %s4051_s0 = sshll.u32 %s4870_s24, 7 }
 0x2d9   : > { %4354 = vmatprep.subr.msk.bf16.mxu0 %vm1859_vm4, %v1841_v13  ;;  %v1885_v16 = vsel %vm1859_vm4, %v1841_v13, 0  ;;  %v1831_v17 = vld [vmem:[%s5841_s17] sm:$0xff]  ;;  %v1888_v43 = vsel %vm1859_vm4, %v1842_v15, 0  ;;  %v1891_v19 = vsel %vm1859_vm4, %v1843_v18, 0  ;;  %v1844_v20 = vld [vmem:[%s5834_s28 + $0x18] sm:$0xff]  ;;  %v1846_v23 = vld [vmem:[%s5834_s28 + $0x28] sm:$0xff]  ;;  %s2636_s14 = scalar_lea.vmem %s6925_s3, %s4052_s26 }
 0x2da   : > { %4201 = vmatpush3.bf16.xpose.msra.mxu0 %v1885_v16  ;;  %4216 = vmatprep.mubr.msk.bf16.mxu0 %vm1859_vm4, %v1831_v17  ;;  %v1894_v45 = vsel %vm1859_vm4, %v1844_v20, 0  ;;  %v1845_v21 = vld [vmem:[%s5834_s28 + $0x20] sm:$0xff]  ;;  %v1900_v24 = vsel %vm1859_vm4, %v1846_v23, 0  ;;  %v1847_v2 = vld [vmem:[%s5834_s28 + $0x30] sm:$0xff]  ;;  %v1848_v28 = vld [vmem:[%s5834_s28 + $0x38] sm:$0xff]  ;;  %vm2007_vm5 = vcmp.lt.s32.totalorder %v2006_v36, 8 }
 0x2db   : > { %4355 = vmatprep.subr.msk.bf16.mxu0 %vm1859_vm4, %v1842_v15  ;;  %v1897_v22 = vsel %vm1859_vm4, %v1845_v21, 0  ;;  %v1903_v26 = vsel %vm1859_vm4, %v1847_v2, 0  ;;  %v1906_v30 = vsel %vm1859_vm4, %v1848_v28, 0  ;;  %v1832_v32 = vld [vmem:[%s5841_s17 + $0x8] sm:$0xff]  ;;  %v1833_v33 = vld [vmem:[%s5841_s17 + $0x10] sm:$0xff]  ;;  %v1834_v34 = vld [vmem:[%s5841_s17 + $0x18] sm:$0xff] }
 0x2dc   : > { %v1835_v3 = vld [vmem:[%s5841_s17 + $0x20] sm:$0xff]  ;;  %v1836_v35 = vld [vmem:[%s5841_s17 + $0x28] sm:$0xff]  ;;  %v1837_v29 = vld [vmem:[%s5841_s17 + $0x30] sm:$0xff]  ;;  %s6007_s29 = scalar_lea.vmem [#allocation5], %s4051_s0  ;;  %p4061_p0 = scmp.ne.s32.totalorder %s4870_s24, 3 }
 0x2dd   : > { %v1838_v61 = vld [vmem:[%s5841_s17 + $0x38] sm:$0xff]  ;;  %v1851_v59 = vld [vmem:[%s5932_s20] sm:$0xff]  ;;  %v1852_v9 = vld [vmem:[%s5932_s20 + $0x8] sm:$0xff] }
 0x2de   : > { %4232 = vmatprep.subr.bf16.mxu1 %v1851_v59  ;;  %v1853_v10 = vld [vmem:[%s5932_s20 + $0x10] sm:$0xff] }
 0x2df   : > { %4233 = vmatpush3.bf16.msra.mxu1 %v1851_v59  ;;  %v1855_v59 = vld [vmem:[%s5932_s20 + $0x20] sm:$0xff] }
 0x2e0   : > { %4234 = vmatprep.subr.bf16.mxu1 %v1852_v9 }
 0x2e2   : > { %4203 = vmatpush3.bf16.xpose.msra.mxu0 %v1888_v43 }
 0x2e3   : > { %4356 = vmatprep.subr.msk.bf16.mxu0 %vm1859_vm4, %v1843_v18  ;;  %4235 = vmatpush3.bf16.msra.mxu1 %v1852_v9 }
 0x2e4   : > { %4236 = vmatprep.subr.bf16.mxu1 %v1853_v10 }
 0x2e7   : > { %4237 = vmatpush3.bf16.msra.mxu1 %v1853_v10  ;;  %v1856_v10 = vld [vmem:[%s5932_s20 + $0x28] sm:$0xff] }
 0x2ea   : > { %4205 = vmatpush3.bf16.xpose.msra.mxu0 %v1891_v19 }
 0x2eb   : > { %4357 = vmatprep.subr.msk.bf16.mxu0 %vm1859_vm4, %v1844_v20 }
 0x2f2   : > { %4207 = vmatpush3.bf16.xpose.msra.mxu0 %v1894_v45 }
 0x2f3   : > { %4358 = vmatprep.subr.msk.bf16.mxu0 %vm1859_vm4, %v1845_v21 }
 0x2fa   : > { %4209 = vmatpush3.bf16.xpose.msra.mxu0 %v1897_v22 }
 0x2fb   : > { %4359 = vmatprep.subr.msk.bf16.mxu0 %vm1859_vm4, %v1846_v23 }
 0x302   : > { %4211 = vmatpush3.bf16.xpose.msra.mxu0 %v1900_v24 }
 0x303   : > { %4360 = vmatprep.subr.msk.bf16.mxu0 %vm1859_vm4, %v1847_v2 }
 0x30a   : > { %4213 = vmatpush3.bf16.xpose.msra.mxu0 %v1903_v26 }
 0x30b   : > { %4361 = vmatprep.subr.msk.bf16.mxu0 %vm1859_vm4, %v1848_v28 }
 0x312   : > { %4215 = vmatpush3.bf16.xpose.msra.mxu0 %v1906_v30 }
 0x319   : > { %4217 = vmatmul.mubr.msk.bf16.vlgmr.msra.gmra.mrb[0].mxu0 %vm1859_vm4, %v1832_v32 }
 0x31a   : > { %4220 = vmatprep.mubr.msk.bf16.mxu0 %vm1859_vm4, %v1833_v33 }
 0x321   : > { %4221 = vmatmul.mubr.msk.bf16.gmra.mrb[4].mxu0 %vm1859_vm4, %v1834_v34 }
 0x322   : > { %4224 = vmatprep.mubr.msk.bf16.mxu0 %vm1859_vm4, %v1835_v3 }
 0x329   : > { %4225 = vmatmul.mubr.msk.bf16.gmra.mrb[8].mxu0 %vm1859_vm4, %v1836_v35 }
 0x32a   : > { %4228 = vmatprep.mubr.msk.bf16.mxu0 %vm1859_vm4, %v1837_v29 }
 0x331   : > { %4229 = vmatmul.mubr.msk.bf16.gmra.mrb[12].mxu0 %vm1859_vm4, %v1838_v61 }
 0x3ec   : > { %v4218_v31 = vpop.f32.mrb[0].mxu0 }
 0x3ed   : > { %v1942_v37 = vpop.f32.mrb[1].mxu0  ;;  %v2010_v27 = vsel %vm2007_vm5, %v4218_v31, -1e+30 }
 0x3ee   : > { %2028 = vmax.xlane.f32.xlu1 %v2010_v27  ;;  %v4219_v38 = vpop.f32.mrb[2].mxu0  ;;  %v2008_v39 = vsel %vm2007_vm5, %v1942_v37, -1e+30 }
 0x3ef   : > { %2024 = vmax.xlane.f32.xlu0 %v2008_v39  ;;  %v1945_v40 = vpop.f32.mrb[3].mxu0  ;;  %v5882_v41 = vsel %vm2007_vm5, %v4219_v38, -1e+30 }
 0x3f0   : > { %v2009_v42 = vsel %vm2007_vm5, %v1945_v40, -1e+30 }
 0x3f2   : > { %2030 = vmax.xlane.f32.xlu1 %v5882_v41 }
 0x3f3   : > { %2026 = vmax.xlane.f32.xlu0 %v2009_v42 }
 0x3f4   : > { %v4222_v44 = vpop.f32.mrb[4].mxu0 }
 0x3f5   : > { %v1958_v46 = vpop.f32.mrb[5].mxu0  ;;  %v5892_v60 = vsel %vm2007_vm5, %v4222_v44, -1e+30 }
 0x3f6   : > { %v4223_v47 = vpop.f32.mrb[6].mxu0  ;;  %v2012_v48 = vsel %vm2007_vm5, %v1958_v46, -1e+30 }
 0x3f7   : > { %2032 = vmax.xlane.f32.xlu0 %v2012_v48  ;;  %v1961_v49 = vpop.f32.mrb[7].mxu0  ;;  %v5896_v52 = vsel %vm2007_vm5, %v4223_v47, -1e+30 }
 0x3f8   : > { %v5888_v50 = vsel %vm2007_vm5, %v1961_v49, -1e+30 }
 0x3f9   : > { %2034 = vmax.xlane.f32.xlu1 %v5888_v50 }
 0x3fb   : > { %2036 = vmax.xlane.f32.xlu0 %v5892_v60 }
 0x3fc   : > { %v4226_v51 = vpop.f32.mrb[8].mxu0 }
 0x3fd   : > { %2038 = vmax.xlane.f32.xlu1 %v5896_v52  ;;  %v1974_v53 = vpop.f32.mrb[9].mxu0  ;;  %v5908_v55 = vsel %vm2007_vm5, %v4226_v51, -1e+30 }
 0x3fe   : > { %v4227_v14 = vpop.f32.mrb[10].mxu0  ;;  %v5900_v54 = vsel %vm2007_vm5, %v1974_v53, -1e+30 }
 0x3ff   : > { %2040 = vmax.xlane.f32.xlu0 %v5900_v54  ;;  %v1977_v56 = vpop.f32.mrb[11].mxu0  ;;  %v5912_v4 = vsel %vm2007_vm5, %v4227_v14, -1e+30 }
 0x400   : > { %v5904_v58 = vsel %vm2007_vm5, %v1977_v56, -1e+30 }
 0x401   : > { %2042 = vmax.xlane.f32.xlu1 %v5904_v58 }
 0x403   : > { %2044 = vmax.xlane.f32.xlu0 %v5908_v55 }
 0x404   : > { %v4230_v62 = vpop.f32.mrb[12].mxu0 }
 0x405   : > { %2046 = vmax.xlane.f32.xlu1 %v5912_v4  ;;  %v1990_v63 = vpop.f32.mrb[13].mxu0  ;;  %v5924_v1 = vsel %vm2007_vm5, %v4230_v62, -1e+30 }
 0x406   : > { %v4231_v57 = vpop.f32.mrb[14].mxu0  ;;  %v5916_v5 = vsel %vm2007_vm5, %v1990_v63, -1e+30 }
 0x407   : > { %2048 = vmax.xlane.f32.xlu0 %v5916_v5  ;;  %v1993_v6 = vpop.f32.mrb[15].mxu0  ;;  %v5928_v8 = vsel %vm2007_vm5, %v4231_v57, -1e+30 }
 0x408   : > { %v5920_v7 = vsel %vm2007_vm5, %v1993_v6, -1e+30 }
 0x409   : > { %2050 = vmax.xlane.f32.xlu1 %v5920_v7 }
 0x40b   : > { %2052 = vmax.xlane.f32.xlu0 %v5924_v1 }
 0x40d   : > { %2054 = vmax.xlane.f32.xlu1 %v5928_v8 }
 0x47b   : > { %v2029_v11 = vpop.xlane.xlu1 %2028 }
 0x47c   : > { %v2058_v12 = vsub.f32 %v2010_v27, %v2029_v11  ;;  %v2025_v0 = vpop.xlane.xlu0 %2024 }
 0x47d   : > { %v2056_v13 = vsub.f32 %v2008_v39, %v2025_v0  ;;  %v1857_v0 = vld [vmem:[%s5932_s20 + $0x30] sm:$0xff] }
 0x47e   : > { %v2076_v17 = vmul.f32 1.442695, %v2058_v12 }
 0x47f   : > { %v2072_v15 = vmul.f32 1.442695, %v2056_v13  ;;  %v2031_v16 = vpop.xlane.xlu1 %2030 }
 0x480   : > { %v2059_v43 = vsub.f32 %v5882_v41, %v2031_v16  ;;  %v2027_v18 = vpop.xlane.xlu0 %2026  ;;  %v4904_v16 = vmov 0  }
 0x481   : > { %4590 = vpow2.f32 %v2072_v15  ;;  %v2057_v19 = vsub.f32 %v2009_v42, %v2027_v18  ;;  %v1858_v15 = vld [vmem:[%s5932_s20 + $0x38] sm:$0xff]  ;;  %4589 = vset.pattern.permute.xlu1 %v4904_v16  ;;  %4588 = vset.pattern.permute.xlu0 %v4904_v16  ;;  %v6013_v18 = vld [vmem:[%s6007_s29 + $0x10] sm:$0xff] }
 0x482   : > { %4592 = vpow2.f32 %v2076_v17  ;;  %v2078_v45 = vmul.f32 1.442695, %v2059_v43  ;;  %v2637_v17 = vld [vmem:[%s2636_s14] sm:$0xf]  ;;  %v6010_v43 = vld [vmem:[%s6007_s29 + $0x8] sm:$0xff] }
 0x483   : > { %v2074_v20 = vmul.f32 1.442695, %v2057_v19  ;;  %v2251_v19 = vmul.f32 %v6010_v43, %v6010_v43 }
 0x484   : > { %v2033_v21 = vpop.xlane.xlu0 %2032 }
 0x485   : > { %4594 = vpow2.f32 %v2074_v20  ;;  %v2060_v22 = vsub.f32 %v2012_v48, %v2033_v21  ;;  %v6017_v20 = vsel %vm2662_vm6, %v2637_v17, 0  ;;  %v6022_v21 = vld [vmem:[%s6007_s29 + $0x18] sm:$0xff] }
 0x486   : > { %v2035_v23 = vpop.xlane.xlu1 %2034  ;;  %4596 = vpow2.f32 %v2078_v45  ;;  %v2252_v45 = vmul.f32 %v6013_v18, %v6013_v18 }
 0x487   : > { %v2080_v24 = vmul.f32 1.442695, %v2060_v22  ;;  %v2061_v2 = vsub.f32 %v5888_v50, %v2035_v23  ;;  %v2253_v22 = vmul.f32 %v6022_v21, %v6022_v21  ;;  %v6027_v23 = vld [vmem:[%s6007_s29 + $0x20] sm:$0xff] }
 0x488   : > { %v2037_v26 = vpop.xlane.xlu0 %2036 }
 0x489   : > { %4598 = vpow2.f32 %v2080_v24  ;;  %v2082_v28 = vmul.f32 1.442695, %v2061_v2  ;;  %v2062_v30 = vsub.f32 %v5892_v60, %v2037_v26  ;;  %v2254_v24 = vmul.f32 %v6027_v23, %v6027_v23  ;;  %v6032_v2 = vld [vmem:[%s6007_s29 + $0x28] sm:$0xff] }
 0x48a   : > { %v2039_v32 = vpop.xlane.xlu1 %2038  ;;  %v2255_v26 = vmul.f32 %v6032_v2, %v6032_v2 }
 0x48b   : > { %v5940_v33 = vpop.eup %4590  ;;  %v2084_v34 = vmul.f32 1.442695, %v2062_v30  ;;  %v2063_v3 = vsub.f32 %v5896_v52, %v2039_v32  ;;  %4600 = vpow2.f32 %v2082_v28  ;;  %v6037_v28 = vld [vmem:[%s6007_s29 + $0x30] sm:$0xff]  ;;  %v6042_v32 = vld [vmem:[%s6007_s29 + $0x38] sm:$0xff] }
 0x48c   : > { %v2041_v35 = vpop.xlane.xlu0 %2040  ;;  %2104 = vadd.xlane.f32.xlu0 %v5940_v33  ;;  %v5945_v25 = vpop.eup %4592  ;;  %v2256_v30 = vmul.f32 %v6037_v28, %v6037_v28 }
 0x48d   : > { %4602 = vpow2.f32 %v2084_v34  ;;  %v2086_v29 = vmul.f32 1.442695, %v2063_v3  ;;  %v2064_v61 = vsub.f32 %v5900_v54, %v2041_v35  ;;  %v2257_v34 = vmul.f32 %v6042_v32, %v6042_v32 }
 0x48e   : > { %v2043_v36 = vpop.xlane.xlu1 %2042 }
 0x48f   : > { %v5947_v31 = vpop.eup %4594  ;;  %v2088_v37 = vmul.f32 1.442695, %v2064_v61  ;;  %v2065_v27 = vsub.f32 %v5904_v58, %v2043_v36  ;;  %4604 = vpow2.f32 %v2086_v29 }
 0x490   : > { %v2045_v38 = vpop.xlane.xlu0 %2044  ;;  %2108 = vadd.xlane.f32.xlu0 %v5945_v25  ;;  %2106 = vadd.xlane.f32.xlu1 %v5947_v31  ;;  %v5953_v41 = vpop.eup %4596 }
 0x491   : > { %4606 = vpow2.f32 %v2088_v37  ;;  %v2090_v39 = vmul.f32 1.442695, %v2065_v27  ;;  %v2066_v40 = vsub.f32 %v5908_v55, %v2045_v38 }
 0x492   : > { %v2047_v42 = vpop.xlane.xlu1 %2046 }
 0x493   : > { %v5955_v44 = vpop.eup %4598  ;;  %v2092_v46 = vmul.f32 1.442695, %v2066_v40  ;;  %v2067_v47 = vsub.f32 %v5912_v4, %v2047_v42  ;;  %4608 = vpow2.f32 %v2090_v39  ;;  %v1854_v4 = vld [vmem:[%s5932_s20 + $0x18] sm:$0xff] }
 0x494   : > { %2112 = vadd.xlane.f32.xlu0 %v5955_v44  ;;  %v2049_v48 = vpop.xlane.xlu0 %2048  ;;  %2110 = vadd.xlane.f32.xlu1 %v5953_v41 }
 0x495   : > { %4610 = vpow2.f32 %v2092_v46  ;;  %v2094_v49 = vmul.f32 1.442695, %v2067_v47  ;;  %v2068_v50 = vsub.f32 %v5916_v5, %v2049_v48  ;;  %v5961_v60 = vpop.eup %4600  ;;  %4238 = vmatprep.subr.bf16.mxu1 %v1854_v4 }
 0x496   : > { %v2051_v51 = vpop.xlane.xlu1 %2050  ;;  %4239 = vmatpush3.bf16.msra.mxu1 %v1854_v4 }
 0x497   : > { %v5963_v52 = vpop.eup %4602  ;;  %v2096_v53 = vmul.f32 1.442695, %v2068_v50  ;;  %v2069_v14 = vsub.f32 %v5920_v7, %v2051_v51  ;;  %4612 = vpow2.f32 %v2094_v49  ;;  %4240 = vmatprep.subr.bf16.mxu1 %v1855_v59 }
 0x498   : > { %2116 = vadd.xlane.f32.xlu0 %v5963_v52  ;;  %v2053_v54 = vpop.xlane.xlu0 %2052  ;;  %2114 = vadd.xlane.f32.xlu1 %v5961_v60 }
 0x499   : > { %4614 = vpow2.f32 %v2096_v53  ;;  %v2098_v56 = vmul.f32 1.442695, %v2069_v14  ;;  %v2070_v58 = vsub.f32 %v5924_v1, %v2053_v54  ;;  %v5969_v55 = vpop.eup %4604 }
 0x49a   : > { %v2055_v62 = vpop.xlane.xlu1 %2054  ;;  %4241 = vmatpush3.bf16.msra.mxu1 %v1855_v59 }
 0x49b   : > { %v5972_v63 = vpop.eup %4606  ;;  %v2100_v57 = vmul.f32 1.442695, %v2070_v58  ;;  %v2071_v5 = vsub.f32 %v5928_v8, %v2055_v62  ;;  %4616 = vpow2.f32 %v2098_v56  ;;  %4242 = vmatprep.subr.bf16.mxu1 %v1856_v10 }
 0x49c   : > { %2120 = vadd.xlane.f32.xlu0 %v5972_v63  ;;  %2118 = vadd.xlane.f32.xlu1 %v5969_v55 }
 0x49d   : > { %4618 = vpow2.f32 %v2100_v57  ;;  %v2102_v6 = vmul.f32 1.442695, %v2071_v5  ;;  %v5977_v7 = vpop.eup %4608 }
 0x49e   : > { %4243 = vmatpush3.bf16.msra.mxu1 %v1856_v10 }
 0x49f   : > { %v5979_v1 = vpop.eup %4610  ;;  %4620 = vpow2.f32 %v2102_v6  ;;  %4244 = vmatprep.subr.bf16.mxu1 %v1857_v0 }
 0x4a0   : > { %2124 = vadd.xlane.f32.xlu0 %v5979_v1  ;;  %2122 = vadd.xlane.f32.xlu1 %v5977_v7 }
 0x4a1   : > { %v5984_v8 = vpop.eup %4612 }
 0x4a2   : > { %4245 = vmatpush3.bf16.msra.mxu1 %v1857_v0 }
 0x4a3   : > { %v5986_v9 = vpop.eup %4614  ;;  %4246 = vmatprep.subr.bf16.mxu1 %v1858_v15 }
 0x4a4   : > { %2128 = vadd.xlane.f32.xlu0 %v5986_v9  ;;  %2126 = vadd.xlane.f32.xlu1 %v5984_v8 }
 0x4a5   : > { %v5991_v11 = vpop.eup %4616 }
 0x4a6   : > { %4247 = vmatpush3.bf16.msra.mxu1 %v1858_v15 }
 0x4a7   : > { %v5993_v12 = vpop.eup %4618  ;;  %4362 = vmatprep.subr.msk.bf16.mxu1 %vm2662_vm6, %v2637_v17 }
 0x4a8   : > { %2132 = vadd.xlane.f32.xlu0 %v5993_v12  ;;  %2130 = vadd.xlane.f32.xlu1 %v5991_v11 }
 0x4a9   : > { %v5998_v13 = vpop.eup %4620 }
 0x4ac   : > { %2134 = vadd.xlane.f32.xlu1 %v5998_v13 }
 0x4bd   : > { %2273 = vperm.xlu1 %4589, %v2251_v19  }
 0x4c1   : > { %2278 = vperm.xlu1 %4589, %v2252_v45  }
 0x4c5   : > { %2283 = vperm.xlu1 %4589, %v2253_v22  }
 0x4c9   : > { %2288 = vperm.xlu1 %4589, %v2254_v24  }
 0x4cd   : > { %2293 = vperm.xlu1 %4589, %v2255_v26  }
 0x4d1   : > { %2298 = vperm.xlu1 %4589, %v2256_v30  }
 0x4d5   : > { %2303 = vperm.xlu1 %4589, %v2257_v34  }
 0x519   : > { %v2105_v3 = vpop.xlane.xlu0 %2104 }
 0x51a   : > { %4622 = vrcp.f32 %v2105_v3 }
 0x51d   : > { %v2109_v35 = vpop.xlane.xlu0 %2108  ;;  %v2107_v29 = vpop.xlane.xlu1 %2106 }
 0x51e   : > { %4624 = vrcp.f32 %v2109_v35 }
 0x51f   : > { %4626 = vrcp.f32 %v2107_v29  ;;  %v2210_v29 = vld [vmem:[%s6007_s29 + $0x40] sm:$0xff] }
 0x521   : > { %v2113_v61 = vpop.xlane.xlu0 %2112  ;;  %v2111_v36 = vpop.xlane.xlu1 %2110 }
 0x522   : > { %4628 = vrcp.f32 %v2113_v61  ;;  %v2258_v61 = vmul.f32 %v2210_v29, %v2210_v29 }
 0x523   : > { %4630 = vrcp.f32 %v2111_v36 }
 0x524   : > { %v4623_v37 = vpop.eup %4622  ;;  %2308 = vperm.xlu1 %4589, %v2258_v61  }
 0x525   : > { %v2117_v27 = vpop.xlane.xlu0 %2116  ;;  %v2115_v38 = vpop.xlane.xlu1 %2114  ;;  %v2168_v39 = vmul.f32 %v4623_v37, %v5940_v33 }
 0x526   : > { %4632 = vrcp.f32 %v2117_v27  ;;  %v2216_v27 = vld [vmem:[%s6007_s29 + $0x70] sm:$0xff] }
 0x527   : > { %4634 = vrcp.f32 %v2115_v38  ;;  %2184 = vst [vmem:[%s5086_s22] sm:$0xff] %v2168_v39  ;;  %v2264_v38 = vmul.f32 %v2216_v27, %v2216_v27 }
 0x528   : > { %v4625_v40 = vpop.eup %4624 }
 0x529   : > { %v4627_v42 = vpop.eup %4626  ;;  %v2121_v46 = vpop.xlane.xlu0 %2120  ;;  %v2170_v48 = vmul.f32 %v4625_v40, %v5945_v25 }
 0x52a   : > { %v2119_v47 = vpop.xlane.xlu1 %2118  ;;  %4636 = vrcp.f32 %v2121_v46  ;;  %v2169_v49 = vmul.f32 %v4627_v42, %v5947_v31  ;;  %v2220_v42 = vmul.f32 0.3989423, %v6013_v18  ;;  %v2211_v46 = vld [vmem:[%s6007_s29 + $0x48] sm:$0xff] }
 0x52b   : > { %4638 = vrcp.f32 %v2119_v47  ;;  %2186 = vst [vmem:[%s5086_s22 + $0x10] sm:$0xff] %v2170_v48  ;;  %v2259_v47 = vmul.f32 %v2211_v46, %v2211_v46 }
 0x52c   : > { %v4629_v50 = vpop.eup %4628  ;;  %2185 = vst [vmem:[%s5086_s22 + $0x8] sm:$0xff] %v2169_v49  ;;  %v2506_v51 = vpack.c.bf16 %v2169_v49, %v2168_v39  ;;  %v2213_v49 = vld [vmem:[%s6007_s29 + $0x58] sm:$0xff] }
 0x52d   : > { %v4631_v33 = vpop.eup %4630  ;;  %v2125_v53 = vpop.xlane.xlu0 %2124  ;;  %v2172_v54 = vmul.f32 %v4629_v50, %v5955_v44  ;;  %v2261_v50 = vmul.f32 %v2213_v49, %v2213_v49 }
 0x52e   : > { %v2123_v14 = vpop.xlane.xlu1 %2122  ;;  %4640 = vrcp.f32 %v2125_v53  ;;  %4248 = vmatprep.mubr.bf16.mxu1 %v2506_v51  ;;  %v2171_v25 = vmul.f32 %v4631_v33, %v5953_v41  ;;  %v2224_v51 = vmul.f32 0.3989423, %v6037_v28  ;;  %v2215_v33 = vld [vmem:[%s6007_s29 + $0x68] sm:$0xff]  ;;  %v2226_v53 = vmul.f32 0.3989423, %v2210_v29 }
 0x52f   : > { %4642 = vrcp.f32 %v2123_v14  ;;  %2188 = vst [vmem:[%s5086_s22 + $0x20] sm:$0xff] %v2172_v54  ;;  %v2217_v14 = vld [vmem:[%s6007_s29 + $0x78] sm:$0xff]  ;;  %v2232_v28 = vmul.f32 0.3989423, %v2216_v27 }
 0x530   : > { %v4633_v31 = vpop.eup %4632  ;;  %2187 = vst [vmem:[%s5086_s22 + $0x18] sm:$0xff] %v2171_v25  ;;  %v2507_v56 = vpack.c.bf16 %v2171_v25, %v2170_v48  ;;  %v2222_v48 = vmul.f32 0.3989423, %v6027_v23  ;;  %v2265_v18 = vmul.f32 %v2217_v14, %v2217_v14  ;;  %v2219_v23 = vmul.f32 0.3989423, %v6010_v43 }
 0x531   : > { %v4635_v58 = vpop.eup %4634  ;;  %v2129_v62 = vpop.xlane.xlu0 %2128  ;;  %v2174_v57 = vmul.f32 %v4633_v31, %v5963_v52  ;;  %v2233_v43 = vmul.f32 0.3989423, %v2217_v14 }
 0x532   : > { %v2127_v4 = vpop.xlane.xlu1 %2126  ;;  %4644 = vrcp.f32 %v2129_v62  ;;  %4249 = vmatmul.mubr.bf16.vlgmr.msra.gmra.mrb[0].mxu1 %v2507_v56  ;;  %v2173_v44 = vmul.f32 %v4635_v58, %v5961_v60  ;;  %v2221_v56 = vmul.f32 0.3989423, %v6022_v21  ;;  %v2223_v58 = vmul.f32 0.3989423, %v6032_v2 }
 0x533   : > { %4646 = vrcp.f32 %v2127_v4  ;;  %2190 = vst [vmem:[%s5086_s22 + $0x30] sm:$0xff] %v2174_v57  ;;  %4265 = vmatpush3.bf16.msra.mxu1 %v6017_v20  ;;  %v2225_v62 = vmul.f32 0.3989423, %v6042_v32  ;;  %v2227_v4 = vmul.f32 0.3989423, %v2211_v46  ;;  %v2236_v32 = vld [vmem:[#allocation6 + $0x10] sm:$0xff] }
 0x534   : > { %v4637_v41 = vpop.eup %4636  ;;  %2189 = vst [vmem:[%s5086_s22 + $0x28] sm:$0xff] %v2173_v44  ;;  %v2508_v5 = vpack.c.bf16 %v2173_v44, %v2172_v54  ;;  %v2263_v54 = vmul.f32 %v2215_v33, %v2215_v33  ;;  %v2231_v44 = vmul.f32 0.3989423, %v2215_v33 }
 0x535   : > { %v4639_v6 = vpop.eup %4638  ;;  %v2133_v59 = vpop.xlane.xlu0 %2132  ;;  %v2176_v0 = vmul.f32 %v4637_v41, %v5972_v63 }
 0x536   : > { %v2131_v10 = vpop.xlane.xlu1 %2130  ;;  %4648 = vrcp.f32 %v2133_v59  ;;  %4252 = vmatprep.mubr.bf16.mxu1 %v2508_v5  ;;  %v2175_v52 = vmul.f32 %v4639_v6, %v5969_v55 }
 0x537   : > { %4650 = vrcp.f32 %v2131_v10  ;;  %2192 = vst [vmem:[%s5086_s22 + $0x40] sm:$0xff] %v2176_v0 }
 0x538   : > { %v4641_v60 = vpop.eup %4640  ;;  %2191 = vst [vmem:[%s5086_s22 + $0x38] sm:$0xff] %v2175_v52  ;;  %v2509_v15 = vpack.c.bf16 %v2175_v52, %v2174_v57  ;;  %v2229_v57 = vmul.f32 0.3989423, %v2213_v49  ;;  %v2246_v49 = vld [vmem:[#allocation6 + $0x60] sm:$0xff] }
 0x539   : > { %v4643_v16 = vpop.eup %4642  ;;  %v2178_v19 = vmul.f32 %v4641_v60, %v5979_v1 }
 0x53a   : > { %v2135_v17 = vpop.xlane.xlu1 %2134  ;;  %4253 = vmatmul.mubr.bf16.gmra.mrb[4].mxu1 %v2509_v15  ;;  %v2177_v63 = vmul.f32 %v4643_v16, %v5977_v7 }
 0x53b   : > { %4652 = vrcp.f32 %v2135_v17  ;;  %2194 = vst [vmem:[%s5086_s22 + $0x50] sm:$0xff] %v2178_v19 }
 0x53c   : > { %v4645_v20 = vpop.eup %4644  ;;  %2193 = vst [vmem:[%s5086_s22 + $0x48] sm:$0xff] %v2177_v63  ;;  %v2510_v55 = vpack.c.bf16 %v2177_v63, %v2176_v0  ;;  %v2238_v63 = vld [vmem:[#allocation6 + $0x20] sm:$0xff] }
 0x53d   : > { %v4647_v45 = vpop.eup %4646  ;;  %v2180_v22 = vmul.f32 %v4645_v20, %v5986_v9 }
 0x53e   : > { %4256 = vmatprep.mubr.bf16.mxu1 %v2510_v55  ;;  %v2179_v24 = vmul.f32 %v4647_v45, %v5984_v8  ;;  %v2274_v41 = vpop.permute.xlu1 %2273 }
 0x53f   : > { %2196 = vst [vmem:[%s5086_s22 + $0x60] sm:$0xff] %v2180_v22 }
 0x540   : > { %v4649_v26 = vpop.eup %4648  ;;  %2195 = vst [vmem:[%s5086_s22 + $0x58] sm:$0xff] %v2179_v24  ;;  %v2511_v1 = vpack.c.bf16 %v2179_v24, %v2178_v19  ;;  %v2240_v24 = vld [vmem:[#allocation6 + $0x30] sm:$0xff] }
 0x541   : > { %v4651_v30 = vpop.eup %4650  ;;  %v2182_v7 = vmul.f32 %v4649_v26, %v5993_v12  ;;  %v2212_v12 = vld [vmem:[%s6007_s29 + $0x50] sm:$0xff] }
 0x542   : > { %4257 = vmatmul.mubr.bf16.gmra.mrb[8].mxu1 %v2511_v1  ;;  %v2181_v34 = vmul.f32 %v4651_v30, %v5991_v11  ;;  %v2260_v36 = vmul.f32 %v2212_v12, %v2212_v12  ;;  %v2214_v11 = vld [vmem:[%s6007_s29 + $0x60] sm:$0xff]  ;;  %v2228_v25 = vmul.f32 0.3989423, %v2212_v12  ;;  %v2279_v5 = vpop.permute.xlu1 %2278 }
 0x543   : > { %2198 = vst [vmem:[%s5086_s22 + $0x70] sm:$0xff] %v2182_v7  ;;  %v2262_v37 = vmul.f32 %v2214_v11, %v2214_v11  ;;  %v2230_v31 = vmul.f32 0.3989423, %v2214_v11  ;;  %v2348_v60 = vmul.f32 %v2279_v5, %v2236_v32  ;;  %v2244_v11 = vld [vmem:[#allocation6 + $0x50] sm:$0xff]  ;;  %v2239_v5 = vld [vmem:[#allocation6 + $0x28] sm:$0xff] }
 0x544   : > { %2197 = vst [vmem:[%s5086_s22 + $0x68] sm:$0xff] %v2181_v34  ;;  %v2512_v9 = vpack.c.bf16 %v2181_v34, %v2180_v22  ;;  %2318 = vperm.xlu1 %4589, %v2260_v36  }
 0x545   : > { %v4653_v3 = vpop.eup %4652  ;;  %v2366_v55 = vmul.f32 1.442695, %v2348_v60 }
 0x546   : > { %v2183_v8 = vmul.f32 %v4653_v3, %v5998_v13  ;;  %4260 = vmatprep.mubr.bf16.mxu1 %v2512_v9  ;;  %v2202_v13 = vld [vmem:[%s6007_s29] sm:$0xff]  ;;  %v6095_v21 = vpop.permute.xlu1 %2283 }
 0x547   : > { %v2218_v39 = vmul.f32 0.3989423, %v2202_v13  ;;  %v2250_v40 = vmul.f32 %v2202_v13, %v2202_v13  ;;  %4654 = vpow2.f32 %v2366_v55 }
 0x548   : > { %2199 = vst [vmem:[%s5086_s22 + $0x78] sm:$0xff] %v2183_v8  ;;  %v2513_v35 = vpack.c.bf16 %v2183_v8, %v2182_v7  ;;  %2328 = vperm.xlu1 %4589, %v2262_v37  }
 0x549   : > { %2268 = vperm.xlu0 %4588, %v2250_v40   ;;  %v2235_v40 = vld [vmem:[#allocation6 + $0x8] sm:$0xff] }
 0x54a   : > { %4261 = vmatmul.mubr.bf16.gmra.mrb[12].mxu1 %v2513_v35  ;;  %v2289_v6 = vpop.permute.xlu1 %2288  ;;  %v2242_v35 = vld [vmem:[#allocation6 + $0x40] sm:$0xff]  ;;  %v2347_v33 = vmul.f32 %v2274_v41, %v2235_v40 }
 0x54b   : > { %v2350_v22 = vmul.f32 %v2289_v6, %v2238_v63  ;;  %v2241_v63 = vld [vmem:[#allocation6 + $0x38] sm:$0xff] }
 0x54c   : > { %2338 = vperm.xlu1 %4589, %v2264_v38  }
 0x54d   : > { %2313 = vperm.xlu0 %4588, %v2259_v47   ;;  %v2370_v34 = vmul.f32 1.442695, %v2350_v22 }
 0x54e   : > { %v6097_v59 = vpop.permute.xlu1 %2293 }
 0x54f   : > { %4656 = vpow2.f32 %v2370_v34 }
 0x550   : > { %2396 = vperm.xlu1 %4589, %v2218_v39  }
 0x551   : > { %2323 = vperm.xlu0 %4588, %v2261_v50   ;;  %v4655_v46 = vpop.eup %4654  ;;  %v2234_v50 = vld [vmem:[#allocation6] sm:$0xff] }
 0x552   : > { %v2299_v2 = vpop.permute.xlu1 %2298 }
 0x553   : > { %v2352_v3 = vmul.f32 %v2299_v2, %v2240_v24 }
 0x554   : > { %2406 = vperm.xlu1 %4589, %v2220_v42  }
 0x555   : > { %2333 = vperm.xlu0 %4588, %v2263_v54   ;;  %v2374_v12 = vmul.f32 1.442695, %v2352_v3 }
 0x556   : > { %v6099_v10 = vpop.permute.xlu1 %2303 }
 0x557   : > { %4658 = vpow2.f32 %v2374_v12 }
 0x558   : > { %2416 = vperm.xlu1 %4589, %v2222_v48  }
 0x559   : > { %2343 = vperm.xlu0 %4588, %v2265_v18   ;;  %v2237_v18 = vld [vmem:[#allocation6 + $0x18] sm:$0xff] }
 0x55c   : > { %2426 = vperm.xlu1 %4589, %v2224_v51  }
 0x55d   : > { %2401 = vperm.xlu0 %4588, %v2219_v23  }
 0x560   : > { %2436 = vperm.xlu1 %4589, %v2226_v53  }
 0x561   : > { %2411 = vperm.xlu0 %4588, %v2221_v56   ;;  %v2248_v56 = vld [vmem:[#allocation6 + $0x70] sm:$0xff] }
 0x564   : > { %2446 = vperm.xlu1 %4589, %v2228_v25  }
 0x565   : > { %2421 = vperm.xlu0 %4588, %v2223_v58  }
 0x568   : > { %2456 = vperm.xlu1 %4589, %v2230_v31  }
 0x569   : > { %2431 = vperm.xlu0 %4588, %v2225_v62  }
 0x56c   : > { %2466 = vperm.xlu1 %4589, %v2232_v28   ;;  %v4657_v28 = vpop.eup %4656 }
 0x56d   : > { %2441 = vperm.xlu0 %4588, %v2227_v4  }
 0x571   : > { %2451 = vperm.xlu0 %4588, %v2229_v57   ;;  %v2364_v57 = vmul.f32 1.442695, %v2347_v33 }
 0x575   : > { %2461 = vperm.xlu0 %4588, %v2231_v44   ;;  %v2349_v44 = vmul.f32 %v6095_v21, %v2237_v18 }
 0x579   : > { %2471 = vperm.xlu0 %4588, %v2233_v43  }
 0x5a3   : > { %v2309_v15 = vpop.permute.xlu1 %2308 }
 0x5a4   : > { %v2354_v36 = vmul.f32 %v2309_v15, %v2242_v35  ;;  %v4659_v15 = vpop.eup %4658 }
 0x5a6   : > { %v2378_v42 = vmul.f32 1.442695, %v2354_v36 }
 0x5a8   : > { %4660 = vpow2.f32 %v2378_v42 }
 0x5b2   : > { %v4661_v22 = vpop.eup %4660 }
 0x5c3   : > { %v2319_v45 = vpop.permute.xlu1 %2318 }
 0x5c4   : > { %v2356_v38 = vmul.f32 %v2319_v45, %v2244_v11 }
 0x5c6   : > { %v2382_v53 = vmul.f32 1.442695, %v2356_v38 }
 0x5c7   : > { %v2329_v30 = vpop.permute.xlu1 %2328 }
 0x5c8   : > { %v2269_v14 = vpop.permute.xlu0 %2268  ;;  %v2358_v25 = vmul.f32 %v2329_v30, %v2246_v49  ;;  %4662 = vpow2.f32 %v2382_v53 }
 0x5c9   : > { %v2346_v23 = vmul.f32 %v2269_v14, %v2234_v50 }
 0x5ca   : > { %v2386_v6 = vmul.f32 1.442695, %v2358_v25 }
 0x5cb   : > { %v2339_v61 = vpop.permute.xlu1 %2338  ;;  %v2362_v62 = vmul.f32 1.442695, %v2346_v23 }
 0x5cc   : > { %v2314_v43 = vpop.permute.xlu0 %2313  ;;  %v2360_v2 = vmul.f32 %v2339_v61, %v2248_v56  ;;  %v2245_v61 = vld [vmem:[#allocation6 + $0x58] sm:$0xff] }
 0x5cd   : > { %4664 = vpow2.f32 %v2362_v62 }
 0x5ce   : > { %4666 = vpow2.f32 %v2364_v57 }
 0x5cf   : > { %v6105_v13 = vpop.permute.xlu1 %2396  ;;  %4668 = vpow2.f32 %v2386_v6 }
 0x5d0   : > { %v2324_v21 = vpop.permute.xlu0 %2323 }
 0x5d3   : > { %v2407_v54 = vpop.permute.xlu1 %2406 }
 0x5d4   : > { %v2476_v31 = vmul.f32 %v4655_v46, %v2407_v54 }
 0x5d6   : > { %2492 = vst [vmem:[%s5088_s30 + $0x10] sm:$0xff] %v2476_v31 }
 0x5d7   : > { %v2417_v32 = vpop.permute.xlu1 %2416 }
 0x5d8   : > { %v2478_v60 = vmul.f32 %v4657_v28, %v2417_v32 }
 0x5da   : > { %2494 = vst [vmem:[%s5088_s30 + $0x20] sm:$0xff] %v2478_v60 }
 0x5db   : > { %v2427_v55 = vpop.permute.xlu1 %2426 }
 0x5dc   : > { %v2480_v45 = vmul.f32 %v4659_v15, %v2427_v55  ;;  %v2613_v15 = vld [vmem:[#allocation7 + $0x10] sm:$0xff] }
 0x5de   : > { %2496 = vst [vmem:[%s5088_s30 + $0x30] sm:$0xff] %v2480_v45 }
 0x5df   : > { %v2437_v30 = vpop.permute.xlu1 %2436 }
 0x5e0   : > { %v2482_v34 = vmul.f32 %v4661_v22, %v2437_v30 }
 0x5e2   : > { %2498 = vst [vmem:[%s5088_s30 + $0x40] sm:$0xff] %v2482_v34 }
 0x5e3   : > { %v2447_v12 = vpop.permute.xlu1 %2446 }
 0x605   : > { %v4250_v0 = vpop.f32.mrb[0].mxu1 }
 0x606   : > { %v2548_v52 = vpop.f32.mrb[1].mxu1 }
 0x607   : > { %v4251_v16 = vpop.f32.mrb[2].mxu1 }
 0x608   : > { %v2628_v17 = vpack.c.bf16 %v4251_v16, %v4250_v0  ;;  %v2551_v19 = vpop.f32.mrb[3].mxu1 }
 0x609   : > { %v2627_v20 = vpack.c.bf16 %v2551_v19, %v2548_v52  ;;  %v2351_v19 = vmul.f32 %v6097_v59, %v2239_v5  ;;  %v2243_v59 = vld [vmem:[#allocation6 + $0x48] sm:$0xff] }
 0x60a   : > { %v2355_v35 = vmul.f32 %v2314_v43, %v2243_v59  ;;  %v2615_v59 = vld [vmem:[#allocation7 + $0x20] sm:$0xff] }
 0x60b   : > { %4266 = vmatprep.mubr.msk.bf16.mxu1 %vm1859_vm4, %v2627_v20  ;;  %v2390_v20 = vmul.f32 1.442695, %v2360_v2  ;;  %v2372_v24 = vmul.f32 1.442695, %v2351_v19  ;;  %v2614_v19 = vld [vmem:[#allocation7 + $0x18] sm:$0xff] }
 0x60c   : > { %4267 = vmatmul.mubr.msk.bf16.vlgmr.msra.gmra.mrb[16].mxu1 %vm1859_vm4, %v2628_v17  ;;  %v2368_v17 = vmul.f32 1.442695, %v2349_v44 }
 0x60d   : > { %v4254_v26 = vpop.f32.mrb[4].mxu1 }
 0x60e   : > { %v2564_v1 = vpop.f32.mrb[5].mxu1  ;;  %4670 = vpow2.f32 %v2368_v17 }
 0x60f   : > { %v4255_v7 = vpop.f32.mrb[6].mxu1  ;;  %4672 = vpow2.f32 %v2390_v20  ;;  %v2612_v20 = vld [vmem:[#allocation7 + $0x8] sm:$0xff] }
 0x610   : > { %v2630_v9 = vpack.c.bf16 %v4255_v7, %v4254_v26  ;;  %v2567_v8 = vpop.f32.mrb[7].mxu1  ;;  %v2353_v26 = vmul.f32 %v6099_v10, %v2241_v63  ;;  %v4663_v7 = vpop.eup %4662  ;;  %4674 = vpow2.f32 %v2372_v24 }
 0x611   : > { %v2629_v29 = vpack.c.bf16 %v2567_v8, %v2564_v1  ;;  %v2334_v1 = vpop.permute.xlu0 %2333  ;;  %v4665_v3 = vpop.eup %4664  ;;  %v2484_v36 = vmul.f32 %v4663_v7, %v2447_v12  ;;  %v2618_v7 = vld [vmem:[#allocation7 + $0x38] sm:$0xff] }
 0x612   : > { %v2474_v8 = vmul.f32 %v4665_v3, %v6105_v13  ;;  %v4667_v10 = vpop.eup %4666  ;;  %v2457_v13 = vpop.permute.xlu1 %2456 }
 0x613   : > { %4270 = vmatprep.mubr.msk.bf16.mxu1 %vm1859_vm4, %v2629_v29  ;;  %v4669_v11 = vpop.eup %4668  ;;  %2500 = vst [vmem:[%s5088_s30 + $0x50] sm:$0xff] %v2484_v36  ;;  %v2619_v36 = vld [vmem:[#allocation7 + $0x40] sm:$0xff] }
 0x614   : > { %4271 = vmatmul.mubr.msk.bf16.gmra.mrb[20].mxu1 %vm1859_vm4, %v2630_v9  ;;  %v2376_v9 = vmul.f32 1.442695, %v2353_v26  ;;  %2490 = vst [vmem:[%s5088_s30] sm:$0xff] %v2474_v8  ;;  %v2486_v46 = vmul.f32 %v4669_v11, %v2457_v13 }
 0x615   : > { %v4258_v37 = vpop.f32.mrb[8].mxu1  ;;  %v2344_v29 = vpop.permute.xlu0 %2343 }
 0x616   : > { %v2580_v27 = vpop.f32.mrb[9].mxu1  ;;  %4676 = vpow2.f32 %v2376_v9  ;;  %2502 = vst [vmem:[%s5088_s30 + $0x60] sm:$0xff] %v2486_v46  ;;  %v2467_v53 = vpop.permute.xlu1 %2466  ;;  %v2616_v9 = vld [vmem:[#allocation7 + $0x28] sm:$0xff] }
 0x617   : > { %v4259_v39 = vpop.f32.mrb[10].mxu1 }
 0x618   : > { %v2632_v47 = vpack.c.bf16 %v4259_v39, %v4258_v37  ;;  %v2583_v48 = vpop.f32.mrb[11].mxu1  ;;  %v2380_v37 = vmul.f32 1.442695, %v2355_v35  ;;  %v2247_v39 = vld [vmem:[#allocation6 + $0x68] sm:$0xff]  ;;  %v4671_v42 = vpop.eup %4670 }
 0x619   : > { %v2631_v51 = vpack.c.bf16 %v2583_v48, %v2580_v27  ;;  %v2357_v27 = vmul.f32 %v2324_v21, %v2245_v61  ;;  %v2402_v38 = vpop.permute.xlu0 %2401  ;;  %v2359_v49 = vmul.f32 %v2334_v1, %v2247_v39  ;;  %v2617_v1 = vld [vmem:[#allocation7 + $0x30] sm:$0xff]  ;;  %v2620_v39 = vld [vmem:[#allocation7 + $0x48] sm:$0xff] }
 0x61a   : > { %v2475_v40 = vmul.f32 %v4667_v10, %v2402_v38  ;;  %4678 = vpow2.f32 %v2380_v37  ;;  %v2621_v10 = vld [vmem:[#allocation7 + $0x50] sm:$0xff]  ;;  %v2622_v37 = vld [vmem:[#allocation7 + $0x58] sm:$0xff] }
 0x61b   : > { %4274 = vmatprep.mubr.msk.bf16.mxu1 %vm1859_vm4, %v2631_v51  ;;  %v2384_v48 = vmul.f32 1.442695, %v2357_v27  ;;  %v2249_v51 = vld [vmem:[#allocation6 + $0x78] sm:$0xff]  ;;  %v2388_v18 = vmul.f32 1.442695, %v2359_v49  ;;  %v2623_v49 = vld [vmem:[#allocation7 + $0x60] sm:$0xff] }
 0x61c   : > { %4275 = vmatmul.mubr.msk.bf16.gmra.mrb[24].mxu1 %vm1859_vm4, %v2632_v47  ;;  %v4673_v47 = vpop.eup %4672  ;;  %2491 = vst [vmem:[%s5088_s30 + $0x8] sm:$0xff] %v2475_v40  ;;  %v2361_v25 = vmul.f32 %v2344_v29, %v2249_v51  ;;  %v2626_v51 = vld [vmem:[#allocation7 + $0x78] sm:$0xff] }
 0x61d   : > { %v4262_v58 = vpop.f32.mrb[12].mxu1  ;;  %v2412_v50 = vpop.permute.xlu0 %2411  ;;  %v2488_v54 = vmul.f32 %v4673_v47, %v2467_v53  ;;  %4680 = vpow2.f32 %v2384_v48  ;;  %v2625_v48 = vld [vmem:[#allocation7 + $0x70] sm:$0xff] }
 0x61e   : > { %v2596_v4 = vpop.f32.mrb[13].mxu1  ;;  %v2477_v33 = vmul.f32 %v4671_v42, %v2412_v50  ;;  %v4675_v14 = vpop.eup %4674  ;;  %4682 = vpow2.f32 %v2388_v18  ;;  %v2392_v28 = vmul.f32 1.442695, %v2361_v25 }
 0x61f   : > { %v4263_v41 = vpop.f32.mrb[14].mxu1  ;;  %2504 = vst [vmem:[%s5088_s30 + $0x70] sm:$0xff] %v2488_v54 }
 0x620   : > { %v2634_v0 = vpack.c.bf16 %v4263_v41, %v4262_v58  ;;  %v2599_v52 = vpop.f32.mrb[15].mxu1  ;;  %2493 = vst [vmem:[%s5088_s30 + $0x18] sm:$0xff] %v2477_v33  ;;  %v4677_v56 = vpop.eup %4676  ;;  %4684 = vpow2.f32 %v2392_v28  ;;  %v6151_v28 = vld [vmem:[%s6926_s4] ss:$0 sm:$0xff] (!%p4061_p0) }
 0x621   : > { %v2633_v16 = vpack.c.bf16 %v2599_v52, %v2596_v4  ;;  %v2422_v23 = vpop.permute.xlu0 %2421 }
 0x622   : > { %v2479_v31 = vmul.f32 %v4675_v14, %v2422_v23  ;;  %v2624_v14 = vld [vmem:[#allocation7 + $0x68] sm:$0xff] }
 0x623   : > { %4278 = vmatprep.mubr.msk.bf16.mxu1 %vm1859_vm4, %v2633_v16  ;;  %v2611_v16 = vld [vmem:[#allocation7] sm:$0xff] }
 0x624   : > { %4279 = vmatmul.mubr.msk.bf16.gmra.mrb[28].mxu1 %vm1859_vm4, %v2634_v0  ;;  %2495 = vst [vmem:[%s5088_s30 + $0x28] sm:$0xff] %v2479_v31  ;;  %v4679_v4 = vpop.eup %4678 }
 0x625   : > { %v2432_v58 = vpop.permute.xlu0 %2431 }
 0x626   : > { %v2481_v62 = vmul.f32 %v4677_v56, %v2432_v58  ;;  %v2839_v58 = vld [vmem:[%s5074_s27] sm:$0xff] (!%p4061_p0) }
 0x627   : > { %v4681_v43 = vpop.eup %4680 }
 0x628   : > { %2497 = vst [vmem:[%s5088_s30 + $0x38] sm:$0xff] %v2481_v62  ;;  %v4683_v6 = vpop.eup %4682 }
 0x629   : > { %v2442_v57 = vpop.permute.xlu0 %2441 }
 0x62a   : > { %v2483_v44 = vmul.f32 %v4679_v4, %v2442_v57  ;;  %v4685_v0 = vpop.eup %4684  ;;  %v2841_v57 = vld [vmem:[%s5074_s27 + $0x10] sm:$0xff] (!%p4061_p0) }
 0x62c   : > { %2499 = vst [vmem:[%s5088_s30 + $0x48] sm:$0xff] %v2483_v44 }
 0x62d   : > { %v2452_v41 = vpop.permute.xlu0 %2451 }
 0x62e   : > { %v2485_v5 = vmul.f32 %v4681_v43, %v2452_v41 }
 0x630   : > { %2501 = vst [vmem:[%s5088_s30 + $0x58] sm:$0xff] %v2485_v5  ;;  %v2840_v5 = vld [vmem:[%s5074_s27 + $0x8] sm:$0xff] (!%p4061_p0) }
 0x631   : > { %v2462_v2 = vpop.permute.xlu0 %2461 }
 0x632   : > { %v2487_v32 = vmul.f32 %v4683_v6, %v2462_v2  ;;  %v2842_v2 = vld [vmem:[%s5074_s27 + $0x18] sm:$0xff] (!%p4061_p0) }
 0x634   : > { %2503 = vst [vmem:[%s5088_s30 + $0x68] sm:$0xff] %v2487_v32 }
 0x635   : > { %v2472_v52 = vpop.permute.xlu0 %2471 }
 0x636   : > { %v2489_v60 = vmul.f32 %v4685_v0, %v2472_v52 }
 0x638   : > { %2505 = vst [vmem:[%s5088_s30 + $0x78] sm:$0xff] %v2489_v60 }
 0x6df   : > { %v4268_v17 = vpop.f32.mrb[16].mxu1 }
 0x6e0   : > { %v2765_v21 = vadd.f32 %v4268_v17, %v2613_v15  ;;  %v2700_v63 = vpop.f32.mrb[17].mxu1 }
 0x6e1   : > { %v2763_v55 = vadd.f32 %v2700_v63, %v2611_v16  ;;  %v4269_v45 = vpop.f32.mrb[18].mxu1 }
 0x6e2   : > { %2782 = vst.msk [vmem:[#allocation7 + $0x10] sm:$0xff] %vm2779_vm7, %v2765_v21  ;;  %v2766_v22 = vadd.f32 %v4269_v45, %v2614_v19  ;;  %v2703_v24 = vpop.f32.mrb[19].mxu1  ;;  %v2843_v19 = vld [vmem:[%s5074_s27 + $0x20] sm:$0xff] (!%p4061_p0)  ;;  %v2844_v45 = vld [vmem:[%s5074_s27 + $0x28] sm:$0xff] (!%p4061_p0) }
 0x6e3   : > { %2780 = vst.msk [vmem:[#allocation7] sm:$0xff] %vm2779_vm7, %v2763_v55  ;;  %v2764_v26 = vadd.f32 %v2703_v24, %v2612_v20 }
 0x6e4   : > { %2783 = vst.msk [vmem:[#allocation7 + $0x18] sm:$0xff] %vm2779_vm7, %v2766_v22 }
 0x6e5   : > { %2781 = vst.msk [vmem:[#allocation7 + $0x8] sm:$0xff] %vm2779_vm7, %v2764_v26 }
 0x6e7   : > { %v4272_v30 = vpop.f32.mrb[20].mxu1 }
 0x6e8   : > { %v2769_v34 = vadd.f32 %v4272_v30, %v2617_v1  ;;  %v2716_v3 = vpop.f32.mrb[21].mxu1 }
 0x6e9   : > { %v2767_v8 = vadd.f32 %v2716_v3, %v2615_v59  ;;  %v4273_v35 = vpop.f32.mrb[22].mxu1  ;;  %v2802_v4 = vld [vmem:[#allocation7 + $0x10] sm:$0xff] (!%p4061_p0) }
 0x6ea   : > { %2786 = vst.msk [vmem:[#allocation7 + $0x30] sm:$0xff] %vm2779_vm7, %v2769_v34  ;;  %v2770_v29 = vadd.f32 %v4273_v35, %v2618_v7  ;;  %v2719_v61 = vpop.f32.mrb[23].mxu1  ;;  %v2800_v56 = vld [vmem:[#allocation7] sm:$0xff] (!%p4061_p0)  ;;  %v2825_v43 = vadd.f32 (!%p4061_p0), %v6151_v28, %v2802_v4  ;;  %v2845_v3 = vld [vmem:[%s5074_s27 + $0x30] sm:$0xff] (!%p4061_p0) }
 0x6eb   : > { %2784 = vst.msk [vmem:[#allocation7 + $0x20] sm:$0xff] %vm2779_vm7, %v2767_v8  ;;  %v2768_v12 = vadd.f32 %v2719_v61, %v2616_v9  ;;  %v2823_v62 = vadd.f32 (!%p4061_p0), %v6151_v28, %v2800_v56  ;;  %v2803_v6 = vld [vmem:[#allocation7 + $0x18] sm:$0xff] (!%p4061_p0) }
 0x6ec   : > { %2787 = vst.msk [vmem:[#allocation7 + $0x38] sm:$0xff] %vm2779_vm7, %v2770_v29  ;;  %v2801_v44 = vld [vmem:[#allocation7 + $0x8] sm:$0xff] (!%p4061_p0)  ;;  %v2826_v0 = vadd.f32 (!%p4061_p0), %v6151_v28, %v2803_v6  ;;  %v6163_v15 = vadd.f32 (!%p4061_p0), %v2841_v57, %v2825_v43  ;;  %v2846_v9 = vld [vmem:[%s5074_s27 + $0x38] sm:$0xff] (!%p4061_p0)  ;;  %v2847_v29 = vld [vmem:[%s5074_s27 + $0x40] sm:$0xff] (!%p4061_p0) }
 0x6ed   : > { %2785 = vst.msk [vmem:[#allocation7 + $0x28] sm:$0xff] %vm2779_vm7, %v2768_v12  ;;  %v2824_v41 = vadd.f32 (!%p4061_p0), %v6151_v28, %v2801_v44  ;;  %v6160_v32 = vadd.f32 (!%p4061_p0), %v2839_v58, %v2823_v62  ;;  %v2852_v58 = vld [vmem:[%s5074_s27 + $0x68] sm:$0xff] (!%p4061_p0) }
 0x6ee   : > { %v6172_v55 = vadd.f32 (!%p4061_p0), %v2842_v2, %v2826_v0  ;;  %v2879_v24 = vsel (!%p4061_p0), %vm2779_vm7, %v6163_v15, 0.0  ;;  %v2854_v2 = vld [vmem:[%s5074_s27 + $0x78] sm:$0xff] (!%p4061_p0) }
 0x6ef   : > { %v4276_v11 = vpop.f32.mrb[24].mxu1  ;;  %v6165_v16 = vadd.f32 (!%p4061_p0), %v2840_v5, %v2824_v41  ;;  %v2873_v20 = vsel (!%p4061_p0), %vm2779_vm7, %v6160_v32, 0.0  ;;  %2880 = vadd.xlane.f32.xlu1 (!%p4061_p0), %v2879_v24  ;;  %v2853_v5 = vld [vmem:[%s5074_s27 + $0x70] sm:$0xff] (!%p4061_p0) }
 0x6f0   : > { %v2773_v27 = vadd.f32 %v4276_v11, %v2621_v10  ;;  %v2732_v38 = vpop.f32.mrb[25].mxu1  ;;  %2874 = vadd.xlane.f32.xlu0 (!%p4061_p0), %v2873_v20  ;;  %v2882_v7 = vsel (!%p4061_p0), %vm2779_vm7, %v6172_v55, 0.0  ;;  %v2848_v11 = vld [vmem:[%s5074_s27 + $0x48] sm:$0xff] (!%p4061_p0) }
 0x6f1   : > { %v2771_v40 = vadd.f32 %v2732_v38, %v2619_v36  ;;  %v4277_v13 = vpop.f32.mrb[26].mxu1  ;;  %v2806_v63 = vld [vmem:[#allocation7 + $0x30] sm:$0xff] (!%p4061_p0)  ;;  %v2876_v26 = vsel (!%p4061_p0), %vm2779_vm7, %v6165_v16, 0.0 }
 0x6f2   : > { %2790 = vst.msk [vmem:[#allocation7 + $0x50] sm:$0xff] %vm2779_vm7, %v2773_v27  ;;  %v2774_v42 = vadd.f32 %v4277_v13, %v2622_v37  ;;  %v2735_v46 = vpop.f32.mrb[27].mxu1  ;;  %v2804_v52 = vld [vmem:[#allocation7 + $0x20] sm:$0xff] (!%p4061_p0)  ;;  %v2829_v59 = vadd.f32 (!%p4061_p0), %v6151_v28, %v2806_v63 }
 0x6f3   : > { %2788 = vst.msk [vmem:[#allocation7 + $0x40] sm:$0xff] %vm2779_vm7, %v2771_v40  ;;  %v2772_v47 = vadd.f32 %v2735_v46, %v2620_v39  ;;  %v2827_v17 = vadd.f32 (!%p4061_p0), %v6151_v28, %v2804_v52  ;;  %v2807_v22 = vld [vmem:[#allocation7 + $0x38] sm:$0xff] (!%p4061_p0)  ;;  %2883 = vadd.xlane.f32.xlu1 (!%p4061_p0), %v2882_v7  ;;  %v2849_v40 = vld [vmem:[%s5074_s27 + $0x50] sm:$0xff] (!%p4061_p0) }
 0x6f4   : > { %2791 = vst.msk [vmem:[#allocation7 + $0x58] sm:$0xff] %vm2779_vm7, %v2774_v42  ;;  %v2805_v60 = vld [vmem:[#allocation7 + $0x28] sm:$0xff] (!%p4061_p0)  ;;  %v2830_v30 = vadd.f32 (!%p4061_p0), %v6151_v28, %v2807_v22  ;;  %2877 = vadd.xlane.f32.xlu0 (!%p4061_p0), %v2876_v26  ;;  %v6192_v12 = vadd.f32 (!%p4061_p0), %v2845_v3, %v2829_v59 }
 0x6f5   : > { %2789 = vst.msk [vmem:[#allocation7 + $0x48] sm:$0xff] %vm2779_vm7, %v2772_v47  ;;  %v2828_v21 = vadd.f32 (!%p4061_p0), %v6151_v28, %v2805_v60  ;;  %v6179_v1 = vadd.f32 (!%p4061_p0), %v2843_v19, %v2827_v17 }
 0x6f6   : > { %v6194_v10 = vadd.f32 (!%p4061_p0), %v2846_v9, %v2830_v30  ;;  %v2891_v42 = vsel (!%p4061_p0), %vm2779_vm7, %v6192_v12, 0.0 }
 0x6f7   : > { %v4280_v50 = vpop.f32.mrb[28].mxu1  ;;  %2799 = sbr.rel (%p4061_p0) target bundleno = 2881 (0xb41), region = 80  ;;  %v6185_v34 = vadd.f32 (!%p4061_p0), %v2844_v45, %v2828_v21  ;;  %v2885_v61 = vsel (!%p4061_p0), %vm2779_vm7, %v6179_v1, 0.0 }
 0x6f8   : > { %v2777_v33 = vadd.f32 %v4280_v50, %v2625_v48  ;;  %v2748_v53 = vpop.f32.mrb[29].mxu1  ;;  %2886 = vadd.xlane.f32.xlu0 (!%p4061_p0), %v2885_v61  ;;  %v2894_v46 = vsel (!%p4061_p0), %vm2779_vm7, %v6194_v10, 0.0 }
 0x6f9   : > { %v2775_v54 = vadd.f32 %v2748_v53, %v2623_v49  ;;  %v4281_v18 = vpop.f32.mrb[30].mxu1  ;;  %v2888_v37 = vsel (!%p4061_p0), %vm2779_vm7, %v6185_v34, 0.0  ;;  %v2810_v38 = vld [vmem:[#allocation7 + $0x50] sm:$0xff] (!%p4061_p0)  ;;  %v2850_v49 = vld [vmem:[%s5074_s27 + $0x58] sm:$0xff] (!%p4061_p0) }
 0x6fa   : > { %2794 = vst.msk [vmem:[#allocation7 + $0x70] sm:$0xff] %vm2779_vm7, %v2777_v33  ;;  %v2778_v25 = vadd.f32 %v4281_v18, %v2626_v51  ;;  %v2751_v23 = vpop.f32.mrb[31].mxu1  ;;  %v2808_v8 = vld [vmem:[#allocation7 + $0x40] sm:$0xff] (!%p4061_p0)  ;;  %2889 = vadd.xlane.f32.xlu1 (!%p4061_p0), %v2888_v37  ;;  %v2833_v48 = vadd.f32 (!%p4061_p0), %v6151_v28, %v2810_v38 }
 0x6fb   : > { %2792 = vst.msk [vmem:[#allocation7 + $0x60] sm:$0xff] %vm2779_vm7, %v2775_v54  ;;  %v2776_v31 = vadd.f32 %v2751_v23, %v2624_v14  ;;  %v2831_v36 = vadd.f32 (!%p4061_p0), %v6151_v28, %v2808_v8  ;;  %v2811_v39 = vld [vmem:[#allocation7 + $0x58] sm:$0xff] (!%p4061_p0)  ;;  %v2851_v23 = vld [vmem:[%s5074_s27 + $0x60] sm:$0xff] (!%p4061_p0) }
 0x6fc   : > { %2795 = vst.msk [vmem:[#allocation7 + $0x78] sm:$0xff] %vm2779_vm7, %v2778_v25  ;;  %v2809_v35 = vld [vmem:[#allocation7 + $0x48] sm:$0xff] (!%p4061_p0)  ;;  %v2834_v51 = vadd.f32 (!%p4061_p0), %v6151_v28, %v2811_v39  ;;  %2892 = vadd.xlane.f32.xlu0 (!%p4061_p0), %v2891_v42  ;;  %v6215_v14 = vadd.f32 (!%p4061_p0), %v2849_v40, %v2833_v48 }
 0x6fd   : > { %2793 = vst.msk [vmem:[#allocation7 + $0x68] sm:$0xff] %vm2779_vm7, %v2776_v31  ;;  %v2832_v27 = vadd.f32 (!%p4061_p0), %v6151_v28, %v2809_v35  ;;  %v6206_v47 = vadd.f32 (!%p4061_p0), %v2847_v29, %v2831_v36 }
 0x6fe   : > { %2895 = vadd.xlane.f32.xlu1 %v2894_v46  ;;  %v6220_v25 = vadd.f32 %v2850_v49, %v2834_v51  ;;  %v2903_v4 = vsel %vm2779_vm7, %v6215_v14, 0.0 }
 0x6ff   : > { %v6210_v50 = vadd.f32 %v2848_v11, %v2832_v27  ;;  %v2897_v53 = vsel %vm2779_vm7, %v6206_v47, 0.0 }
 0x700   : > { %2898 = vadd.xlane.f32.xlu0 %v2897_v53  ;;  %v2906_v43 = vsel %vm2779_vm7, %v6220_v25, 0.0 }
 0x701   : > { %v2900_v18 = vsel %vm2779_vm7, %v6210_v50, 0.0  ;;  %v2814_v56 = vld [vmem:[#allocation7 + $0x70] sm:$0xff] }
 0x702   : > { %v2812_v13 = vld [vmem:[#allocation7 + $0x60] sm:$0xff]  ;;  %2901 = vadd.xlane.f32.xlu1 %v2900_v18  ;;  %v2837_v44 = vadd.f32 %v6151_v28, %v2814_v56 }
 0x703   : > { %v2835_v54 = vadd.f32 %v6151_v28, %v2812_v13  ;;  %v2815_v62 = vld [vmem:[#allocation7 + $0x78] sm:$0xff] }
 0x704   : > { %v2813_v33 = vld [vmem:[#allocation7 + $0x68] sm:$0xff]  ;;  %v2838_v6 = vadd.f32 %v6151_v28, %v2815_v62  ;;  %2904 = vadd.xlane.f32.xlu0 %v2903_v4  ;;  %v6239_v52 = vadd.f32 %v2853_v5, %v2837_v44 }
 0x705   : > { %v2836_v31 = vadd.f32 %v6151_v28, %v2813_v33  ;;  %v6227_v57 = vadd.f32 %v2851_v23, %v2835_v54 }
 0x706   : > { %2907 = vadd.xlane.f32.xlu1 %v2906_v43  ;;  %v6243_v17 = vadd.f32 %v2854_v2, %v2838_v6  ;;  %v2915_v19 = vsel %vm2779_vm7, %v6239_v52, 0.0 }
 0x707   : > { %v6232_v41 = vadd.f32 %v2852_v58, %v2836_v31  ;;  %v2909_v0 = vsel %vm2779_vm7, %v6227_v57, 0.0 }
 0x708   : > { %2910 = vadd.xlane.f32.xlu0 %v2909_v0  ;;  %v2918_v28 = vsel %vm2779_vm7, %v6243_v17, 0.0 }
 0x709   : > { %v2912_v60 = vsel %vm2779_vm7, %v6232_v41, 0.0 }
 0x70a   : > { %2913 = vadd.xlane.f32.xlu1 %v2912_v60 }
 0x70c   : > { %2916 = vadd.xlane.f32.xlu0 %v2915_v19 }
 0x70e   : > { %2919 = vadd.xlane.f32.xlu1 %v2918_v28 }
 0x77c   : > { %v2881_v20 = vpop.xlane.xlu1 %2880 }
 0x77d   : > { %v2875_v21 = vpop.xlane.xlu0 %2874  ;;  %v2924_v45 = vmul.f32 0.03125, %v2881_v20 }
 0x77e   : > { %v2922_v63 = vmul.f32 0.03125, %v2875_v21 }
 0x77f   : > { %v6253_v24 = vsub.f32 %v6163_v15, %v2924_v45 }
 0x780   : > { %v6250_v22 = vsub.f32 %v6160_v32, %v2922_v63  ;;  %v2884_v30 = vpop.xlane.xlu1 %2883 }
 0x781   : > { %v2878_v26 = vpop.xlane.xlu0 %2877  ;;  %v2925_v3 = vmul.f32 0.03125, %v2884_v30  ;;  %v2956_v9 = vmul.f32 %v6253_v24, %v6253_v24 }
 0x782   : > { %v2923_v59 = vmul.f32 0.03125, %v2878_v26  ;;  %v2954_v7 = vmul.f32 %v6250_v22, %v6250_v22 }
 0x783   : > { %v6264_v32 = vsub.f32 %v6172_v55, %v2925_v3  ;;  %v2976_v36 = vsel %vm2779_vm7, %v2956_v9, 0.0 }
 0x784   : > { %v6260_v8 = vsub.f32 %v6165_v16, %v2923_v59  ;;  %v2970_v35 = vsel %vm2779_vm7, %v2954_v7, 0.0 }
 0x785   : > { %2971 = vadd.xlane.f32.xlu0 %v2970_v35  ;;  %v2887_v15 = vpop.xlane.xlu0 %2886  ;;  %v2957_v27 = vmul.f32 %v6264_v32, %v6264_v32 }
 0x786   : > { %v2926_v29 = vmul.f32 0.03125, %v2887_v15  ;;  %v2955_v11 = vmul.f32 %v6260_v8, %v6260_v8 }
 0x787   : > { %v2890_v61 = vpop.xlane.xlu1 %2889  ;;  %v2979_v42 = vsel %vm2779_vm7, %v2957_v27, 0.0  ;;  %v4687_v27 = vld [vmem:[%s6929_s7 + $0x8] sm:$0xff]  }
 0x788   : > { %v2927_v37 = vmul.f32 0.03125, %v2890_v61  ;;  %v6272_v16 = vsub.f32 %v6179_v1, %v2926_v29  ;;  %v2973_v38 = vsel %vm2779_vm7, %v2955_v11, 0.0 }
 0x789   : > { %2977 = vadd.xlane.f32.xlu0 %v2976_v36  ;;  %2974 = vadd.xlane.f32.xlu1 %v2973_v38  ;;  %v2893_v39 = vpop.xlane.xlu0 %2892  ;;  %v6354_v38 = vld [vmem:[%s6931_s9] sm:$0xff]  }
 0x78a   : > { %v6276_v55 = vsub.f32 %v6185_v34, %v2927_v37  ;;  %v2928_v40 = vmul.f32 0.03125, %v2893_v39  ;;  %v2958_v46 = vmul.f32 %v6272_v16, %v6272_v16  ;;  %v6360_v39 = vld [vmem:[%s6931_s9 + $0x8] sm:$0xff]   ;;  %4338 = vmatprep.subr.bf16.mxu1 %v6354_v38 }
 0x78b   : > { %v2896_v13 = vpop.xlane.xlu1 %2895  ;;  %4346 = vmatpush3.bf16.msra.mxu1 %v6354_v38 }
 0x78c   : > { %v2929_v48 = vmul.f32 0.03125, %v2896_v13  ;;  %v2959_v1 = vmul.f32 %v6276_v55, %v6276_v55  ;;  %v6284_v49 = vsub.f32 %v6192_v12, %v2928_v40  ;;  %v2982_v34 = vsel %vm2779_vm7, %v2958_v46, 0.0  ;;  %4339 = vmatprep.subr.bf16.mxu1 %v6360_v39  ;;  %v6368_v40 = vld [vmem:[%s6931_s9 + $0x10] sm:$0xff]   ;;  %v6375_v13 = vld [vmem:[%s6931_s9 + $0x18] sm:$0xff]   ;;  %v6389_v46 = vld [vmem:[%s6931_s9 + $0x28] sm:$0xff]  }
 0x78d   : > { %2980 = vadd.xlane.f32.xlu1 %v2979_v42  ;;  %2983 = vadd.xlane.f32.xlu0 %v2982_v34  ;;  %v2899_v33 = vpop.xlane.xlu0 %2898  ;;  %v6382_v42 = vld [vmem:[%s6931_s9 + $0x20] sm:$0xff]  }
 0x78e   : > { %v6288_v51 = vsub.f32 %v6194_v10, %v2929_v48  ;;  %v2930_v53 = vmul.f32 0.03125, %v2899_v33  ;;  %v2985_v18 = vsel %vm2779_vm7, %v2959_v1, 0.0  ;;  %v2960_v23 = vmul.f32 %v6284_v49, %v6284_v49 }
 0x78f   : > { %v2902_v54 = vpop.xlane.xlu1 %2901  ;;  %4347 = vmatpush3.bf16.msra.mxu1 %v6360_v39 }
 0x790   : > { %v2931_v31 = vmul.f32 0.03125, %v2902_v54  ;;  %v2961_v12 = vmul.f32 %v6288_v51, %v6288_v51  ;;  %v6296_v56 = vsub.f32 %v6206_v47, %v2930_v53  ;;  %v2988_v10 = vsel %vm2779_vm7, %v2960_v23, 0.0  ;;  %4340 = vmatprep.subr.bf16.mxu1 %v6368_v40 }
 0x791   : > { %2986 = vadd.xlane.f32.xlu1 %v2985_v18  ;;  %2989 = vadd.xlane.f32.xlu0 %v2988_v10  ;;  %v2905_v62 = vpop.xlane.xlu0 %2904 }
 0x792   : > { %v6300_v58 = vsub.f32 %v6210_v50, %v2931_v31  ;;  %v2932_v4 = vmul.f32 0.03125, %v2905_v62  ;;  %v2991_v43 = vsel %vm2779_vm7, %v2961_v12, 0.0  ;;  %v2962_v5 = vmul.f32 %v6296_v56, %v6296_v56 }
 0x793   : > { %v2908_v44 = vpop.xlane.xlu1 %2907  ;;  %4348 = vmatpush3.bf16.msra.mxu1 %v6368_v40 }
 0x794   : > { %v2933_v6 = vmul.f32 0.03125, %v2908_v44  ;;  %v2963_v47 = vmul.f32 %v6300_v58, %v6300_v58  ;;  %v6308_v2 = vsub.f32 %v6215_v14, %v2932_v4  ;;  %v2994_v50 = vsel %vm2779_vm7, %v2962_v5, 0.0  ;;  %4341 = vmatprep.subr.bf16.mxu1 %v6375_v13 }
 0x795   : > { %2992 = vadd.xlane.f32.xlu1 %v2991_v43  ;;  %2995 = vadd.xlane.f32.xlu0 %v2994_v50  ;;  %v2911_v60 = vpop.xlane.xlu0 %2910 }
 0x796   : > { %v6312_v0 = vsub.f32 %v6220_v25, %v2933_v6  ;;  %v2934_v19 = vmul.f32 0.03125, %v2911_v60  ;;  %v2997_v21 = vsel %vm2779_vm7, %v2963_v47, 0.0  ;;  %v2964_v63 = vmul.f32 %v6308_v2, %v6308_v2 }
 0x797   : > { %v2914_v28 = vpop.xlane.xlu1 %2913  ;;  %4349 = vmatpush3.bf16.msra.mxu1 %v6375_v13 }
 0x798   : > { %v2935_v20 = vmul.f32 0.03125, %v2914_v28  ;;  %v2965_v14 = vmul.f32 %v6312_v0, %v6312_v0  ;;  %v6320_v45 = vsub.f32 %v6227_v57, %v2934_v19  ;;  %v3000_v25 = vsel %vm2779_vm7, %v2964_v63, 0.0  ;;  %4342 = vmatprep.subr.bf16.mxu1 %v6382_v42 }
 0x799   : > { %2998 = vadd.xlane.f32.xlu1 %v2997_v21  ;;  %3001 = vadd.xlane.f32.xlu0 %v3000_v25  ;;  %v2917_v59 = vpop.xlane.xlu0 %2916 }
 0x79a   : > { %v6324_v26 = vsub.f32 %v6232_v41, %v2935_v20  ;;  %v2936_v30 = vmul.f32 0.03125, %v2917_v59  ;;  %v3003_v3 = vsel %vm2779_vm7, %v2965_v14, 0.0  ;;  %v2966_v9 = vmul.f32 %v6320_v45, %v6320_v45  ;;  %v6398_v59 = vld [vmem:[%s6927_s5] ss:$0 sm:$0xff] }
 0x79b   : > { %v2920_v7 = vpop.xlane.xlu1 %2919  ;;  %4350 = vmatpush3.bf16.msra.mxu1 %v6382_v42 }
 0x79c   : > { %v2937_v35 = vmul.f32 0.03125, %v2920_v7  ;;  %v2967_v57 = vmul.f32 %v6324_v26, %v6324_v26  ;;  %v6332_v15 = vsub.f32 %v6239_v52, %v2936_v30  ;;  %v3006_v41 = vsel %vm2779_vm7, %v2966_v9, 0.0  ;;  %4343 = vmatprep.subr.bf16.mxu1 %v6389_v46 }
 0x79d   : > { %3004 = vadd.xlane.f32.xlu1 %v3003_v3  ;;  %3007 = vadd.xlane.f32.xlu0 %v3006_v41 }
 0x79e   : > { %v6336_v29 = vsub.f32 %v6243_v17, %v2937_v35  ;;  %v3009_v61 = vsel %vm2779_vm7, %v2967_v57, 0.0  ;;  %v2968_v36 = vmul.f32 %v6332_v15, %v6332_v15  ;;  %v4686_v17 = vld [vmem:[%s6929_s7] sm:$0xff]  }
 0x79f   : > { %4282 = vmatprep.subr.bf16.mxu0 %v4686_v17  ;;  %4351 = vmatpush3.bf16.msra.mxu1 %v6389_v46 }
 0x7a0   : > { %v2969_v11 = vmul.f32 %v6336_v29, %v6336_v29  ;;  %v3012_v37 = vsel %vm2779_vm7, %v2968_v36, 0.0  ;;  %4283 = vmatpush3.bf16.msra.mxu0 %v4686_v17 }
 0x7a1   : > { %3010 = vadd.xlane.f32.xlu1 %v3009_v61  ;;  %3013 = vadd.xlane.f32.xlu0 %v3012_v37 }
 0x7a2   : > { %v3015_v52 = vsel %vm2779_vm7, %v2969_v11, 0.0  ;;  %4284 = vmatprep.subr.bf16.mxu0 %v4687_v27  ;;  %v6405_v11 = vld [vmem:[%s6928_s6] ss:$0 sm:$0xff] }
 0x7a4   : > { %4285 = vmatpush3.bf16.msra.mxu0 %v4687_v27 }
 0x7a5   : > { %3016 = vadd.xlane.f32.xlu1 %v3015_v52  ;;  %4302 = vmatprep.subr.bf16.mxu0 %v6354_v38 }
 0x812   : > { %v2972_v48 = vpop.xlane.xlu0 %2971 }
 0x813   : > { %v3018_v1 = vmul.f32 0.03125, %v2972_v48 }
 0x815   : > { %v3034_v34 = vadd.f32 1e-05, %v3018_v1 }
 0x816   : > { %v2975_v33 = vpop.xlane.xlu1 %2974  ;;  %v2978_v53 = vpop.xlane.xlu0 %2977 }
 0x817   : > { %4696 = vrsqrt.f32 %v3034_v34  ;;  %v3019_v54 = vmul.f32 0.03125, %v2975_v33  ;;  %v3020_v18 = vmul.f32 0.03125, %v2978_v53 }
 0x819   : > { %v3035_v23 = vadd.f32 1e-05, %v3019_v54  ;;  %v3036_v31 = vadd.f32 1e-05, %v3020_v18 }
 0x81a   : > { %v2981_v12 = vpop.xlane.xlu1 %2980  ;;  %v2984_v10 = vpop.xlane.xlu0 %2983 }
 0x81b   : > { %4698 = vrsqrt.f32 %v3035_v23  ;;  %v3021_v62 = vmul.f32 0.03125, %v2981_v12  ;;  %v3022_v4 = vmul.f32 0.03125, %v2984_v10 }
 0x81c   : > { %4700 = vrsqrt.f32 %v3036_v31 }
 0x81d   : > { %v3037_v44 = vadd.f32 1e-05, %v3021_v62  ;;  %v3038_v43 = vadd.f32 1e-05, %v3022_v4 }
 0x81e   : > { %v2987_v5 = vpop.xlane.xlu1 %2986  ;;  %v2990_v6 = vpop.xlane.xlu0 %2989 }
 0x81f   : > { %4702 = vrsqrt.f32 %v3037_v44  ;;  %v3023_v47 = vmul.f32 0.03125, %v2987_v5  ;;  %v3024_v50 = vmul.f32 0.03125, %v2990_v6 }
 0x820   : > { %4704 = vrsqrt.f32 %v3038_v43 }
 0x821   : > { %v4697_v60 = vpop.eup %4696  ;;  %v3039_v19 = vadd.f32 1e-05, %v3023_v47  ;;  %v3040_v28 = vadd.f32 1e-05, %v3024_v50 }
 0x822   : > { %v2993_v21 = vpop.xlane.xlu1 %2992  ;;  %v2996_v63 = vpop.xlane.xlu0 %2995  ;;  %v3066_v20 = vmul.f32 %v4697_v60, %v6250_v22 }
 0x823   : > { %4706 = vrsqrt.f32 %v3039_v19  ;;  %v3025_v14 = vmul.f32 0.03125, %v2993_v21  ;;  %v3026_v25 = vmul.f32 0.03125, %v2996_v63 }
 0x824   : > { %4708 = vrsqrt.f32 %v3040_v28  ;;  %v3088_v61 = vmul.f32 %v6398_v59, %v3066_v20 }
 0x825   : > { %v4699_v30 = vpop.eup %4698  ;;  %v3041_v7 = vadd.f32 1e-05, %v3025_v14  ;;  %v3042_v3 = vadd.f32 1e-05, %v3026_v25 }
 0x826   : > { %v4701_v9 = vpop.eup %4700  ;;  %v2999_v35 = vpop.xlane.xlu1 %2998  ;;  %v3067_v41 = vmul.f32 %v4699_v30, %v6260_v8  ;;  %v6410_v33 = vadd.f32 %v6405_v11, %v3088_v61 }
 0x827   : > { %v3002_v57 = vpop.xlane.xlu0 %3001  ;;  %4710 = vrsqrt.f32 %v3041_v7  ;;  %v3027_v22 = vmul.f32 0.03125, %v2999_v35  ;;  %v3068_v37 = vmul.f32 %v4701_v9, %v6253_v24 }
 0x828   : > { %v3028_v36 = vmul.f32 0.03125, %v3002_v57  ;;  %4712 = vrsqrt.f32 %v3042_v3  ;;  %v3089_v52 = vmul.f32 %v6398_v59, %v3067_v41 }
 0x829   : > { %v4703_v17 = vpop.eup %4702  ;;  %v3043_v27 = vadd.f32 1e-05, %v3027_v22  ;;  %v3090_v18 = vmul.f32 %v6398_v59, %v3068_v37 }
 0x82a   : > { %v3044_v48 = vadd.f32 1e-05, %v3028_v36  ;;  %v4705_v1 = vpop.eup %4704  ;;  %v3005_v8 = vpop.xlane.xlu1 %3004  ;;  %v6413_v53 = vadd.f32 %v6405_v11, %v3089_v52  ;;  %v3069_v54 = vmul.f32 %v4703_v17, %v6264_v32 }
 0x82b   : > { %v3008_v34 = vpop.xlane.xlu0 %3007  ;;  %4714 = vrsqrt.f32 %v3043_v27  ;;  %v3029_v24 = vmul.f32 0.03125, %v3005_v8  ;;  %v3070_v10 = vmul.f32 %v4705_v1, %v6272_v16  ;;  %v6423_v6 = vadd.f32 %v6405_v11, %v3090_v18 }
 0x82c   : > { %v3030_v23 = vmul.f32 0.03125, %v3008_v34  ;;  %4716 = vrsqrt.f32 %v3044_v48  ;;  %v3126_v31 = vpack.c.bf16 %v6413_v53, %v6410_v33  ;;  %v3091_v12 = vmul.f32 %v6398_v59, %v3069_v54 }
 0x82d   : > { %v4707_v62 = vpop.eup %4706  ;;  %v3045_v4 = vadd.f32 1e-05, %v3029_v24  ;;  %v3092_v60 = vmul.f32 %v6398_v59, %v3070_v10 }
 0x82e   : > { %v3046_v44 = vadd.f32 1e-05, %v3030_v23  ;;  %v4709_v43 = vpop.eup %4708  ;;  %v3011_v5 = vpop.xlane.xlu1 %3010  ;;  %4286 = vmatprep.mubr.msk.bf16.mxu0 %vm2779_vm7, %v3126_v31  ;;  %v6426_v47 = vadd.f32 %v6405_v11, %v3091_v12  ;;  %v3071_v50 = vmul.f32 %v4707_v62, %v6276_v55 }
 0x82f   : > { %v3014_v32 = vpop.xlane.xlu0 %3013  ;;  %4718 = vrsqrt.f32 %v3045_v4  ;;  %v3031_v16 = vmul.f32 0.03125, %v3011_v5  ;;  %v3072_v28 = vmul.f32 %v4709_v43, %v6284_v49  ;;  %v6436_v55 = vadd.f32 %v6405_v11, %v3092_v60 }
 0x830   : > { %v3032_v19 = vmul.f32 0.03125, %v3014_v32  ;;  %4720 = vrsqrt.f32 %v3046_v44  ;;  %v3127_v21 = vpack.c.bf16 %v6426_v47, %v6423_v6  ;;  %v3093_v63 = vmul.f32 %v6398_v59, %v3071_v50 }
 0x831   : > { %v4711_v20 = vpop.eup %4710  ;;  %v3047_v14 = vadd.f32 1e-05, %v3031_v16  ;;  %v3094_v9 = vmul.f32 %v6398_v59, %v3072_v28 }
 0x832   : > { %v3048_v25 = vadd.f32 1e-05, %v3032_v19  ;;  %v4713_v30 = vpop.eup %4712  ;;  %v3017_v7 = vpop.xlane.xlu1 %3016  ;;  %4287 = vmatmul.mubr.msk.bf16.vlgmr.msra.gmra.mrb[0].mxu0 %vm2779_vm7, %v3127_v21  ;;  %v6439_v3 = vadd.f32 %v6405_v11, %v3093_v63  ;;  %v3073_v49 = vmul.f32 %v4711_v20, %v6288_v51 }
 0x833   : > { %4722 = vrsqrt.f32 %v3047_v14  ;;  %v3033_v35 = vmul.f32 0.03125, %v3017_v7  ;;  %v3074_v57 = vmul.f32 %v4713_v30, %v6296_v56  ;;  %4303 = vmatpush3.bf16.msra.mxu0 %v6354_v38  ;;  %v6451_v51 = vadd.f32 %v6405_v11, %v3094_v9 }
 0x834   : > { %4724 = vrsqrt.f32 %v3048_v25  ;;  %v3128_v41 = vpack.c.bf16 %v6439_v3, %v6436_v55  ;;  %v3095_v61 = vmul.f32 %v6398_v59, %v3073_v49  ;;  %4304 = vmatprep.subr.bf16.mxu0 %v6360_v39 }
 0x835   : > { %v4715_v22 = vpop.eup %4714  ;;  %v3049_v36 = vadd.f32 1e-05, %v3033_v35  ;;  %v3096_v52 = vmul.f32 %v6398_v59, %v3074_v57 }
 0x836   : > { %v4717_v37 = vpop.eup %4716  ;;  %4290 = vmatprep.mubr.msk.bf16.mxu0 %vm2779_vm7, %v3128_v41  ;;  %v6454_v56 = vadd.f32 %v6405_v11, %v3095_v61  ;;  %v3075_v38 = vmul.f32 %v4715_v22, %v6300_v58 }
 0x837   : > { %4726 = vrsqrt.f32 %v3049_v36  ;;  %v3076_v17 = vmul.f32 %v4717_v37, %v6308_v2  ;;  %4305 = vmatpush3.bf16.msra.mxu0 %v6360_v39  ;;  %v6466_v58 = vadd.f32 %v6405_v11, %v3096_v52 }
 0x838   : > { %v3129_v27 = vpack.c.bf16 %v6454_v56, %v6451_v51  ;;  %v3097_v48 = vmul.f32 %v6398_v59, %v3075_v38  ;;  %4306 = vmatprep.subr.bf16.mxu0 %v6368_v40 }
 0x839   : > { %v4719_v1 = vpop.eup %4718  ;;  %v3098_v39 = vmul.f32 %v6398_v59, %v3076_v17 }
 0x83a   : > { %v4721_v8 = vpop.eup %4720  ;;  %4291 = vmatmul.mubr.msk.bf16.gmra.mrb[4].mxu0 %vm2779_vm7, %v3129_v27  ;;  %v6469_v34 = vadd.f32 %v6405_v11, %v3097_v48  ;;  %v3077_v2 = vmul.f32 %v4719_v1, %v6312_v0 }
 0x83b   : > { %v3078_v54 = vmul.f32 %v4721_v8, %v6320_v45  ;;  %4307 = vmatpush3.bf16.msra.mxu0 %v6368_v40  ;;  %v6481_v12 = vadd.f32 %v6405_v11, %v3098_v39 }
 0x83c   : > { %v3130_v18 = vpack.c.bf16 %v6469_v34, %v6466_v58  ;;  %v3099_v24 = vmul.f32 %v6398_v59, %v3077_v2  ;;  %4308 = vmatprep.subr.bf16.mxu0 %v6375_v13 }
 0x83d   : > { %v4723_v23 = vpop.eup %4722  ;;  %v3100_v40 = vmul.f32 %v6398_v59, %v3078_v54 }
 0x83e   : > { %v4725_v31 = vpop.eup %4724  ;;  %4294 = vmatprep.mubr.msk.bf16.mxu0 %vm2779_vm7, %v3130_v18  ;;  %v6484_v0 = vadd.f32 %v6405_v11, %v3099_v24  ;;  %v3079_v45 = vmul.f32 %v4723_v23, %v6324_v26 }
 0x83f   : > { %v3080_v10 = vmul.f32 %v4725_v31, %v6332_v15  ;;  %4309 = vmatpush3.bf16.msra.mxu0 %v6375_v13  ;;  %v6496_v43 = vadd.f32 %v6405_v11, %v3100_v40 }
 0x840   : > { %v3131_v62 = vpack.c.bf16 %v6484_v0, %v6481_v12  ;;  %v3101_v4 = vmul.f32 %v6398_v59, %v3079_v45  ;;  %4310 = vmatprep.subr.bf16.mxu0 %v6382_v42 }
 0x841   : > { %v4727_v44 = vpop.eup %4726  ;;  %v3102_v13 = vmul.f32 %v6398_v59, %v3080_v10 }
 0x842   : > { %4295 = vmatmul.mubr.msk.bf16.gmra.mrb[8].mxu0 %vm2779_vm7, %v3131_v62  ;;  %v6499_v26 = vadd.f32 %v6405_v11, %v3101_v4  ;;  %v3081_v15 = vmul.f32 %v4727_v44, %v6336_v29 }
 0x843   : > { %4311 = vmatpush3.bf16.msra.mxu0 %v6382_v42  ;;  %v6510_v50 = vadd.f32 %v6405_v11, %v3102_v13  ;;  %v4694_v42 = vld [vmem:[%s6931_s9 + $0x30] sm:$0xff]  }
 0x844   : > { %v3132_v5 = vpack.c.bf16 %v6499_v26, %v6496_v43  ;;  %v3103_v32 = vmul.f32 %v6398_v59, %v3081_v15  ;;  %4312 = vmatprep.subr.bf16.mxu0 %v6389_v46  ;;  %4344 = vmatprep.subr.bf16.mxu1 %v4694_v42  ;;  %v4695_v59 = vld [vmem:[%s6931_s9 + $0x38] sm:$0xff]  }
 0x845   : > { %4352 = vmatpush3.bf16.msra.mxu1 %v4694_v42 }
 0x846   : > { %4298 = vmatprep.mubr.msk.bf16.mxu0 %vm2779_vm7, %v3132_v5  ;;  %v6513_v60 = vadd.f32 %v6405_v11, %v3103_v32  ;;  %4345 = vmatprep.subr.bf16.mxu1 %v4695_v59 }
 0x847   : > { %4313 = vmatpush3.bf16.msra.mxu0 %v6389_v46  ;;  %v4065_v46 = vld [vmem:[%s6930_s8] ss:$0 sm:$0xff] }
 0x848   : > { %v3133_v29 = vpack.c.bf16 %v6513_v60, %v6510_v50  ;;  %4314 = vmatprep.subr.bf16.mxu0 %v4694_v42 }
 0x849   : > { %4353 = vmatpush3.bf16.msra.mxu1 %v4695_v59 }
 0x84a   : > { %4299 = vmatmul.mubr.msk.bf16.gmra.mrb[12].mxu0 %vm2779_vm7, %v3133_v29 }
 0x84b   : > { %4315 = vmatpush3.bf16.msra.mxu0 %v4694_v42 }
 0x84c   : > { %4316 = vmatprep.subr.bf16.mxu0 %v4695_v59 }
 0x84f   : > { %4317 = vmatpush3.bf16.msra.mxu0 %v4695_v59 }
 0x905   : > { %v4288_v11 = vpop.f32.mrb[0].mxu0 }
 0x906   : > { %v3224_v16 = vadd.f32 %v4288_v11, %v4065_v46  ;;  %v3215_v19 = vpop.f32.mrb[1].mxu0 }
 0x907   : > { %v3216_v28 = vadd.f32 %v4065_v46, %v3215_v19  ;;  %v4289_v21 = vpop.f32.mrb[2].mxu0 }
 0x908   : > { %v3227_v63 = vadd.f32 %v4289_v21, %v4065_v46  ;;  %v3218_v20 = vpop.f32.mrb[3].mxu0  ;;  %v3280_v25 = vmax.f32 %v3224_v16, 0.0 }
 0x909   : > { %v3219_v14 = vadd.f32 %v4065_v46, %v3218_v20  ;;  %v3278_v7 = vmax.f32 %v3216_v28, 0.0 }
 0x90a   : > { %v3281_v30 = vmax.f32 %v3227_v63, 0.0 }
 0x90b   : > { %v3279_v49 = vmax.f32 %v3219_v14, 0.0 }
 0x90c   : > { %v3295_v9 = vpack.c.bf16 %v3281_v30, %v3280_v25  ;;  %v6531_v30 = vld [vmem:[%s6932_s10] ss:$0 sm:$0xff] }
 0x90d   : > { %v3294_v35 = vpack.c.bf16 %v3279_v49, %v3278_v7  ;;  %v4292_v57 = vpop.f32.mrb[4].mxu0 }
 0x90e   : > { %v3240_v41 = vadd.f32 %v4292_v57, %v4065_v46  ;;  %v3231_v61 = vpop.f32.mrb[5].mxu0 }
 0x90f   : > { %v3232_v22 = vadd.f32 %v4065_v46, %v3231_v61  ;;  %v4293_v36 = vpop.f32.mrb[6].mxu0  ;;  %4318 = vmatprep.mubr.bf16.mxu0 %v3294_v35 }
 0x910   : > { %v3243_v37 = vadd.f32 %v4293_v36, %v4065_v46  ;;  %v3234_v38 = vpop.f32.mrb[7].mxu0  ;;  %4319 = vmatmul.mubr.bf16.vlgmr.msra.gmra.mrb[16].mxu0 %v3295_v9  ;;  %v3284_v17 = vmax.f32 %v3240_v41, 0.0 }
 0x911   : > { %v3235_v52 = vadd.f32 %v4065_v46, %v3234_v38  ;;  %v3282_v48 = vmax.f32 %v3232_v22, 0.0 }
 0x912   : > { %v3285_v27 = vmax.f32 %v3243_v37, 0.0 }
 0x913   : > { %v3283_v1 = vmax.f32 %v3235_v52, 0.0 }
 0x914   : > { %v3297_v8 = vpack.c.bf16 %v3285_v27, %v3284_v17 }
 0x915   : > { %v4296_v2 = vpop.f32.mrb[8].mxu0  ;;  %v3296_v39 = vpack.c.bf16 %v3283_v1, %v3282_v48 }
 0x916   : > { %v3256_v54 = vadd.f32 %v4296_v2, %v4065_v46  ;;  %v3247_v18 = vpop.f32.mrb[9].mxu0 }
 0x917   : > { %v3248_v24 = vadd.f32 %v4065_v46, %v3247_v18  ;;  %v4297_v23 = vpop.f32.mrb[10].mxu0  ;;  %4322 = vmatprep.mubr.bf16.mxu1 %v3296_v39 }
 0x918   : > { %v3259_v31 = vadd.f32 %v4297_v23, %v4065_v46  ;;  %v3250_v45 = vpop.f32.mrb[11].mxu0  ;;  %4323 = vmatmul.mubr.bf16.vlgmr.msra.gmra.mrb[0].mxu1 %v3297_v8  ;;  %v3288_v10 = vmax.f32 %v3256_v54, 0.0 }
 0x919   : > { %v3251_v40 = vadd.f32 %v4065_v46, %v3250_v45  ;;  %v3286_v4 = vmax.f32 %v3248_v24, 0.0 }
 0x91a   : > { %v3289_v62 = vmax.f32 %v3259_v31, 0.0 }
 0x91b   : > { %v3287_v44 = vmax.f32 %v3251_v40, 0.0 }
 0x91c   : > { %v3299_v15 = vpack.c.bf16 %v3289_v62, %v3288_v10 }
 0x91d   : > { %v3298_v13 = vpack.c.bf16 %v3287_v44, %v3286_v4  ;;  %v4300_v5 = vpop.f32.mrb[12].mxu0 }
 0x91e   : > { %v3272_v32 = vadd.f32 %v4300_v5, %v4065_v46  ;;  %v3263_v29 = vpop.f32.mrb[13].mxu0 }
 0x91f   : > { %v3264_v42 = vadd.f32 %v4065_v46, %v3263_v29  ;;  %v4301_v59 = vpop.f32.mrb[14].mxu0  ;;  %4326 = vmatprep.mubr.bf16.mxu1 %v3298_v13 }
 0x920   : > { %v3275_v11 = vadd.f32 %v4301_v59, %v4065_v46  ;;  %v3266_v16 = vpop.f32.mrb[15].mxu0  ;;  %4327 = vmatmul.mubr.bf16.gmra.mrb[4].mxu1 %v3299_v15  ;;  %v3292_v28 = vmax.f32 %v3272_v32, 0.0 }
 0x921   : > { %v3267_v19 = vadd.f32 %v4065_v46, %v3266_v16  ;;  %v3290_v63 = vmax.f32 %v3264_v42, 0.0 }
 0x922   : > { %v3293_v21 = vmax.f32 %v3275_v11, 0.0 }
 0x923   : > { %v3291_v20 = vmax.f32 %v3267_v19, 0.0 }
 0x924   : > { %v3301_v14 = vpack.c.bf16 %v3293_v21, %v3292_v28 }
 0x925   : > { %v3300_v25 = vpack.c.bf16 %v3291_v20, %v3290_v63 }
 0x927   : > { %4330 = vmatprep.mubr.bf16.mxu1 %v3300_v25 }
 0x928   : > { %4331 = vmatmul.mubr.bf16.gmra.mrb[8].mxu1 %v3301_v14 }
 0x9e3   : > { %v4320_v7 = vpop.f32.mrb[16].mxu0 }
 0x9e4   : > { %v3416_v49 = vadd.f32 %v4320_v7, %v6531_v30  ;;  %v3407_v9 = vpop.f32.mrb[17].mxu0 }
 0x9e5   : > { %v3408_v35 = vadd.f32 %v6531_v30, %v3407_v9  ;;  %v4321_v46 = vpop.f32.mrb[18].mxu0 }
 0x9e6   : > { %v3419_v57 = vadd.f32 %v4321_v46, %v6531_v30  ;;  %v3410_v41 = vpop.f32.mrb[19].mxu0  ;;  %v6537_v61 = vadd.f32 %v3416_v49, %v6423_v6 }
 0x9e7   : > { %v3411_v22 = vadd.f32 %v6531_v30, %v3410_v41  ;;  %v6546_v38 = vadd.f32 %v3408_v35, %v6410_v33 }
 0x9e8   : > { %v3494_v36 = vsel %vm2779_vm7, %v6537_v61, 0.0  ;;  %v6543_v37 = vadd.f32 %v3419_v57, %v6426_v47 }
 0x9e9   : > { %3495 = vadd.xlane.f32.xlu0 %v3494_v36  ;;  %v6551_v17 = vadd.f32 %v3411_v22, %v6413_v53  ;;  %v3488_v1 = vsel %vm2779_vm7, %v6546_v38, 0.0 }
 0x9ea   : > { %v3497_v52 = vsel %vm2779_vm7, %v6543_v37, 0.0 }
 0x9eb   : > { %v4324_v6 = vpop.f32.mrb[0].mxu1  ;;  %3498 = vadd.xlane.f32.xlu1 %v3497_v52  ;;  %v3491_v39 = vsel %vm2779_vm7, %v6551_v17, 0.0 }
 0x9ec   : > { %v3432_v27 = vadd.f32 %v4324_v6, %v6531_v30  ;;  %v3423_v48 = vpop.f32.mrb[1].mxu1 }
 0x9ed   : > { %v3424_v47 = vadd.f32 %v6531_v30, %v3423_v48  ;;  %v4325_v8 = vpop.f32.mrb[2].mxu1  ;;  %3489 = vadd.xlane.f32.xlu0 %v3488_v1 }
 0x9ee   : > { %v3435_v33 = vadd.f32 %v4325_v8, %v6531_v30  ;;  %v3426_v2 = vpop.f32.mrb[3].mxu1  ;;  %v6561_v53 = vadd.f32 %v3432_v27, %v6451_v51 }
 0x9ef   : > { %v3427_v54 = vadd.f32 %v6531_v30, %v3426_v2  ;;  %3492 = vadd.xlane.f32.xlu1 %v3491_v39  ;;  %v6570_v23 = vadd.f32 %v3424_v47, %v6436_v55 }
 0x9f0   : > { %v3506_v18 = vsel %vm2779_vm7, %v6561_v53, 0.0  ;;  %v6567_v24 = vadd.f32 %v3435_v33, %v6454_v56 }
 0x9f1   : > { %3507 = vadd.xlane.f32.xlu0 %v3506_v18  ;;  %v6575_v45 = vadd.f32 %v3427_v54, %v6439_v3  ;;  %v3500_v62 = vsel %vm2779_vm7, %v6570_v23, 0.0 }
 0x9f2   : > { %v3509_v31 = vsel %vm2779_vm7, %v6567_v24, 0.0 }
 0x9f3   : > { %v4328_v51 = vpop.f32.mrb[4].mxu1  ;;  %3510 = vadd.xlane.f32.xlu1 %v3509_v31  ;;  %v3503_v15 = vsel %vm2779_vm7, %v6575_v45, 0.0 }
 0x9f4   : > { %v3448_v40 = vadd.f32 %v4328_v51, %v6531_v30  ;;  %v3439_v10 = vpop.f32.mrb[5].mxu1 }
 0x9f5   : > { %v3440_v56 = vadd.f32 %v6531_v30, %v3439_v10  ;;  %v4329_v4 = vpop.f32.mrb[6].mxu1  ;;  %3501 = vadd.xlane.f32.xlu0 %v3500_v62 }
 0x9f6   : > { %v3451_v55 = vadd.f32 %v4329_v4, %v6531_v30  ;;  %v3442_v44 = vpop.f32.mrb[7].mxu1  ;;  %v6585_v3 = vadd.f32 %v3448_v40, %v6481_v12 }
 0x9f7   : > { %v3443_v13 = vadd.f32 %v6531_v30, %v3442_v44  ;;  %3504 = vadd.xlane.f32.xlu1 %v3503_v15  ;;  %v6594_v29 = vadd.f32 %v3440_v56, %v6466_v58 }
 0x9f8   : > { %v3518_v5 = vsel %vm2779_vm7, %v6585_v3, 0.0  ;;  %v6591_v32 = vadd.f32 %v3451_v55, %v6484_v0 }
 0x9f9   : > { %3519 = vadd.xlane.f32.xlu0 %v3518_v5  ;;  %v6599_v59 = vadd.f32 %v3443_v13, %v6469_v34  ;;  %v3512_v16 = vsel %vm2779_vm7, %v6594_v29, 0.0 }
 0x9fa   : > { %v3521_v42 = vsel %vm2779_vm7, %v6591_v32, 0.0 }
 0x9fb   : > { %3522 = vadd.xlane.f32.xlu1 %v3521_v42  ;;  %v4332_v12 = vpop.f32.mrb[8].mxu1  ;;  %v3515_v21 = vsel %vm2779_vm7, %v6599_v59, 0.0 }
 0x9fc   : > { %v3455_v11 = vpop.f32.mrb[9].mxu1  ;;  %v3464_v19 = vadd.f32 %v4332_v12, %v6531_v30 }
 0x9fd   : > { %v3456_v0 = vadd.f32 %v6531_v30, %v3455_v11  ;;  %3513 = vadd.xlane.f32.xlu0 %v3512_v16  ;;  %v4333_v58 = vpop.f32.mrb[10].mxu1 }
 0x9fe   : > { %v3458_v28 = vpop.f32.mrb[11].mxu1  ;;  %v3467_v63 = vadd.f32 %v4333_v58, %v6531_v30  ;;  %v6618_v7 = vadd.f32 %v3464_v19, %v6510_v50 }
 0x9ff   : > { %v3459_v34 = vadd.f32 %v6531_v30, %v3458_v28  ;;  %3516 = vadd.xlane.f32.xlu1 %v3515_v21  ;;  %v6610_v20 = vadd.f32 %v3456_v0, %v6496_v43 }
 0xa00   : > { %v6623_v9 = vadd.f32 %v3467_v63, %v6513_v60  ;;  %v3530_v43 = vsel %vm2779_vm7, %v6618_v7, 0.0 }
 0xa01   : > { %v3524_v14 = vsel %vm2779_vm7, %v6610_v20, 0.0  ;;  %v6615_v25 = vadd.f32 %v3459_v34, %v6499_v26 }
 0xa02   : > { %3525 = vadd.xlane.f32.xlu0 %v3524_v14  ;;  %v3533_v30 = vsel %vm2779_vm7, %v6623_v9, 0.0 }
 0xa03   : > { %v3527_v49 = vsel %vm2779_vm7, %v6615_v25, 0.0 }
 0xa04   : > { %3528 = vadd.xlane.f32.xlu1 %v3527_v49 }
 0xa06   : > { %3531 = vadd.xlane.f32.xlu0 %v3530_v43 }
 0xa08   : > { %3534 = vadd.xlane.f32.xlu1 %v3533_v30 }
 0xa76   : > { %v3496_v26 = vpop.xlane.xlu0 %3495 }
 0xa77   : > { %v3538_v35 = vmul.f32 0.03125, %v3496_v26 }
 0xa78   : > { %v3499_v50 = vpop.xlane.xlu1 %3498 }
 0xa79   : > { %v6630_v46 = vsub.f32 %v6537_v61, %v3538_v35  ;;  %v3539_v57 = vmul.f32 0.03125, %v3499_v50 }
 0xa7a   : > { %v3490_v41 = vpop.xlane.xlu0 %3489 }
 0xa7b   : > { %v6633_v60 = vsub.f32 %v6543_v37, %v3539_v57  ;;  %v3536_v22 = vmul.f32 0.03125, %v3490_v41  ;;  %v3570_v36 = vmul.f32 %v6630_v46, %v6630_v46 }
 0xa7c   : > { %v3493_v52 = vpop.xlane.xlu1 %3492 }
 0xa7d   : > { %v6638_v6 = vsub.f32 %v6546_v38, %v3536_v22  ;;  %v3537_v27 = vmul.f32 0.03125, %v3493_v52  ;;  %v3590_v48 = vsel %vm2779_vm7, %v3570_v36, 0.0  ;;  %v3571_v61 = vmul.f32 %v6633_v60, %v6633_v60 }
 0xa7e   : > { %v3508_v1 = vpop.xlane.xlu0 %3507  ;;  %3591 = vadd.xlane.f32.xlu0 %v3590_v48 }
 0xa7f   : > { %v6644_v47 = vsub.f32 %v6551_v17, %v3537_v27  ;;  %v3542_v37 = vmul.f32 0.03125, %v3508_v1  ;;  %v3593_v8 = vsel %vm2779_vm7, %v3571_v61, 0.0  ;;  %v3568_v33 = vmul.f32 %v6638_v6, %v6638_v6 }
 0xa80   : > { %v3511_v2 = vpop.xlane.xlu1 %3510  ;;  %3594 = vadd.xlane.f32.xlu1 %v3593_v8 }
 0xa81   : > { %v6650_v38 = vsub.f32 %v6561_v53, %v3542_v37  ;;  %v3543_v39 = vmul.f32 0.03125, %v3511_v2  ;;  %v3584_v54 = vsel %vm2779_vm7, %v3568_v33, 0.0  ;;  %v3569_v18 = vmul.f32 %v6644_v47, %v6644_v47 }
 0xa82   : > { %v3502_v31 = vpop.xlane.xlu0 %3501  ;;  %3585 = vadd.xlane.f32.xlu0 %v3584_v54 }
 0xa83   : > { %v6656_v17 = vsub.f32 %v6567_v24, %v3543_v39  ;;  %v3540_v51 = vmul.f32 0.03125, %v3502_v31  ;;  %v3587_v40 = vsel %vm2779_vm7, %v3569_v18, 0.0  ;;  %v3574_v10 = vmul.f32 %v6650_v38, %v6650_v38 }
 0xa84   : > { %v3505_v62 = vpop.xlane.xlu1 %3504  ;;  %3588 = vadd.xlane.f32.xlu1 %v3587_v40 }
 0xa85   : > { %v6662_v53 = vsub.f32 %v6570_v23, %v3540_v51  ;;  %v3541_v56 = vmul.f32 0.03125, %v3505_v62  ;;  %v3602_v4 = vsel %vm2779_vm7, %v3574_v10, 0.0  ;;  %v3575_v55 = vmul.f32 %v6656_v17, %v6656_v17 }
 0xa86   : > { %v3520_v44 = vpop.xlane.xlu0 %3519  ;;  %3603 = vadd.xlane.f32.xlu0 %v3602_v4 }
 0xa87   : > { %v6668_v24 = vsub.f32 %v6575_v45, %v3541_v56  ;;  %v3546_v15 = vmul.f32 0.03125, %v3520_v44  ;;  %v3605_v13 = vsel %vm2779_vm7, %v3575_v55, 0.0  ;;  %v3572_v5 = vmul.f32 %v6662_v53, %v6662_v53 }
 0xa88   : > { %v3523_v42 = vpop.xlane.xlu1 %3522  ;;  %3606 = vadd.xlane.f32.xlu1 %v3605_v13 }
 0xa89   : > { %v6674_v23 = vsub.f32 %v6585_v3, %v3546_v15  ;;  %v3547_v12 = vmul.f32 0.03125, %v3523_v42  ;;  %v3596_v11 = vsel %vm2779_vm7, %v3572_v5, 0.0  ;;  %v3573_v16 = vmul.f32 %v6668_v24, %v6668_v24 }
 0xa8a   : > { %v3514_v19 = vpop.xlane.xlu0 %3513  ;;  %3597 = vadd.xlane.f32.xlu0 %v3596_v11 }
 0xa8b   : > { %v6680_v45 = vsub.f32 %v6591_v32, %v3547_v12  ;;  %v3544_v0 = vmul.f32 0.03125, %v3514_v19  ;;  %v3599_v58 = vsel %vm2779_vm7, %v3573_v16, 0.0  ;;  %v3578_v28 = vmul.f32 %v6674_v23, %v6674_v23 }
 0xa8c   : > { %v3517_v21 = vpop.xlane.xlu1 %3516  ;;  %3600 = vadd.xlane.f32.xlu1 %v3599_v58 }
 0xa8d   : > { %v6686_v3 = vsub.f32 %v6594_v29, %v3544_v0  ;;  %v3545_v63 = vmul.f32 0.03125, %v3517_v21  ;;  %v3614_v34 = vsel %vm2779_vm7, %v3578_v28, 0.0  ;;  %v3579_v14 = vmul.f32 %v6680_v45, %v6680_v45  ;;  %v6728_v28 = vld [vmem:[%s6933_s11] ss:$0 sm:$0xff] }
 0xa8e   : > { %3615 = vadd.xlane.f32.xlu0 %v3614_v34 }
 0xa8f   : > { %v6692_v32 = vsub.f32 %v6599_v59, %v3545_v63  ;;  %v3526_v49 = vpop.xlane.xlu0 %3525  ;;  %v3617_v43 = vsel %vm2779_vm7, %v3579_v14, 0.0  ;;  %v3576_v30 = vmul.f32 %v6686_v3, %v6686_v3 }
 0xa90   : > { %v3548_v26 = vmul.f32 0.03125, %v3526_v49  ;;  %3618 = vadd.xlane.f32.xlu1 %v3617_v43  ;;  %v6734_v43 = vld [vmem:[%s6934_s12] ss:$0 sm:$0xff] }
 0xa91   : > { %v3529_v29 = vpop.xlane.xlu1 %3528  ;;  %v3608_v35 = vsel %vm2779_vm7, %v3576_v30, 0.0  ;;  %v3577_v50 = vmul.f32 %v6692_v32, %v6692_v32 }
 0xa92   : > { %v6701_v57 = vsub.f32 %v6610_v20, %v3548_v26  ;;  %v3549_v41 = vmul.f32 0.03125, %v3529_v29  ;;  %3609 = vadd.xlane.f32.xlu0 %v3608_v35 }
 0xa93   : > { %v3532_v59 = vpop.xlane.xlu0 %3531  ;;  %v3611_v22 = vsel %vm2779_vm7, %v3577_v50, 0.0 }
 0xa94   : > { %v6705_v36 = vsub.f32 %v6615_v25, %v3549_v41  ;;  %v3550_v52 = vmul.f32 0.03125, %v3532_v59  ;;  %3612 = vadd.xlane.f32.xlu1 %v3611_v22  ;;  %v3580_v27 = vmul.f32 %v6701_v57, %v6701_v57 }
 0xa95   : > { %v3535_v48 = vpop.xlane.xlu1 %3534 }
 0xa96   : > { %v6710_v61 = vsub.f32 %v6618_v7, %v3550_v52  ;;  %v3551_v1 = vmul.f32 0.03125, %v3535_v48  ;;  %v3620_v20 = vsel %vm2779_vm7, %v3580_v27, 0.0  ;;  %v3581_v37 = vmul.f32 %v6705_v36, %v6705_v36 }
 0xa97   : > { %3621 = vadd.xlane.f32.xlu0 %v3620_v20 }
 0xa98   : > { %v6716_v8 = vsub.f32 %v6623_v9, %v3551_v1  ;;  %v3623_v25 = vsel %vm2779_vm7, %v3581_v37, 0.0  ;;  %v3582_v33 = vmul.f32 %v6710_v61, %v6710_v61 }
 0xa99   : > { %3624 = vadd.xlane.f32.xlu1 %v3623_v25 }
 0xa9a   : > { %v3626_v2 = vsel %vm2779_vm7, %v3582_v33, 0.0  ;;  %v3583_v7 = vmul.f32 %v6716_v8, %v6716_v8 }
 0xa9b   : > { %3627 = vadd.xlane.f32.xlu0 %v3626_v2 }
 0xa9c   : > { %v3629_v39 = vsel %vm2779_vm7, %v3583_v7, 0.0 }
 0xa9d   : > { %3630 = vadd.xlane.f32.xlu1 %v3629_v39 }
 0xb0b   : > { %v3592_v54 = vpop.xlane.xlu0 %3591 }
 0xb0c   : > { %v3634_v18 = vmul.f32 0.03125, %v3592_v54 }
 0xb0d   : > { %v3595_v31 = vpop.xlane.xlu1 %3594 }
 0xb0e   : > { %v3650_v9 = vadd.f32 1e-05, %v3634_v18  ;;  %v3635_v51 = vmul.f32 0.03125, %v3595_v31 }
 0xb0f   : > { %v3586_v40 = vpop.xlane.xlu0 %3585 }
 0xb10   : > { %4728 = vrsqrt.f32 %v3650_v9  ;;  %v3651_v10 = vadd.f32 1e-05, %v3635_v51  ;;  %v3632_v62 = vmul.f32 0.03125, %v3586_v40 }
 0xb11   : > { %v3589_v56 = vpop.xlane.xlu1 %3588 }
 0xb12   : > { %4730 = vrsqrt.f32 %v3651_v10  ;;  %v3648_v4 = vadd.f32 1e-05, %v3632_v62  ;;  %v3633_v55 = vmul.f32 0.03125, %v3589_v56 }
 0xb13   : > { %v3604_v44 = vpop.xlane.xlu0 %3603 }
 0xb14   : > { %4732 = vrsqrt.f32 %v3648_v4  ;;  %v3649_v15 = vadd.f32 1e-05, %v3633_v55  ;;  %v3638_v13 = vmul.f32 0.03125, %v3604_v44 }
 0xb15   : > { %v3607_v5 = vpop.xlane.xlu1 %3606 }
 0xb16   : > { %4734 = vrsqrt.f32 %v3649_v15  ;;  %v3654_v42 = vadd.f32 1e-05, %v3638_v13  ;;  %v3639_v12 = vmul.f32 0.03125, %v3607_v5 }
 0xb17   : > { %v3598_v11 = vpop.xlane.xlu0 %3597 }
 0xb18   : > { %4736 = vrsqrt.f32 %v3654_v42  ;;  %v3655_v16 = vadd.f32 1e-05, %v3639_v12  ;;  %v3636_v19 = vmul.f32 0.03125, %v3598_v11 }
 0xb19   : > { %v3601_v0 = vpop.xlane.xlu1 %3600 }
 0xb1a   : > { %v4729_v58 = vpop.eup %4728  ;;  %4738 = vrsqrt.f32 %v3655_v16  ;;  %v3652_v21 = vadd.f32 1e-05, %v3636_v19  ;;  %v3637_v63 = vmul.f32 0.03125, %v3601_v0 }
 0xb1b   : > { %v3682_v34 = vmul.f32 %v4729_v58, %v6630_v46  ;;  %v3616_v14 = vpop.xlane.xlu0 %3615 }
 0xb1c   : > { %v4731_v49 = vpop.eup %4730  ;;  %4740 = vrsqrt.f32 %v3652_v21  ;;  %v3653_v30 = vadd.f32 1e-05, %v3637_v63  ;;  %v3642_v26 = vmul.f32 0.03125, %v3616_v14 }
 0xb1d   : > { %v3704_v29 = vmul.f32 %v6728_v28, %v3682_v34  ;;  %v3683_v35 = vmul.f32 %v4731_v49, %v6633_v60  ;;  %v3619_v50 = vpop.xlane.xlu1 %3618 }
 0xb1e   : > { %v4733_v41 = vpop.eup %4732  ;;  %4742 = vrsqrt.f32 %v3653_v30  ;;  %v3658_v59 = vadd.f32 1e-05, %v3642_v26  ;;  %v3643_v46 = vmul.f32 0.03125, %v3619_v50 }
 0xb1f   : > { %v3726_v22 = vadd.f32 %v6734_v43, %v3704_v29  ;;  %v3705_v52 = vmul.f32 %v6728_v28, %v3683_v35  ;;  %v3680_v27 = vmul.f32 %v4733_v41, %v6638_v6  ;;  %v3610_v48 = vpop.xlane.xlu0 %3609 }
 0xb20   : > { %v4735_v1 = vpop.eup %4734  ;;  %4744 = vrsqrt.f32 %v3658_v59  ;;  %v3659_v20 = vadd.f32 1e-05, %v3643_v46  ;;  %v3640_v37 = vmul.f32 0.03125, %v3610_v48 }
 0xb21   : > { %3742 = vst.msk [vmem:[%s5079_s15 + $0x10] sm:$0xff] %vm2779_vm7, %v3726_v22  ;;  %v3727_v60 = vadd.f32 %v6734_v43, %v3705_v52  ;;  %v3702_v25 = vmul.f32 %v6728_v28, %v3680_v27  ;;  %v3681_v33 = vmul.f32 %v4735_v1, %v6644_v47  ;;  %v3613_v2 = vpop.xlane.xlu1 %3612 }
 0xb22   : > { %v4737_v7 = vpop.eup %4736  ;;  %4746 = vrsqrt.f32 %v3659_v20  ;;  %v3656_v39 = vadd.f32 1e-05, %v3640_v37  ;;  %v3641_v54 = vmul.f32 0.03125, %v3613_v2 }
 0xb23   : > { %3743 = vst.msk [vmem:[%s5079_s15 + $0x18] sm:$0xff] %vm2779_vm7, %v3727_v60  ;;  %v3724_v6 = vadd.f32 %v6734_v43, %v3702_v25  ;;  %v3703_v18 = vmul.f32 %v6728_v28, %v3681_v33  ;;  %v3686_v31 = vmul.f32 %v4737_v7, %v6650_v38 }
 0xb24   : > { %v4739_v9 = vpop.eup %4738  ;;  %4748 = vrsqrt.f32 %v3656_v39  ;;  %v3657_v51 = vadd.f32 1e-05, %v3641_v54  ;;  %v3622_v40 = vpop.xlane.xlu0 %3621 }
 0xb25   : > { %3740 = vst.msk [vmem:[%s5079_s15] sm:$0xff] %vm2779_vm7, %v3724_v6  ;;  %v3725_v47 = vadd.f32 %v6734_v43, %v3703_v18  ;;  %v3708_v10 = vmul.f32 %v6728_v28, %v3686_v31  ;;  %v3687_v62 = vmul.f32 %v4739_v9, %v6656_v17  ;;  %v3644_v56 = vmul.f32 0.03125, %v3622_v40 }
 0xb26   : > { %v4741_v4 = vpop.eup %4740  ;;  %4750 = vrsqrt.f32 %v3657_v51  ;;  %v3625_v55 = vpop.xlane.xlu1 %3624 }
 0xb27   : > { %3741 = vst.msk [vmem:[%s5079_s15 + $0x8] sm:$0xff] %vm2779_vm7, %v3725_v47  ;;  %v3730_v38 = vadd.f32 %v6734_v43, %v3708_v10  ;;  %v3709_v44 = vmul.f32 %v6728_v28, %v3687_v62  ;;  %v3684_v15 = vmul.f32 %v4741_v4, %v6662_v53  ;;  %v3660_v13 = vadd.f32 1e-05, %v3644_v56 }
 0xb28   : > { %v4743_v5 = vpop.eup %4742  ;;  %v3645_v42 = vmul.f32 0.03125, %v3625_v55  ;;  %v3628_v12 = vpop.xlane.xlu0 %3627 }
 0xb29   : > { %3746 = vst.msk [vmem:[%s5079_s15 + $0x30] sm:$0xff] %vm2779_vm7, %v3730_v38  ;;  %v3731_v17 = vadd.f32 %v6734_v43, %v3709_v44  ;;  %v3706_v11 = vmul.f32 %v6728_v28, %v3684_v15  ;;  %v3685_v16 = vmul.f32 %v4743_v5, %v6668_v24  ;;  %4752 = vrsqrt.f32 %v3660_v13 }
 0xb2a   : > { %v4745_v19 = vpop.eup %4744  ;;  %v3661_v0 = vadd.f32 1e-05, %v3645_v42  ;;  %v3646_v58 = vmul.f32 0.03125, %v3628_v12  ;;  %v3631_v21 = vpop.xlane.xlu1 %3630 }
 0xb2b   : > { %3747 = vst.msk [vmem:[%s5079_s15 + $0x38] sm:$0xff] %vm2779_vm7, %v3731_v17  ;;  %v3728_v53 = vadd.f32 %v6734_v43, %v3706_v11  ;;  %v3707_v63 = vmul.f32 %v6728_v28, %v3685_v16  ;;  %v3690_v34 = vmul.f32 %v4745_v19, %v6674_v23  ;;  %v3647_v14 = vmul.f32 0.03125, %v3631_v21 }
 0xb2c   : > { %v4747_v49 = vpop.eup %4746  ;;  %4754 = vrsqrt.f32 %v3661_v0  ;;  %v3662_v30 = vadd.f32 1e-05, %v3646_v58 }
 0xb2d   : > { %3744 = vst.msk [vmem:[%s5079_s15 + $0x20] sm:$0xff] %vm2779_vm7, %v3728_v53  ;;  %v3729_v24 = vadd.f32 %v6734_v43, %v3707_v63  ;;  %v3712_v26 = vmul.f32 %v6728_v28, %v3690_v34  ;;  %v3691_v29 = vmul.f32 %v4747_v49, %v6680_v45  ;;  %v3663_v35 = vadd.f32 1e-05, %v3647_v14 }
 0xb2e   : > { %v4749_v50 = vpop.eup %4748  ;;  %4756 = vrsqrt.f32 %v3662_v30 }
 0xb2f   : > { %3745 = vst.msk [vmem:[%s5079_s15 + $0x28] sm:$0xff] %vm2779_vm7, %v3729_v24  ;;  %v3734_v23 = vadd.f32 %v6734_v43, %v3712_v26  ;;  %v3713_v41 = vmul.f32 %v6728_v28, %v3691_v29  ;;  %v3688_v59 = vmul.f32 %v4749_v50, %v6686_v3  ;;  %4758 = vrsqrt.f32 %v3663_v35 }
 0xb30   : > { %v4751_v46 = vpop.eup %4750 }
 0xb31   : > { %3750 = vst.msk [vmem:[%s5079_s15 + $0x50] sm:$0xff] %vm2779_vm7, %v3734_v23  ;;  %v3735_v22 = vadd.f32 %v6734_v43, %v3713_v41  ;;  %v3710_v45 = vmul.f32 %v6728_v28, %v3688_v59  ;;  %v3689_v52 = vmul.f32 %v4751_v46, %v6692_v32 }
 0xb33   : > { %v4753_v27 = vpop.eup %4752  ;;  %3751 = vst.msk [vmem:[%s5079_s15 + $0x58] sm:$0xff] %vm2779_vm7, %v3735_v22  ;;  %v3732_v48 = vadd.f32 %v6734_v43, %v3710_v45  ;;  %v3711_v1 = vmul.f32 %v6728_v28, %v3689_v52 }
 0xb34   : > { %v3692_v3 = vmul.f32 %v4753_v27, %v6701_v57 }
 0xb35   : > { %3748 = vst.msk [vmem:[%s5079_s15 + $0x40] sm:$0xff] %vm2779_vm7, %v3732_v48  ;;  %v3733_v20 = vadd.f32 %v6734_v43, %v3711_v1 }
 0xb36   : > { %v4755_v37 = vpop.eup %4754  ;;  %v3714_v60 = vmul.f32 %v6728_v28, %v3692_v3 }
 0xb37   : > { %3749 = vst.msk [vmem:[%s5079_s15 + $0x48] sm:$0xff] %vm2779_vm7, %v3733_v20  ;;  %v3693_v32 = vmul.f32 %v4755_v37, %v6705_v36 }
 0xb38   : > { %v4757_v25 = vpop.eup %4756  ;;  %v3736_v33 = vadd.f32 %v6734_v43, %v3714_v60 }
 0xb39   : > { %v4759_v2 = vpop.eup %4758  ;;  %v3715_v57 = vmul.f32 %v6728_v28, %v3693_v32  ;;  %v3694_v7 = vmul.f32 %v4757_v25, %v6710_v61 }
 0xb3a   : > { %3752 = vst.msk [vmem:[%s5079_s15 + $0x60] sm:$0xff] %vm2779_vm7, %v3736_v33  ;;  %v3695_v39 = vmul.f32 %v4759_v2, %v6716_v8 }
 0xb3b   : > { %v3737_v54 = vadd.f32 %v6734_v43, %v3715_v57  ;;  %v3716_v6 = vmul.f32 %v6728_v28, %v3694_v7 }
 0xb3c   : > { %v3717_v18 = vmul.f32 %v6728_v28, %v3695_v39 }
 0xb3d   : > { %3753 = vst.msk [vmem:[%s5079_s15 + $0x68] sm:$0xff] %vm2779_vm7, %v3737_v54  ;;  %v3738_v36 = vadd.f32 %v6734_v43, %v3716_v6 }
 0xb3e   : > { %v3739_v31 = vadd.f32 %v6734_v43, %v3717_v18 }
 0xb3f   : > { %3754 = vst.msk [vmem:[%s5079_s15 + $0x70] sm:$0xff] %vm2779_vm7, %v3738_v36 }
 0xb40   : > { %3755 = vst.msk [vmem:[%s5079_s15 + $0x78] sm:$0xff] %vm2779_vm7, %v3739_v31 }
 0xb41 PF: > { %s6979_s14 = sld [smem:[#allocation25_spill]]  ;;  %s4089_s21 = sshll.u32 %s4870_s24, 4 }
 0xb42   : > { %s4090_s23 = sshll.u32 %s4874_s25, 6  ;;  %s3790_s27 = sshll.u32 %s5086_s22, 4  ;;  %s6820_s27 = int_to_ptr.vmem [resolvable:$true] %s3790_s27 }
 0xb43   : > { %s6818_s28 = sadd.s32 %s4090_s23, %s4089_s21  ;;  %s6981_s26 = sld [smem:[#allocation28_spill]] }
 0xb44   : > { %s4091_s17 = sshll.u32 %s6818_s28, 7  ;;  %s4760_s24 = scalar_lea.vmem %s6820_s27, 2048 }
 0xb45   : > { %p4761_p1 = scmp.ne.s32.totalorder %s6820_s27, %s4760_s24  ;;  %s4905_s22 = smov [#allocation8]  }
 0xb46   : > { %s4764_s25 = sshll.u32 %s4905_s22, 4  ;;  %s4765_s25 = int_to_ptr.vmem [resolvable:$false] %s4764_s25 }
 0xb47   : > { %s3762_s19 = scalar_lea.sflag [#allocation9], %s6979_s14  ;;  %p4762_p2 = pnand %p4761_p1, %p5045_p3 }
 0xb48   : > { %s4766_s21 = scalar_lea.vmem %s4765_s25, 4096  ;;  %p4767_p5 = scmp.lt.s32.totalorder %s6820_s27, %s4765_s25 }
 0xb49   : > { %s6982_s0 = smov %s6981_s26  ;;  %s6828_s18 = scalar_lea.hbm %s6981_s26, %s4091_s17 }
 0xb4a   : > { %p4763_p4 = pneg %p4762_p2  ;;  %p4768_p6 = scmp.lt.s32.totalorder %s4766_s21, %s4760_s24 }
 0xb4c   : > { %p4769_p7 = por %p4768_p6, %p4767_p5 }
 0xb4e   : > { %p4770_p9 = pnand %p4769_p7, %p4763_p4 }
 0xb50   : > { %4773 = shalt.err (!%p4770_p9)
}
 0xb51   : > { %s4774_s23 = scalar_lea.hbm %s6828_s18, 2048  ;;  %s4778_s26 = scalar_lea.hbm %s6982_s0, 16384 }
 0xb52   : > { %p4775_p10 = scmp.ne.s32.totalorder %s6828_s18, %s4774_s23  ;;  %p4779_p13 = scmp.lt.u32.totalorder %s6828_s18, %s6982_s0 }
 0xb53   : > { %p4780_p0 = scmp.lt.u32.totalorder %s4778_s26, %s4774_s23  ;;  %p4782_p2 = scmp.lt.u32.totalorder %s4774_s23, %s6828_s18 }
 0xb54   : > { %p4776_p11 = pnand %p4775_p10, %p5045_p3 }
 0xb55   : > { %p4781_p1 = por %p4780_p0, %p4779_p13 }
 0xb56   : > { %p4777_p12 = pneg %p4776_p11 }
 0xb57   : > { %p4783_p4 = por %p4782_p2, %p4781_p1 }
 0xb59   : > { %p4784_p5 = pnand %p4783_p4, %p4777_p12 }
 0xb5b   : > { %4787 = shalt.err (!%p4784_p5)
}
 0xb5c   : > { %s4906_s24 = smov 128   ;;  %s4907_s21 = smov 8  }
 0xb5d   : > { %4363 = dma.vmem_to_hbm [thread:$0]  (%p5045_p3), %s6820_s27, 2048, %s6828_s18, %s3762_s19, %s4906_s24, %s4906_s24, %s4907_s21  }
 0xb5e   : > { %s6983_s20 = sld [smem:[#allocation29_spill]]  ;;  %s3808_s22 = sshll.u32 %s5088_s30, 4  ;;  %s6865_s22 = int_to_ptr.vmem [resolvable:$true] %s3808_s22 }
 0xb5f   : > { %s3767_s25 = scalar_lea.sflag [#allocation11], %s6979_s14  ;;  %s4788_s0 = scalar_lea.vmem %s6865_s22, 2048 }
 0xb60   : > { %p4789_p6 = scmp.ne.s32.totalorder %s6865_s22, %s4788_s0  ;;  %s4908_s1 = smov [#allocation10]  }
 0xb61   : > { %s4792_s27 = sshll.u32 %s4908_s1, 4  ;;  %s4793_s27 = int_to_ptr.vmem [resolvable:$false] %s4792_s27 }
 0xb62   : > { %p4790_p7 = pnand %p4789_p6, %p5045_p3  ;;  %s4794_s28 = scalar_lea.vmem %s4793_s27, 4096 }
 0xb63   : > { %p4795_p10 = scmp.lt.s32.totalorder %s6865_s22, %s4793_s27  ;;  %p4796_p11 = scmp.lt.s32.totalorder %s4794_s28, %s4788_s0 }
 0xb64   : > { %s6862_s26 = scalar_lea.hbm %s6983_s20, %s4091_s17  ;;  %p4791_p9 = pneg %p4790_p7 }
 0xb65   : > { %p4797_p12 = por %p4796_p11, %p4795_p10 }
 0xb67   : > { %p4798_p13 = pnand %p4797_p12, %p4791_p9 }
 0xb69   : > { %4801 = shalt.err (!%p4798_p13)
}
 0xb6a   : > { %s4802_s30 = scalar_lea.hbm %s6862_s26, 2048  ;;  %s4806_s1 = scalar_lea.hbm %s6983_s20, 16384 }
 0xb6b   : > { %p4803_p0 = scmp.ne.s32.totalorder %s6862_s26, %s4802_s30  ;;  %p4807_p4 = scmp.lt.u32.totalorder %s6862_s26, %s6983_s20 }
 0xb6c   : > { %p4808_p5 = scmp.lt.u32.totalorder %s4806_s1, %s4802_s30  ;;  %p4810_p7 = scmp.lt.u32.totalorder %s4802_s30, %s6862_s26 }
 0xb6d   : > { %p4804_p1 = pnand %p4803_p0, %p5045_p3 }
 0xb6e   : > { %p4809_p6 = por %p4808_p5, %p4807_p4 }
 0xb6f   : > { %p4805_p2 = pneg %p4804_p1 }
 0xb70   : > { %p4811_p9 = por %p4810_p7, %p4809_p6 }
 0xb72   : > { %p4812_p10 = pnand %p4811_p9, %p4805_p2 }
 0xb74   : > { %4815 = shalt.err (!%p4812_p10)
}
 0xb75   : > { %4364 = dma.vmem_to_hbm [thread:$0]  (%p5045_p3), %s6865_s22, 2048, %s6862_s26, %s3767_s25, %s4906_s24, %s4906_s24, %s4907_s21  }
 0xb76 PF: > { %s6984_s0 = sld [smem:[#allocation19_spill]]  ;;  %s6985_s15 = sld [smem:[#allocation14_spill]] }
 0xb7c   : > { %p4374_p11 = scmp.ge.s32.totalorder %s6984_s0, 2  ;;  %s3834_s28 = sand.u32 1, %s6985_s15  }
 0xb7d   : > { %s3835_s30 = scalar_lea.sflag [#allocation9], %s3834_s28 }
 0xb7e   : > { %p4368_p12 = pnand %p4374_p11, %p5054_p8 }
 0xb80   : > { %4849 = dma.done.wait (!%p4368_p12), %s3835_s30, 2048  }
 0xb81   : > { %4851 = vsyncadd (!%p4368_p12), %s3835_s30, 4294965248  ;;  %s3844_s29 = scalar_lea.sflag [#allocation11], %s3834_s28 }
 0xb82   : > { %4853 = dma.done.wait (!%p4368_p12), %s3844_s29, 2048  }
 0xb83   : > { %4855 = vsyncadd (!%p4368_p12), %s3844_s29, 4294965248  ;;  %s33_s28 = sadd.s32 1, %s6984_s0   ;;  %s6987_s21 = sld [smem:[#allocation15_spill]] }
 0xb84   : > { %p30_p13 = scmp.ge.s32.totalorder %s33_s28, 10   ;;  %s6988_s22 = sld [smem:[#allocation16_spill]] }
 0xb85   : > { %s6989_s23 = sld [smem:[#allocation24_spill]]  ;;  %s6990_s24 = sld [smem:[#allocation17_spill]] }
 0xb86   : > { %s6991_s25 = sld [smem:[#allocation18_spill]]  ;;  %s6992_s26 = sld [smem:[#allocation20_spill]] }
 0xb87   : > { %s6993_s27 = sld [smem:[#allocation22_spill]]  ;;  %32 = sbr.rel (!%p30_p13) target bundleno = 12 (0xc), region = 173 }
 0xb8e   :  { %3857 = vsyncpa [#allocation9], 1 }
 0xb8f   :  { %3859 = vsyncpa [#allocation9 + $0x1], 1 }
 0xb90   :  { %3860 = vsyncpa [#allocation11], 1 }
 0xb91   :  { %3862 = vsyncpa [#allocation11 + $0x1], 1 }

</bundles_post_ra>
